<compile_context>
chip_gen: v7x
topology: tpu7x:2x2x1
jax: 0.10.0
libtpu: 0.0.40
codegen_flags: <defaults>
</compile_context>

<pallas_src>
import jax
import jax.numpy as jnp
from jax.experimental import pallas as pl
from jax.experimental.pallas import tpu as pltpu

FEATURES = 16      # hidden channels
H = 16             # image height  (power of two -> bit-trick masks)
W = 16             # image width   (power of two -> bit-trick masks)
PIX = H * W        # 256 pixels per image
B_BLK = 8          # max images processed per grid step
EPS = 1e-5


def dncnn_kernel(x_ref, w_ref, b_ref, out_ref):
    """Fused DnCNN forward for one block of images.

    x_ref  : (1, 1, M)      flattened images, M = block_batch * 256 (lane axis)
    w_ref  : (4, 16, 144)   per-layer weights (BN scale already folded in),
                            row = cout, col = tap*cin + ci
                            (layer 0 uses cols 0:9; layer 3 uses row 0; rest zero)
    b_ref  : (4, 16, 1)     folded per-layer / per-channel bias
    out_ref: (1, 1, M)      image - DnCNN(image)
    """
    m = x_ref.shape[2]
    x0 = x_ref[0]                                       # (1, M) float32

    # ---- per-pixel border masks for the 8 non-center taps (once per step) ---
    pos = jax.lax.broadcasted_iota(jnp.int32, (1, m), 1)
    py = (pos >> 4) & (W - 1)                           # y within image (W==16)
    px = pos & (W - 1)                                  # x within image

    def build_mask(k):
        dy, dx = k // 3 - 1, k % 3 - 1
        conds = []
        if dy < 0:
            conds.append(py >= 1)
        if dy > 0:
            conds.append(py <= H - 2)
        if dx < 0:
            conds.append(px >= 1)
        if dx > 0:
            conds.append(px <= W - 2)
        if not conds:
            return None                                 # center tap: no mask
        c = conds[0]
        for extra in conds[1:]:
            c = jnp.logical_and(c, extra)
        return c.astype(jnp.float32)

    masks1 = [build_mask(k) for k in range(9)]                       # (1, M)
    masksF = [None if mk is None else jnp.broadcast_to(mk, (FEATURES, m))
              for mk in masks1]                                      # hoisted

    def tap(act, k, masks):
        """act shifted by tap k along the lane axis, zeroed outside the image."""
        dy, dx = k // 3 - 1, k % 3 - 1
        s = dy * W + dx
        r = act if s == 0 else pltpu.roll(act, (-s) % m, axis=1)
        mk = masks[k]
        return r if mk is None else r * mk

    def bias_relu(y, layer, cout, relu):
        bias = b_ref[layer, 0:cout, 0:1]                # (cout, 1)
        y = y + bias
        return jnp.maximum(y, 0.0) if relu else y

    # ---- layer 1: 1 -> 16 channels (VPU broadcast MAC), bias + ReLU --------
    w1 = w_ref[0, :, 0:9]                               # (16, 9)
    h = w1[:, 4:5] * x0                                 # center tap, no mask
    for k in range(9):
        if k == 4:
            continue
        h = h + w1[:, k:k + 1] * tap(x0, k, masks1)     # (16,1)*(1,M) -> (16,M)
    h = bias_relu(h, 0, FEATURES, relu=True)

    # ---- layers 2..4: one K=144 matmul per layer on the MXU ----------------
    def conv(act, layer, cout, relu):
        stacked = jnp.concatenate([tap(act, k, masksF) for k in range(9)],
                                  axis=0)               # (144, M)
        y = jnp.dot(w_ref[layer], stacked,              # (16,144)@(144,M)
                    preferred_element_type=jnp.float32)
        if cout != FEATURES:
            y = y[0:cout, :]                            # unused rows are zero
        return bias_relu(y, layer, cout, relu)

    h = conv(h, 1, FEATURES, relu=True)                 # conv + BN + ReLU
    h = conv(h, 2, FEATURES, relu=True)                 # conv + BN + ReLU
    t = conv(h, 3, 1, relu=False)                       # conv, (1, M)

    out_ref[0] = x0 - t                                 # residual


def dncnn_forward(image_nchw, params, block_batch=B_BLK):
    """image_nchw: (N, 1, H, W) float32 -> (N, 1, H, W) float32."""
    w_all, b_all = params
    n = image_nchw.shape[0]
    block_batch = max(1, min(block_batch, n))           # no waste on tiny batches
    g = pl.cdiv(n, block_batch)
    n_pad = g * block_batch
    m = block_batch * PIX                               # multiple of 128

    x = image_nchw.reshape(n, PIX)
    if n_pad != n:
        x = jnp.pad(x, ((0, n_pad - n), (0, 0)))
    x = x.reshape(g, 1, m)                              # lane-dense blocks

    flops = 2 * n_pad * PIX * 9 * (FEATURES + 2 * FEATURES * FEATURES + FEATURES)
    bytes_accessed = 2 * x.size * 4 + w_all.size * 4 + b_all.size * 4

    out = pl.pallas_call(
        dncnn_kernel,
        out_shape=jax.ShapeDtypeStruct((g, 1, m), jnp.float32),
        grid_spec=pltpu.PrefetchScalarGridSpec(
            num_scalar_prefetch=0,
            grid=(g,),
            in_specs=[
                pl.BlockSpec((1, 1, m), lambda i: (i, 0, 0)),
                pl.BlockSpec(w_all.shape, lambda i: (0, 0, 0)),
                pl.BlockSpec(b_all.shape, lambda i: (0, 0, 0)),
            ],
            out_specs=pl.BlockSpec((1, 1, m), lambda i: (i, 0, 0)),
        ),
        compiler_params=pltpu.CompilerParams(
            dimension_semantics=("parallel",)),
        cost_estimate=pl.CostEstimate(
            flops=flops, transcendentals=0, bytes_accessed=bytes_accessed),
    )(x, w_all, b_all)

    out = out.reshape(n_pad, PIX)[:n]
    return out.reshape(n, 1, H, W)


# ----------------------- deterministic parameter init -----------------------

def init_raw_params(key):
    ks = jax.random.split(key, 10)

    def conv_w(k, cin, cout):                           # HWIO, matches lax.conv
        fan = 9.0 * cin
        return jax.random.normal(k, (3, 3, cin, cout), jnp.float32) / jnp.sqrt(fan)

    def conv_b(k, cout):
        return 0.05 * jax.random.normal(k, (cout,), jnp.float32)

    def bn(k, c):
        kg, kb, km, kv = jax.random.split(k, 4)
        gamma = 1.0 + 0.1 * jax.random.normal(kg, (c,), jnp.float32)
        beta = 0.1 * jax.random.normal(kb, (c,), jnp.float32)
        mean = 0.1 * jax.random.normal(km, (c,), jnp.float32)
        var = jax.random.uniform(kv, (c,), jnp.float32, minval=0.5, maxval=1.5)
        return gamma, beta, mean, var

    return {
        "w1": conv_w(ks[0], 1, FEATURES),        "b1": conv_b(ks[1], FEATURES),
        "w2": conv_w(ks[2], FEATURES, FEATURES), "b2": conv_b(ks[3], FEATURES),
        "bn2": bn(ks[4], FEATURES),
        "w3": conv_w(ks[5], FEATURES, FEATURES), "b3": conv_b(ks[6], FEATURES),
        "bn3": bn(ks[7], FEATURES),
        "w4": conv_w(ks[8], FEATURES, 1),        "b4": conv_b(ks[9], 1),
    }


def fold_params(raw):
    """Pack BN-scale-folded weights into (4,16,144) and folded bias into (4,16,1)."""

    def fold_sb(b, bn_p):
        if bn_p is None:
            return jnp.ones_like(b), b
        gamma, beta, mean, var = bn_p
        scale = gamma / jnp.sqrt(var + EPS)
        return scale, (b - mean) * scale + beta

    def flat_w(w):                                      # (3,3,ci,co) -> (co, 9*ci)
        cout = w.shape[3]
        return jnp.transpose(w, (3, 0, 1, 2)).reshape(cout, -1)

    kdim = 9 * FEATURES
    w_all = jnp.zeros((4, FEATURES, kdim), jnp.float32)
    b_all = jnp.zeros((4, FEATURES, 1), jnp.float32)

    layers = [
        (raw["w1"], raw["b1"], None),
        (raw["w2"], raw["b2"], raw["bn2"]),
        (raw["w3"], raw["b3"], raw["bn3"]),
        (raw["w4"], raw["b4"], None),
    ]
    for idx, (w, b, bn_p) in enumerate(layers):
        scale, bias = fold_sb(b, bn_p)
        wf = flat_w(w) * scale[:, None]                 # fold BN scale into weights
        cout, kk = wf.shape
        w_all = w_all.at[idx, 0:cout, 0:kk].set(wf)
        b_all = b_all.at[idx, 0:cout, 0].set(bias)

    return w_all, b_all


# ------------------------------ pure-JAX reference ---------------------------

def reference_forward(image_nchw, raw):
    x = jnp.transpose(image_nchw, (0, 2, 3, 1))         # NHWC

    def conv(h, w, b):
        y = jax.lax.conv_general_dilated(
            h, w, window_strides=(1, 1), padding="SAME",
            dimension_numbers=("NHWC", "HWIO", "NHWC"))
        return y + b

    def bn(h, p):
        gamma, beta, mean, var = p
        return (h - mean) / jnp.sqrt(var + EPS) * gamma + beta

    h = jax.nn.relu(conv(x, raw["w1"], raw["b1"]))
    h = jax.nn.relu(bn(conv(h, raw["w2"], raw["b2"]), raw["bn2"]))
    h = jax.nn.relu(bn(conv(h, raw["w3"], raw["b3"]), raw["bn3"]))
    t = conv(h, raw["w4"], raw["b4"])
    return jnp.transpose(x - t, (0, 3, 1, 2))           # back to NCHW


if __name__ == "__main__":
    key = jax.random.PRNGKey(0)
    k_img, k_par = jax.random.split(key)

    image = jax.random.normal(k_img, (2, 1, H, W), jnp.float32)   # NCHW, like torch

    raw = init_raw_params(k_par)
    params = fold_params(raw)

    out = jax.block_until_ready(dncnn_forward(image, params))
    ref = jax.block_until_ready(reference_forward(image, raw))

    assert out.shape == image.shape
    err = float(jnp.max(jnp.abs(out - ref)))
    assert err < 1e-3, f"Pallas kernel mismatch vs JAX reference: {err}"

    print("KERNEL_OK")
</pallas_src>

<mosaic_0001>
module attributes {stable_mosaic.version = 11 : i64} {
  func.func @dncnn_kernel(%arg0: i32, %arg1: memref<1x1x512xf32, #tpu.memory_space<vmem>>, %arg2: memref<4x16x144xf32, #tpu.memory_space<vmem>>, %arg3: memref<4x16x1xf32, #tpu.memory_space<vmem>>, %arg4: memref<1x1x512xf32, #tpu.memory_space<vmem>>) attributes {dimension_semantics = [#tpu.dimension_semantics<parallel>], iteration_bounds = array<i64: 1>, scalar_prefetch = 0 : i64, scratch_operands = 0 : i64, tpu.core_type = #tpu.core_type<tc>, window_params = [{transform_indices = @transform_0, window_bounds = array<i64: 1, 1, 512>}, {pipeline_mode = #tpu.pipeline_mode<synchronous>, transform_indices = @transform_1, window_bounds = array<i64: 4, 16, 144>}, {pipeline_mode = #tpu.pipeline_mode<synchronous>, transform_indices = @transform_2, window_bounds = array<i64: 4, 16, 1>}, {transform_indices = @transform_3, window_bounds = array<i64: 1, 1, 512>}]} {
    %c0 = arith.constant 0 : index
    %c0_0 = arith.constant 0 : index
    %c0_1 = arith.constant 0 : index
    %0 = vector.load %arg1[%c0, %c0_0, %c0_1] : memref<1x1x512xf32, #tpu.memory_space<vmem>>, vector<1x1x512xf32>
    %1 = vector.shape_cast %0 : vector<1x1x512xf32> to vector<1x512xf32>
    %2 = tpu.iota {dimensions = array<i32: 1>} : vector<1x512xi32>
    %c4_i32 = arith.constant 4 : i32
    %3 = vector.broadcast %c4_i32 : i32 to vector<1x512xi32>
    %4 = arith.shrsi %2, %3 : vector<1x512xi32>
    %c15_i32 = arith.constant 15 : i32
    %5 = vector.broadcast %c15_i32 : i32 to vector<1x512xi32>
    %6 = arith.andi %4, %5 : vector<1x512xi32>
    %c15_i32_2 = arith.constant 15 : i32
    %7 = vector.broadcast %c15_i32_2 : i32 to vector<1x512xi32>
    %8 = arith.andi %2, %7 : vector<1x512xi32>
    %c1_i32 = arith.constant 1 : i32
    %9 = vector.broadcast %c1_i32 : i32 to vector<1x512xi32>
    %10 = arith.cmpi sge, %6, %9 : vector<1x512xi32>
    %c1_i32_3 = arith.constant 1 : i32
    %11 = vector.broadcast %c1_i32_3 : i32 to vector<1x512xi32>
    %12 = arith.cmpi sge, %8, %11 : vector<1x512xi32>
    %13 = arith.andi %10, %12 : vector<1x512xi1>
    %14 = arith.extui %13 : vector<1x512xi1> to vector<1x512xi32>
    %15 = arith.sitofp %14 : vector<1x512xi32> to vector<1x512xf32>
    %c1_i32_4 = arith.constant 1 : i32
    %16 = vector.broadcast %c1_i32_4 : i32 to vector<1x512xi32>
    %17 = arith.cmpi sge, %6, %16 : vector<1x512xi32>
    %18 = arith.extui %17 : vector<1x512xi1> to vector<1x512xi32>
    %19 = arith.sitofp %18 : vector<1x512xi32> to vector<1x512xf32>
    %c1_i32_5 = arith.constant 1 : i32
    %20 = vector.broadcast %c1_i32_5 : i32 to vector<1x512xi32>
    %21 = arith.cmpi sge, %6, %20 : vector<1x512xi32>
    %c14_i32 = arith.constant 14 : i32
    %22 = vector.broadcast %c14_i32 : i32 to vector<1x512xi32>
    %23 = arith.cmpi sle, %8, %22 : vector<1x512xi32>
    %24 = arith.andi %21, %23 : vector<1x512xi1>
    %25 = arith.extui %24 : vector<1x512xi1> to vector<1x512xi32>
    %26 = arith.sitofp %25 : vector<1x512xi32> to vector<1x512xf32>
    %c1_i32_6 = arith.constant 1 : i32
    %27 = vector.broadcast %c1_i32_6 : i32 to vector<1x512xi32>
    %28 = arith.cmpi sge, %8, %27 : vector<1x512xi32>
    %29 = arith.extui %28 : vector<1x512xi1> to vector<1x512xi32>
    %30 = arith.sitofp %29 : vector<1x512xi32> to vector<1x512xf32>
    %c14_i32_7 = arith.constant 14 : i32
    %31 = vector.broadcast %c14_i32_7 : i32 to vector<1x512xi32>
    %32 = arith.cmpi sle, %8, %31 : vector<1x512xi32>
    %33 = arith.extui %32 : vector<1x512xi1> to vector<1x512xi32>
    %34 = arith.sitofp %33 : vector<1x512xi32> to vector<1x512xf32>
    %c14_i32_8 = arith.constant 14 : i32
    %35 = vector.broadcast %c14_i32_8 : i32 to vector<1x512xi32>
    %36 = arith.cmpi sle, %6, %35 : vector<1x512xi32>
    %c1_i32_9 = arith.constant 1 : i32
    %37 = vector.broadcast %c1_i32_9 : i32 to vector<1x512xi32>
    %38 = arith.cmpi sge, %8, %37 : vector<1x512xi32>
    %39 = arith.andi %36, %38 : vector<1x512xi1>
    %40 = arith.extui %39 : vector<1x512xi1> to vector<1x512xi32>
    %41 = arith.sitofp %40 : vector<1x512xi32> to vector<1x512xf32>
    %c14_i32_10 = arith.constant 14 : i32
    %42 = vector.broadcast %c14_i32_10 : i32 to vector<1x512xi32>
    %43 = arith.cmpi sle, %6, %42 : vector<1x512xi32>
    %44 = arith.extui %43 : vector<1x512xi1> to vector<1x512xi32>
    %45 = arith.sitofp %44 : vector<1x512xi32> to vector<1x512xf32>
    %c14_i32_11 = arith.constant 14 : i32
    %46 = vector.broadcast %c14_i32_11 : i32 to vector<1x512xi32>
    %47 = arith.cmpi sle, %6, %46 : vector<1x512xi32>
    %c14_i32_12 = arith.constant 14 : i32
    %48 = vector.broadcast %c14_i32_12 : i32 to vector<1x512xi32>
    %49 = arith.cmpi sle, %8, %48 : vector<1x512xi32>
    %50 = arith.andi %47, %49 : vector<1x512xi1>
    %51 = arith.extui %50 : vector<1x512xi1> to vector<1x512xi32>
    %52 = arith.sitofp %51 : vector<1x512xi32> to vector<1x512xf32>
    %53 = vector.shape_cast %15 : vector<1x512xf32> to vector<1x512xf32>
    %54 = vector.broadcast %53 : vector<1x512xf32> to vector<16x512xf32>
    %55 = vector.shape_cast %19 : vector<1x512xf32> to vector<1x512xf32>
    %56 = vector.broadcast %55 : vector<1x512xf32> to vector<16x512xf32>
    %57 = vector.shape_cast %26 : vector<1x512xf32> to vector<1x512xf32>
    %58 = vector.broadcast %57 : vector<1x512xf32> to vector<16x512xf32>
    %59 = vector.shape_cast %30 : vector<1x512xf32> to vector<1x512xf32>
    %60 = vector.broadcast %59 : vector<1x512xf32> to vector<16x512xf32>
    %61 = vector.shape_cast %34 : vector<1x512xf32> to vector<1x512xf32>
    %62 = vector.broadcast %61 : vector<1x512xf32> to vector<16x512xf32>
    %63 = vector.shape_cast %41 : vector<1x512xf32> to vector<1x512xf32>
    %64 = vector.broadcast %63 : vector<1x512xf32> to vector<16x512xf32>
    %65 = vector.shape_cast %45 : vector<1x512xf32> to vector<1x512xf32>
    %66 = vector.broadcast %65 : vector<1x512xf32> to vector<16x512xf32>
    %67 = vector.shape_cast %52 : vector<1x512xf32> to vector<1x512xf32>
    %68 = vector.broadcast %67 : vector<1x512xf32> to vector<16x512xf32>
    %c0_13 = arith.constant 0 : index
    %c0_14 = arith.constant 0 : index
    %c0_15 = arith.constant 0 : index
    %69 = vector.load %arg2[%c0_13, %c0_14, %c0_15] : memref<4x16x144xf32, #tpu.memory_space<vmem>>, vector<1x16x9xf32>
    %70 = vector.shape_cast %69 : vector<1x16x9xf32> to vector<16x9xf32>
    %71 = vector.extract_strided_slice %70 {offsets = [0, 4], sizes = [16, 1], strides = [1, 1]} : vector<16x9xf32> to vector<16x1xf32>
    %72 = vector.broadcast %71 : vector<16x1xf32> to vector<16x512xf32>
    %73 = vector.broadcast %1 : vector<1x512xf32> to vector<16x512xf32>
    %74 = arith.mulf %72, %73 : vector<16x512xf32>
    %75 = vector.extract_strided_slice %70 {offsets = [0, 0], sizes = [16, 1], strides = [1, 1]} : vector<16x9xf32> to vector<16x1xf32>
    %c17_i32 = arith.constant 17 : i32
    %76 = tpu.dynamic_rotate %1 by %c17_i32 dim 1 : vector<1x512xf32>, i32 -> vector<1x512xf32>
    %77 = arith.mulf %76, %15 : vector<1x512xf32>
    %78 = vector.broadcast %75 : vector<16x1xf32> to vector<16x512xf32>
    %79 = vector.broadcast %77 : vector<1x512xf32> to vector<16x512xf32>
    %80 = arith.mulf %78, %79 : vector<16x512xf32>
    %81 = arith.addf %74, %80 : vector<16x512xf32>
    %82 = vector.extract_strided_slice %70 {offsets = [0, 1], sizes = [16, 1], strides = [1, 1]} : vector<16x9xf32> to vector<16x1xf32>
    %c16_i32 = arith.constant 16 : i32
    %83 = tpu.dynamic_rotate %1 by %c16_i32 dim 1 : vector<1x512xf32>, i32 -> vector<1x512xf32>
    %84 = arith.mulf %83, %19 : vector<1x512xf32>
    %85 = vector.broadcast %82 : vector<16x1xf32> to vector<16x512xf32>
    %86 = vector.broadcast %84 : vector<1x512xf32> to vector<16x512xf32>
    %87 = arith.mulf %85, %86 : vector<16x512xf32>
    %88 = arith.addf %81, %87 : vector<16x512xf32>
    %89 = vector.extract_strided_slice %70 {offsets = [0, 2], sizes = [16, 1], strides = [1, 1]} : vector<16x9xf32> to vector<16x1xf32>
    %c15_i32_16 = arith.constant 15 : i32
    %90 = tpu.dynamic_rotate %1 by %c15_i32_16 dim 1 : vector<1x512xf32>, i32 -> vector<1x512xf32>
    %91 = arith.mulf %90, %26 : vector<1x512xf32>
    %92 = vector.broadcast %89 : vector<16x1xf32> to vector<16x512xf32>
    %93 = vector.broadcast %91 : vector<1x512xf32> to vector<16x512xf32>
    %94 = arith.mulf %92, %93 : vector<16x512xf32>
    %95 = arith.addf %88, %94 : vector<16x512xf32>
    %96 = vector.extract_strided_slice %70 {offsets = [0, 3], sizes = [16, 1], strides = [1, 1]} : vector<16x9xf32> to vector<16x1xf32>
    %c1_i32_17 = arith.constant 1 : i32
    %97 = tpu.dynamic_rotate %1 by %c1_i32_17 dim 1 : vector<1x512xf32>, i32 -> vector<1x512xf32>
    %98 = arith.mulf %97, %30 : vector<1x512xf32>
    %99 = vector.broadcast %96 : vector<16x1xf32> to vector<16x512xf32>
    %100 = vector.broadcast %98 : vector<1x512xf32> to vector<16x512xf32>
    %101 = arith.mulf %99, %100 : vector<16x512xf32>
    %102 = arith.addf %95, %101 : vector<16x512xf32>
    %103 = vector.extract_strided_slice %70 {offsets = [0, 5], sizes = [16, 1], strides = [1, 1]} : vector<16x9xf32> to vector<16x1xf32>
    %c511_i32 = arith.constant 511 : i32
    %104 = tpu.dynamic_rotate %1 by %c511_i32 dim 1 : vector<1x512xf32>, i32 -> vector<1x512xf32>
    %105 = arith.mulf %104, %34 : vector<1x512xf32>
    %106 = vector.broadcast %103 : vector<16x1xf32> to vector<16x512xf32>
    %107 = vector.broadcast %105 : vector<1x512xf32> to vector<16x512xf32>
    %108 = arith.mulf %106, %107 : vector<16x512xf32>
    %109 = arith.addf %102, %108 : vector<16x512xf32>
    %110 = vector.extract_strided_slice %70 {offsets = [0, 6], sizes = [16, 1], strides = [1, 1]} : vector<16x9xf32> to vector<16x1xf32>
    %c497_i32 = arith.constant 497 : i32
    %111 = tpu.dynamic_rotate %1 by %c497_i32 dim 1 : vector<1x512xf32>, i32 -> vector<1x512xf32>
    %112 = arith.mulf %111, %41 : vector<1x512xf32>
    %113 = vector.broadcast %110 : vector<16x1xf32> to vector<16x512xf32>
    %114 = vector.broadcast %112 : vector<1x512xf32> to vector<16x512xf32>
    %115 = arith.mulf %113, %114 : vector<16x512xf32>
    %116 = arith.addf %109, %115 : vector<16x512xf32>
    %117 = vector.extract_strided_slice %70 {offsets = [0, 7], sizes = [16, 1], strides = [1, 1]} : vector<16x9xf32> to vector<16x1xf32>
    %c496_i32 = arith.constant 496 : i32
    %118 = tpu.dynamic_rotate %1 by %c496_i32 dim 1 : vector<1x512xf32>, i32 -> vector<1x512xf32>
    %119 = arith.mulf %118, %45 : vector<1x512xf32>
    %120 = vector.broadcast %117 : vector<16x1xf32> to vector<16x512xf32>
    %121 = vector.broadcast %119 : vector<1x512xf32> to vector<16x512xf32>
    %122 = arith.mulf %120, %121 : vector<16x512xf32>
    %123 = arith.addf %116, %122 : vector<16x512xf32>
    %124 = vector.extract_strided_slice %70 {offsets = [0, 8], sizes = [16, 1], strides = [1, 1]} : vector<16x9xf32> to vector<16x1xf32>
    %c495_i32 = arith.constant 495 : i32
    %125 = tpu.dynamic_rotate %1 by %c495_i32 dim 1 : vector<1x512xf32>, i32 -> vector<1x512xf32>
    %126 = arith.mulf %125, %52 : vector<1x512xf32>
    %127 = vector.broadcast %124 : vector<16x1xf32> to vector<16x512xf32>
    %128 = vector.broadcast %126 : vector<1x512xf32> to vector<16x512xf32>
    %129 = arith.mulf %127, %128 : vector<16x512xf32>
    %130 = arith.addf %123, %129 : vector<16x512xf32>
    %c0_18 = arith.constant 0 : index
    %c0_19 = arith.constant 0 : index
    %c0_20 = arith.constant 0 : index
    %131 = vector.load %arg3[%c0_18, %c0_19, %c0_20] : memref<4x16x1xf32, #tpu.memory_space<vmem>>, vector<1x16x1xf32>
    %132 = vector.shape_cast %131 : vector<1x16x1xf32> to vector<16x1xf32>
    %133 = vector.broadcast %132 : vector<16x1xf32> to vector<16x512xf32>
    %134 = arith.addf %130, %133 : vector<16x512xf32>
    %cst = arith.constant 0.000000e+00 : f32
    %135 = vector.broadcast %cst : f32 to vector<16x512xf32>
    %136 = arith.maximumf %134, %135 : vector<16x512xf32>
    %c17_i32_21 = arith.constant 17 : i32
    %137 = tpu.dynamic_rotate %136 by %c17_i32_21 dim 1 : vector<16x512xf32>, i32 -> vector<16x512xf32>
    %138 = arith.mulf %137, %54 : vector<16x512xf32>
    %c16_i32_22 = arith.constant 16 : i32
    %139 = tpu.dynamic_rotate %136 by %c16_i32_22 dim 1 : vector<16x512xf32>, i32 -> vector<16x512xf32>
    %140 = arith.mulf %139, %56 : vector<16x512xf32>
    %c15_i32_23 = arith.constant 15 : i32
    %141 = tpu.dynamic_rotate %136 by %c15_i32_23 dim 1 : vector<16x512xf32>, i32 -> vector<16x512xf32>
    %142 = arith.mulf %141, %58 : vector<16x512xf32>
    %c1_i32_24 = arith.constant 1 : i32
    %143 = tpu.dynamic_rotate %136 by %c1_i32_24 dim 1 : vector<16x512xf32>, i32 -> vector<16x512xf32>
    %144 = arith.mulf %143, %60 : vector<16x512xf32>
    %c511_i32_25 = arith.constant 511 : i32
    %145 = tpu.dynamic_rotate %136 by %c511_i32_25 dim 1 : vector<16x512xf32>, i32 -> vector<16x512xf32>
    %146 = arith.mulf %145, %62 : vector<16x512xf32>
    %c497_i32_26 = arith.constant 497 : i32
    %147 = tpu.dynamic_rotate %136 by %c497_i32_26 dim 1 : vector<16x512xf32>, i32 -> vector<16x512xf32>
    %148 = arith.mulf %147, %64 : vector<16x512xf32>
    %c496_i32_27 = arith.constant 496 : i32
    %149 = tpu.dynamic_rotate %136 by %c496_i32_27 dim 1 : vector<16x512xf32>, i32 -> vector<16x512xf32>
    %150 = arith.mulf %149, %66 : vector<16x512xf32>
    %c495_i32_28 = arith.constant 495 : i32
    %151 = tpu.dynamic_rotate %136 by %c495_i32_28 dim 1 : vector<16x512xf32>, i32 -> vector<16x512xf32>
    %152 = arith.mulf %151, %68 : vector<16x512xf32>
    %153 = tpu.concatenate %138, %140, %142, %144, %136, %146, %148, %150, %152 in 0 : vector<16x512xf32>, vector<16x512xf32>, vector<16x512xf32>, vector<16x512xf32>, vector<16x512xf32>, vector<16x512xf32>, vector<16x512xf32>, vector<16x512xf32>, vector<16x512xf32> -> vector<144x512xf32>
    %c1 = arith.constant 1 : index
    %c0_29 = arith.constant 0 : index
    %c0_30 = arith.constant 0 : index
    %154 = vector.load %arg2[%c1, %c0_29, %c0_30] : memref<4x16x144xf32, #tpu.memory_space<vmem>>, vector<1x16x144xf32>
    %155 = vector.shape_cast %154 : vector<1x16x144xf32> to vector<16x144xf32>
    %cst_31 = arith.constant dense<0.000000e+00> : vector<16x512xf32>
    %156 = tpu.matmul %155, %153, %cst_31 {dimension_numbers = #tpu.dot_dimension_numbers<[1], [0], [0], [1], [0, 0, 1, 1], [], []>} : vector<16x144xf32>, vector<144x512xf32>, vector<16x512xf32> -> vector<16x512xf32>
    %c1_32 = arith.constant 1 : index
    %c0_33 = arith.constant 0 : index
    %c0_34 = arith.constant 0 : index
    %157 = vector.load %arg3[%c1_32, %c0_33, %c0_34] : memref<4x16x1xf32, #tpu.memory_space<vmem>>, vector<1x16x1xf32>
    %158 = vector.shape_cast %157 : vector<1x16x1xf32> to vector<16x1xf32>
    %159 = vector.broadcast %158 : vector<16x1xf32> to vector<16x512xf32>
    %160 = arith.addf %156, %159 : vector<16x512xf32>
    %cst_35 = arith.constant 0.000000e+00 : f32
    %161 = vector.broadcast %cst_35 : f32 to vector<16x512xf32>
    %162 = arith.maximumf %160, %161 : vector<16x512xf32>
    %c17_i32_36 = arith.constant 17 : i32
    %163 = tpu.dynamic_rotate %162 by %c17_i32_36 dim 1 : vector<16x512xf32>, i32 -> vector<16x512xf32>
    %164 = arith.mulf %163, %54 : vector<16x512xf32>
    %c16_i32_37 = arith.constant 16 : i32
    %165 = tpu.dynamic_rotate %162 by %c16_i32_37 dim 1 : vector<16x512xf32>, i32 -> vector<16x512xf32>
    %166 = arith.mulf %165, %56 : vector<16x512xf32>
    %c15_i32_38 = arith.constant 15 : i32
    %167 = tpu.dynamic_rotate %162 by %c15_i32_38 dim 1 : vector<16x512xf32>, i32 -> vector<16x512xf32>
    %168 = arith.mulf %167, %58 : vector<16x512xf32>
    %c1_i32_39 = arith.constant 1 : i32
    %169 = tpu.dynamic_rotate %162 by %c1_i32_39 dim 1 : vector<16x512xf32>, i32 -> vector<16x512xf32>
    %170 = arith.mulf %169, %60 : vector<16x512xf32>
    %c511_i32_40 = arith.constant 511 : i32
    %171 = tpu.dynamic_rotate %162 by %c511_i32_40 dim 1 : vector<16x512xf32>, i32 -> vector<16x512xf32>
    %172 = arith.mulf %171, %62 : vector<16x512xf32>
    %c497_i32_41 = arith.constant 497 : i32
    %173 = tpu.dynamic_rotate %162 by %c497_i32_41 dim 1 : vector<16x512xf32>, i32 -> vector<16x512xf32>
    %174 = arith.mulf %173, %64 : vector<16x512xf32>
    %c496_i32_42 = arith.constant 496 : i32
    %175 = tpu.dynamic_rotate %162 by %c496_i32_42 dim 1 : vector<16x512xf32>, i32 -> vector<16x512xf32>
    %176 = arith.mulf %175, %66 : vector<16x512xf32>
    %c495_i32_43 = arith.constant 495 : i32
    %177 = tpu.dynamic_rotate %162 by %c495_i32_43 dim 1 : vector<16x512xf32>, i32 -> vector<16x512xf32>
    %178 = arith.mulf %177, %68 : vector<16x512xf32>
    %179 = tpu.concatenate %164, %166, %168, %170, %162, %172, %174, %176, %178 in 0 : vector<16x512xf32>, vector<16x512xf32>, vector<16x512xf32>, vector<16x512xf32>, vector<16x512xf32>, vector<16x512xf32>, vector<16x512xf32>, vector<16x512xf32>, vector<16x512xf32> -> vector<144x512xf32>
    %c2 = arith.constant 2 : index
    %c0_44 = arith.constant 0 : index
    %c0_45 = arith.constant 0 : index
    %180 = vector.load %arg2[%c2, %c0_44, %c0_45] : memref<4x16x144xf32, #tpu.memory_space<vmem>>, vector<1x16x144xf32>
    %181 = vector.shape_cast %180 : vector<1x16x144xf32> to vector<16x144xf32>
    %cst_46 = arith.constant dense<0.000000e+00> : vector<16x512xf32>
    %182 = tpu.matmul %181, %179, %cst_46 {dimension_numbers = #tpu.dot_dimension_numbers<[1], [0], [0], [1], [0, 0, 1, 1], [], []>} : vector<16x144xf32>, vector<144x512xf32>, vector<16x512xf32> -> vector<16x512xf32>
    %c2_47 = arith.constant 2 : index
    %c0_48 = arith.constant 0 : index
    %c0_49 = arith.constant 0 : index
    %183 = vector.load %arg3[%c2_47, %c0_48, %c0_49] : memref<4x16x1xf32, #tpu.memory_space<vmem>>, vector<1x16x1xf32>
    %184 = vector.shape_cast %183 : vector<1x16x1xf32> to vector<16x1xf32>
    %185 = vector.broadcast %184 : vector<16x1xf32> to vector<16x512xf32>
    %186 = arith.addf %182, %185 : vector<16x512xf32>
    %cst_50 = arith.constant 0.000000e+00 : f32
    %187 = vector.broadcast %cst_50 : f32 to vector<16x512xf32>
    %188 = arith.maximumf %186, %187 : vector<16x512xf32>
    %c17_i32_51 = arith.constant 17 : i32
    %189 = tpu.dynamic_rotate %188 by %c17_i32_51 dim 1 : vector<16x512xf32>, i32 -> vector<16x512xf32>
    %190 = arith.mulf %189, %54 : vector<16x512xf32>
    %c16_i32_52 = arith.constant 16 : i32
    %191 = tpu.dynamic_rotate %188 by %c16_i32_52 dim 1 : vector<16x512xf32>, i32 -> vector<16x512xf32>
    %192 = arith.mulf %191, %56 : vector<16x512xf32>
    %c15_i32_53 = arith.constant 15 : i32
    %193 = tpu.dynamic_rotate %188 by %c15_i32_53 dim 1 : vector<16x512xf32>, i32 -> vector<16x512xf32>
    %194 = arith.mulf %193, %58 : vector<16x512xf32>
    %c1_i32_54 = arith.constant 1 : i32
    %195 = tpu.dynamic_rotate %188 by %c1_i32_54 dim 1 : vector<16x512xf32>, i32 -> vector<16x512xf32>
    %196 = arith.mulf %195, %60 : vector<16x512xf32>
    %c511_i32_55 = arith.constant 511 : i32
    %197 = tpu.dynamic_rotate %188 by %c511_i32_55 dim 1 : vector<16x512xf32>, i32 -> vector<16x512xf32>
    %198 = arith.mulf %197, %62 : vector<16x512xf32>
    %c497_i32_56 = arith.constant 497 : i32
    %199 = tpu.dynamic_rotate %188 by %c497_i32_56 dim 1 : vector<16x512xf32>, i32 -> vector<16x512xf32>
    %200 = arith.mulf %199, %64 : vector<16x512xf32>
    %c496_i32_57 = arith.constant 496 : i32
    %201 = tpu.dynamic_rotate %188 by %c496_i32_57 dim 1 : vector<16x512xf32>, i32 -> vector<16x512xf32>
    %202 = arith.mulf %201, %66 : vector<16x512xf32>
    %c495_i32_58 = arith.constant 495 : i32
    %203 = tpu.dynamic_rotate %188 by %c495_i32_58 dim 1 : vector<16x512xf32>, i32 -> vector<16x512xf32>
    %204 = arith.mulf %203, %68 : vector<16x512xf32>
    %205 = tpu.concatenate %190, %192, %194, %196, %188, %198, %200, %202, %204 in 0 : vector<16x512xf32>, vector<16x512xf32>, vector<16x512xf32>, vector<16x512xf32>, vector<16x512xf32>, vector<16x512xf32>, vector<16x512xf32>, vector<16x512xf32>, vector<16x512xf32> -> vector<144x512xf32>
    %c3 = arith.constant 3 : index
    %c0_59 = arith.constant 0 : index
    %c0_60 = arith.constant 0 : index
    %206 = vector.load %arg2[%c3, %c0_59, %c0_60] : memref<4x16x144xf32, #tpu.memory_space<vmem>>, vector<1x16x144xf32>
    %207 = vector.shape_cast %206 : vector<1x16x144xf32> to vector<16x144xf32>
    %cst_61 = arith.constant dense<0.000000e+00> : vector<16x512xf32>
    %208 = tpu.matmul %207, %205, %cst_61 {dimension_numbers = #tpu.dot_dimension_numbers<[1], [0], [0], [1], [0, 0, 1, 1], [], []>} : vector<16x144xf32>, vector<144x512xf32>, vector<16x512xf32> -> vector<16x512xf32>
    %209 = vector.extract_strided_slice %208 {offsets = [0, 0], sizes = [1, 512], strides = [1, 1]} : vector<16x512xf32> to vector<1x512xf32>
    %c3_62 = arith.constant 3 : index
    %c0_63 = arith.constant 0 : index
    %c0_64 = arith.constant 0 : index
    %210 = vector.load %arg3[%c3_62, %c0_63, %c0_64] : memref<4x16x1xf32, #tpu.memory_space<vmem>>, vector<1x1x1xf32>
    %211 = vector.shape_cast %210 : vector<1x1x1xf32> to vector<1x1xf32>
    %212 = vector.broadcast %211 : vector<1x1xf32> to vector<1x512xf32>
    %213 = arith.addf %209, %212 : vector<1x512xf32>
    %214 = arith.subf %1, %213 : vector<1x512xf32>
    %c0_65 = arith.constant 0 : index
    %c0_66 = arith.constant 0 : index
    %c0_67 = arith.constant 0 : index
    %215 = vector.load %arg4[%c0_65, %c0_66, %c0_67] : memref<1x1x512xf32, #tpu.memory_space<vmem>>, vector<1x1x512xf32>
    %216 = vector.shape_cast %215 : vector<1x1x512xf32> to vector<1x512xf32>
    %217 = vector.shape_cast %214 : vector<1x512xf32> to vector<1x1x512xf32>
    tpu.vector_store %arg4[%c0_65, %c0_66, %c0_67], %217 {strides = array<i32>} : memref<1x1x512xf32, #tpu.memory_space<vmem>>, vector<1x1x512xf32>,
    return
  }
  func.func @transform_0(%arg0: i32) -> (i32, i32, i32) {
    %c0_i32 = arith.constant 0 : i32
    %c0_i32_0 = arith.constant 0 : i32
    %c0_i32_1 = arith.constant 0 : i32
    return %arg0, %c0_i32, %c0_i32_0 : i32, i32, i32
  }
  func.func @transform_1(%arg0: i32) -> (i32, i32, i32) {
    %c0_i32 = arith.constant 0 : i32
    %c0_i32_0 = arith.constant 0 : i32
    %c0_i32_1 = arith.constant 0 : i32
    %c0_i32_2 = arith.constant 0 : i32
    return %c0_i32, %c0_i32_0, %c0_i32_1 : i32, i32, i32
  }
  func.func @transform_2(%arg0: i32) -> (i32, i32, i32) {
    %c0_i32 = arith.constant 0 : i32
    %c0_i32_0 = arith.constant 0 : i32
    %c0_i32_1 = arith.constant 0 : i32
    %c0_i32_2 = arith.constant 0 : i32
    return %c0_i32, %c0_i32_0, %c0_i32_1 : i32, i32, i32
  }
  func.func @transform_3(%arg0: i32) -> (i32, i32, i32) {
    %c0_i32 = arith.constant 0 : i32
    %c0_i32_0 = arith.constant 0 : i32
    %c0_i32_1 = arith.constant 0 : i32
    return %arg0, %c0_i32, %c0_i32_0 : i32, i32, i32
  }
}

</mosaic_0001>

<bundles_post_ra>
// kernel: tpu_custom_call.1
= control target key start
LH: loop header
LB: loop body
LE: loop exit
PB: predicated region body
PF: predicated region fallthrough
CT: control target
= control target key end

     0   :  { %8 = vsyncpa [#allocation3], 0  ;;  %s4554_s0 = inlined_call_operand.vmem [shape: f32[1,1,512], index: 0, kind: input, shape index: {}]   ;;  %s4555_s1 = inlined_call_operand.hbm [shape: f32[4,16,144], index: 1, kind: input, shape index: {}]   ;;  %s4556_s2 = inlined_call_operand.vmem [shape: f32[4,16,1], index: 2, kind: input, shape index: {}]   ;;  %s4557_s3 = inlined_call_operand.hbm [shape: f32[1,1,512], index: 3, kind: output, shape index: {}]  }
   0x1   :  { %9 = vsyncpa [#allocation4], 0  ;;  %s2385_s12 = smov [#allocation2]   ;;  %s2337_s16 = scalar_lea.hbm %s4555_s1, 2048 }
   0x2   :  { %s17_s13 = sshll.u32 %s2385_s12, 4  ;;  %p2338_p0 = scmp.ne.s32.totalorder %s4555_s1, %s2337_s16  ;;  %s18_s13 = int_to_ptr.vmem [resolvable:$true] %s17_s13 }
   0x3   :  { %p2341_p1 = scmp.lt.u32.totalorder %s2337_s16, %s4555_s1 }
   0x5   :  { %p2343_p2 = pnand %p2341_p1, %p2338_p0 }
   0x7   :  { %2346 = shalt.err (!%p2343_p2)
}
   0x8   :  { %s2347_s21 = scalar_lea.vmem %s18_s13, 2048  ;;  %p2352_p4 = scmp.lt.s32.totalorder %s18_s13, %s18_s13 }
   0x9   :  { %p2348_p3 = scmp.ne.s32.totalorder %s18_s13, %s2347_s21  ;;  %p2353_p5 = scmp.lt.s32.totalorder %s2347_s21, %s2347_s21 }
   0xb   :  { %p2354_p6 = por %p2353_p5, %p2352_p4 }
   0xd   :  { %p2355_p7 = pnand %p2354_p6, %p2348_p3 }
   0xf   :  { %2358 = shalt.err (!%p2355_p7)
}
  0x10   :  { %s2386_s22 = smov 256   ;;  %s2387_s23 = smov 16  }
  0x11   :  { %23 = dma.hbm_to_vmem [thread:$0]  %s4555_s1, 2048, %s18_s13, [#allocation3], %s2386_s22, %s2386_s22, %s2387_s23  }
  0x12   :  { %2381 = dma.done.wait [#allocation3], 2048  }
  0x13   :  { %2382 = vsyncadd [#allocation3], 4294965248  ;;  %v4568_v0 = vlaneseq  ;;  %v2388_v1 = vmov 0   ;;  %v2389_v2 = vmov 4   ;;  %v2444_v4 = vld [vmem:[#allocation2] sm:$0xff]  ;;  %v2452_v7 = vld [vmem:[#allocation2 + $0x10] sm:$0xff] }
  0x14   :  { %2319 = vset.pattern.permute.xlu1 %v2388_v1  ;;  %2318 = vset.pattern.permute.xlu0 %v2389_v2  ;;  %v29_v8 = vld [vmem:[%s4554_s0] sm:$0xf]  ;;  %s2390_s27 = smov 17   ;;  %v2391_v15 = vmov 1   ;;  %v2392_v16 = vmov 2   ;;  %s2393_s28 = smov 15  }
  0x15   :  { %v2442_v3 = vshrl.u32 %v4568_v0, 7  ;;  %202 = vperm.xlu1 %2319, %v2444_v4   ;;  %147 = vperm.xlu0 %2318, %v2444_v4   ;;  %v2394_v17 = vmov 3   ;;  %s2395_s29 = smov 1   ;;  %v2396_v18 = vmov 5   ;;  %s2397_s30 = smov 127   ;;  %v2398_v19 = vmov 6  }
  0x16   :  { %s2399_s4 = smov 113   ;;  %v2400_v20 = vmov 7   ;;  %s2401_s5 = smov 112   ;;  %v2402_v21 = vmov 8   ;;  %v641_v22 = vld [vmem:[%s4556_s2 + $0x8] sm:$0xff]  ;;  %v640_v23 = vld [vmem:[%s4556_s2] sm:$0xff] }
  0x17   :  { %4656 = vst [vmem:[#allocation8_spill] sm:$0xff] %v2442_v3  ;;  %v2449_v5 = vsub.s32 0, %v2442_v3  ;;  %v162_v6 = vsub.s32 1, %v2442_v3  ;;  %v170_v11 = vsub.s32 3, %v2442_v3  ;;  %v166_v12 = vsub.s32 2, %v2442_v3  ;;  %s2403_s6 = smov 111  }
  0x18   :  { %v2585_v38 = vand.u32 127, %v4568_v0  ;;  %v4658_v61 = vmov 0  ;;  %v4663_v2 = vmov 0 }
  0x19   :  { %206 = vperm.xlu1 %2319, %v2452_v7   ;;  %152 = vperm.xlu0 %2318, %v2452_v7   ;;  %v2459_v9 = vrot.slane %v29_v8, %v162_v6  ;;  %v2462_v10 = vrot.slane %v29_v8, %v2449_v5  ;;  %v2470_v13 = vrot.slane %v29_v8, %v170_v11 }
  0x1a   :  { %v2472_v14 = vrot.slane %v29_v8, %v166_v12  ;;  %v32_v41 = vadd.s32 128, %v2585_v38  ;;  %v33_v44 = vadd.s32 256, %v2585_v38  ;;  %v34_v45 = vadd.s32 384, %v2585_v38 }
  0x1b   :  { %v35_v47 = vshra.s32 %v2585_v38, 4  ;;  %v43_v55 = vand.u32 15, %v2585_v38  ;;  %v4671_v8 = vmov 0 }
  0x1c   :  { %v36_v46 = vshra.s32 %v32_v41, 4  ;;  %v37_v49 = vshra.s32 %v33_v44, 4  ;;  %v38_v51 = vshra.s32 %v34_v45, 4  ;;  %v44_v53 = vand.u32 15, %v32_v41 }
  0x1d   :  { %186 = vrot.lane.b32.xlu1 %v2459_v9, %s2390_s27  ;;  %184 = vrot.lane.b32.xlu0 %v2462_v10, %s2390_s27  ;;  %v2605_v54 = vand.u32 15, %v35_v47  ;;  %v45_v58 = vand.u32 15, %v33_v44  ;;  %v46_v60 = vand.u32 15, %v34_v45  ;;  %vm2622_vm3 = vcmp.ge.s32.totalorder %v43_v55, 1 }
  0x1e   :  { %2321 = vset.pattern.permute.xlu1 %v2391_v15  ;;  %2320 = vset.pattern.permute.xlu0 %v2391_v15  ;;  %v2603_v52 = vand.u32 15, %v36_v46  ;;  %v2610_v57 = vand.u32 15, %v37_v49  ;;  %v2612_v59 = vand.u32 15, %v38_v51  ;;  %vm2615_vm1 = vcmp.ge.s32.totalorder %v44_v53, 1 }
  0x1f   :  { %v4659_v61 = vsel %vm2615_vm1, 4294967295, %v4658_v61  ;;  %vm4558_vm2 = vcmp.ge.s32.totalorder %v2605_v54, 1  ;;  %vm2629_vm5 = vcmp.ge.s32.totalorder %v45_v58, 1  ;;  %vm2642_vm8 = vcmp.ge.s32.totalorder %v46_v60, 1 }
  0x20   :  { %vm4564_vm0 = vcmp.ge.s32.totalorder %v2603_v52, 1  ;;  %vm49_vm4 = vcmp.ge.s32.totalorder %v2610_v57, 1  ;;  %v4664_v2 = vsel %vm2629_vm5, 4294967295, %v4663_v2  ;;  %vm4559_vm7 = vcmp.ge.s32.totalorder %v2612_v59, 1  ;;  %vm2650_vm9 = vmand %vm4558_vm2, %vm2622_vm3 }
  0x21   :  { %190 = vrot.lane.b32.xlu1 %v2470_v13, %s2390_s27  ;;  %188 = vrot.lane.b32.xlu0 %v2472_v14, %s2390_s27  ;;  %vm2637_vm6 = vmand %vm4564_vm0, %vm2615_vm1  ;;  %vm2654_vm10 = vcmp.le.s32.totalorder %v44_v53, 14  ;;  %vm2666_vm12 = vcmp.le.s32.totalorder %v45_v58, 14  ;;  %vm2680_vm14 = vcmp.le.s32.totalorder %v43_v55, 14  ;;  %vm2694_vm2 = vcmp.le.s32.totalorder %v46_v60, 14 }
  0x22   :  { %v4672_v8 = vsel %vm2654_vm10, 4294967295, %v4671_v8  ;;  %vm2662_vm11 = vmand %vm49_vm4, %vm2629_vm5  ;;  %vm4567_vm5 = vcmp.le.s32.totalorder %v2605_v54, 14  ;;  %vm192_vm1 = vcmp.lt.s32.totalorder %v2585_v38, 17  ;;  %v2404_v41 = vmov 0.0  }
  0x23   :  { %vm2676_vm13 = vmand %vm4559_vm7, %vm2642_vm8  ;;  %v2722_v44 = vsel %vm2637_vm6, 1.0, %v2404_v41  ;;  %v2727_v45 = vsel %vm2650_vm9, 1.0, %v2404_v41  ;;  %v2732_v46 = vsel %vm2662_vm11, 1.0, %v2404_v41  ;;  %vm4698_vm9 = vcmp.ge.s32.totalorder %v2603_v52, 1 }
  0x24   :  { %vm2690_vm15 = vmand %vm4564_vm0, %vm2654_vm10  ;;  %vm4687_vm0 = vcmp.ge.s32.totalorder %v2605_v54, 1  ;;  %4690 = vst [vmem:[#allocation11_spill] sm:$0xff] %v2722_v44  ;;  %v2748_v51 = vsel %vm2676_vm13, 1.0, %v2404_v41  ;;  %v2753_v53 = vsel %vm4698_vm9, 1.0, %v2404_v41  ;;  %vm109_vm6 = vcmp.le.s32.totalorder %v2610_v57, 14 }
  0x25   :  { %263 = vperm.xlu1 %2321, %v2452_v7   ;;  %259 = vperm.xlu0 %2320, %v2444_v4   ;;  %vm2702_vm7 = vmand %vm49_vm4, %vm2666_vm12  ;;  %4691 = vst [vmem:[#allocation12_spill] sm:$0xff] %v2727_v45  ;;  %v2772_v60 = vsel %vm49_vm4, 1.0, %v2404_v41  ;;  %vm4703_vm13 = vcmp.ge.s32.totalorder %v2605_v54, 1  ;;  %vm4705_vm9 = vcmp.ge.s32.totalorder %v2612_v59, 1  ;;  %vm4706_vm11 = vcmp.le.s32.totalorder %v2612_v59, 14 }
  0x26   :  { %vm2712_vm10 = vmand %vm4687_vm0, %vm2680_vm14  ;;  %4692 = vst [vmem:[#allocation13_spill] sm:$0xff] %v2732_v46  ;;  %vm4693_vm0 = vcmp.ge.s32.totalorder %v2612_v59, 1  ;;  %v2800_v0 = vsel %vm2702_vm7, 1.0, %v2404_v41  ;;  %vm306_vm7 = vcmp.lt.s32.totalorder %v2585_v38, 15  ;;  %v2835_v47 = vsel %vm2622_vm3, 1.0, %v2404_v41 }
  0x27   :  { %4697 = vst [vmem:[#allocation15_spill] sm:$0xff] %v2748_v51  ;;  %4699 = vst [vmem:[#allocation16_spill] sm:$0xff] %v2753_v53  ;;  %v2805_v3 = vsel %vm2712_vm10, 1.0, %v2404_v41  ;;  %vm4715_vm10 = vnez %v4664_v2  ;;  %v2863_v2 = vsel %vm2680_vm14, 1.0, %v2404_v41  ;;  %v2883_v6 = vsel %vm2666_vm12, 1.0, %v2404_v41 }
  0x28   :  { %4702 = vst [vmem:[#allocation17_spill] sm:$0xff] %v2772_v60  ;;  %4718 = vst [vmem:[#allocation20_spill] sm:$0xff] %v2863_v2 }
  0x29   :  { %241 = vrot.lane.b32.xlu1 %v2462_v10, %s2387_s23  ;;  %243 = vrot.lane.b32.xlu0 %v2459_v9, %s2387_s23  ;;  %4725 = vst [vmem:[#allocation23_spill] sm:$0xff] %v2883_v6 }
  0x2a   :  { %2322 = vset.pattern.permute.xlu1 %v2392_v16  ;;  %2323 = vset.pattern.permute.xlu0 %v2392_v16 }
  0x2d   :  { %245 = vrot.lane.b32.xlu1 %v2472_v14, %s2387_s23  ;;  %247 = vrot.lane.b32.xlu0 %v2470_v13, %s2387_s23 }
  0x31   :  { %316 = vperm.xlu1 %2322, %v2444_v4   ;;  %320 = vperm.xlu0 %2323, %v2452_v7  }
  0x35   :  { %298 = vrot.lane.b32.xlu1 %v2462_v10, %s2393_s28  ;;  %302 = vrot.lane.b32.xlu0 %v2472_v14, %s2393_s28 }
  0x36   :  { %2324 = vset.pattern.permute.xlu0 %v2394_v17  ;;  %2325 = vset.pattern.permute.xlu1 %v2394_v17  ;;  %v2888_v17 = vsel %vm2694_vm2, 1.0, %v2404_v41 }
  0x37   :  { %4726 = vst [vmem:[#allocation24_spill] sm:$0xff] %v2888_v17 }
  0x39   :  { %300 = vrot.lane.b32.xlu1 %v2459_v9, %s2393_s28  ;;  %373 = vperm.xlu0 %2324, %v2444_v4  }
  0x3d   :  { %304 = vrot.lane.b32.xlu1 %v2470_v13, %s2393_s28  ;;  %357 = vrot.lane.b32.xlu0 %v2459_v9, %s2395_s29 }
  0x3e   :  { %2327 = vset.pattern.permute.xlu0 %v2396_v18 }
  0x41   :  { %377 = vperm.xlu1 %2325, %v2452_v7   ;;  %361 = vrot.lane.b32.xlu0 %v2470_v13, %s2395_s29 }
  0x45   :  { %355 = vrot.lane.b32.xlu1 %v2462_v10, %s2395_s29  ;;  %434 = vperm.xlu0 %2327, %v2452_v7  }
  0x46   :  { %2326 = vset.pattern.permute.xlu1 %v2396_v18 }
  0x49   :  { %359 = vrot.lane.b32.xlu1 %v2472_v14, %s2395_s29  ;;  %416 = vrot.lane.b32.xlu0 %v2472_v14, %s2397_s30 }
  0x4a   :  { %2328 = vset.pattern.permute.xlu0 %v2398_v19 }
  0x4d   :  { %430 = vperm.xlu1 %2326, %v2444_v4   ;;  %487 = vperm.xlu0 %2328, %v2444_v4  }
  0x51   :  { %412 = vrot.lane.b32.xlu1 %v2462_v10, %s2397_s30  ;;  %471 = vrot.lane.b32.xlu0 %v2459_v9, %s2399_s4 }
  0x52   :  { %2329 = vset.pattern.permute.xlu1 %v2398_v19  ;;  %2331 = vset.pattern.permute.xlu0 %v2400_v20  ;;  %v4681_v19 = vmov 0 }
  0x53   :  { %v4682_v19 = vsel %vm2690_vm15, 4294967295, %v4681_v19  ;;  %vm2738_vm15 = vmand %vm4693_vm0, %vm2694_vm2 }
  0x54   :  { %vm2760_vm0 = vmand %vm4567_vm5, %vm2622_vm3  ;;  %vm4709_vm4 = vnez %v4682_v19  ;;  %vm4719_vm3 = vcmp.le.s32.totalorder %v2605_v54, 14  ;;  %v2952_v54 = vsel %vm109_vm6, 1.0, %v2404_v41 }
  0x55   :  { %414 = vrot.lane.b32.xlu1 %v2459_v9, %s2397_s30  ;;  %475 = vrot.lane.b32.xlu0 %v2470_v13, %s2399_s4  ;;  %vm2788_vm5 = vmand %vm4706_vm11, %vm2642_vm8  ;;  %v2795_v16 = vsel %vm4709_vm4, 1.0, %v2404_v41  ;;  %vm4711_vm11 = vnez %v4659_v61  ;;  %v2893_v2 = vsel %vm2760_vm0, 1.0, %v2404_v41  ;;  %4740 = vst [vmem:[#allocation31_spill] sm:$0xff] %v2952_v54 }
  0x56   :  { %vm2869_vm4 = vmand %vm4719_vm3, %vm2680_vm14  ;;  %4727 = vst [vmem:[#allocation25_spill] sm:$0xff] %v2893_v2  ;;  %v2913_v55 = vsel %vm2788_vm5, 1.0, %v2404_v41 }
  0x57   :  { %4731 = vst [vmem:[#allocation26_spill] sm:$0xff] %v2913_v55  ;;  %vm4735_vm5 = vmmov %vm4719_vm3 }
  0x59   :  { %418 = vrot.lane.b32.xlu1 %v2470_v13, %s2397_s30  ;;  %548 = vperm.xlu0 %2331, %v2452_v7  }
  0x5d   :  { %491 = vperm.xlu1 %2329, %v2452_v7   ;;  %530 = vrot.lane.b32.xlu0 %v2472_v14, %s2401_s5 }
  0x5e   :  { %2332 = vset.pattern.permute.xlu0 %v2402_v21 }
  0x61   :  { %469 = vrot.lane.b32.xlu1 %v2462_v10, %s2399_s4  ;;  %601 = vperm.xlu0 %2332, %v2444_v4  }
  0x62   :  { %2330 = vset.pattern.permute.xlu1 %v2400_v20 }
  0x65   :  { %473 = vrot.lane.b32.xlu1 %v2472_v14, %s2399_s4  ;;  %585 = vrot.lane.b32.xlu0 %v2459_v9, %s2403_s6 }
  0x66   :  { %2335 = vset.pattern.permute.xlu0 %v2388_v1 }
  0x69   :  { %544 = vperm.xlu1 %2330, %v2444_v4   ;;  %589 = vrot.lane.b32.xlu0 %v2470_v13, %s2403_s6  ;;  %v2777_v4 = vsel %vm4703_vm13, 1.0, %v2404_v41  ;;  %vm4712_vm13 = vcmp.le.s32.totalorder %v2603_v52, 14 }
  0x6a   :  { %4704 = vst [vmem:[#allocation18_spill] sm:$0xff] %v2777_v4 }
  0x6d   :  { %526 = vrot.lane.b32.xlu1 %v2462_v10, %s2401_s5  ;;  %649 = vperm.xlu0 %2335, %v641_v22   ;;  %v2830_v22 = vsel %vm4711_vm11, 1.0, %v2404_v41 }
  0x6e   :  { %2333 = vset.pattern.permute.xlu1 %v2402_v21 }
  0x71   :  { %528 = vrot.lane.b32.xlu1 %v2459_v9, %s2401_s5 }
  0x75   :  { %532 = vrot.lane.b32.xlu1 %v2470_v13, %s2401_s5 }
  0x79   :  { %605 = vperm.xlu1 %2333, %v2452_v7   ;;  %v2782_v7 = vsel %vm4705_vm9, 1.0, %v2404_v41  ;;  %vm2818_vm9 = vmand %vm4712_vm13, %vm4711_vm11  ;;  %vm4723_vm11 = vnez %v4672_v8 }
  0x7a   :  { %v2918_v20 = vsel %vm2818_vm9, 1.0, %v2404_v41  ;;  %vm133_vm9 = vmand %vm109_vm6, %vm2666_vm12 }
  0x7b   :  { %4732 = vst [vmem:[#allocation27_spill] sm:$0xff] %v2918_v20 }
  0x7d   :  { %583 = vrot.lane.b32.xlu1 %v2462_v10, %s2403_s6 }
  0x7e   :  { %2334 = vset.pattern.permute.xlu1 %v2388_v1 }
  0x81   :  { %587 = vrot.lane.b32.xlu1 %v2472_v14, %s2403_s6 }
  0x85   :  { %644 = vperm.xlu1 %2334, %v640_v23  }
  0x94   :  { %v2556_v24 = vpop.permute.xlu1 %202  ;;  %v2558_v25 = vpop.permute.xlu0 %147 }
  0x98   :  { %v2560_v26 = vpop.permute.xlu1 %206  ;;  %v2562_v27 = vpop.permute.xlu0 %152 }
  0x9c   :  { %v2564_v28 = vpop.permute.xlu1 %186  ;;  %v2566_v29 = vpop.permute.xlu0 %184 }
  0x9d   :  { %v195_v58 = vsel %vm192_vm1, %v2566_v29, %v2564_v28 }
  0x9e   :  { %v198_v61 = vmul.f32 %v2722_v44, %v195_v58 }
  0xa0   :  { %v2568_v30 = vpop.permute.xlu1 %190  ;;  %v2570_v31 = vpop.permute.xlu0 %188  ;;  %v216_v8 = vrot.slane %v198_v61, %v2449_v5 }
  0xa1   :  { %v196_v21 = vsel %vm192_vm1, %v2568_v30, %v2566_v29  ;;  %v194_v63 = vsel %vm192_vm1, %v2564_v28, %v2570_v31  ;;  %v2878_v28 = vsel %vm4723_vm11, 1.0, %v2404_v41  ;;  %v193_v17 = vsel %vm192_vm1, %v2570_v31, %v2568_v30 }
  0xa2   :  { %4724 = vst [vmem:[#allocation22_spill] sm:$0xff] %v2878_v28  ;;  %v197_v6 = vmul.f32 %v2727_v45, %v196_v21  ;;  %v199_v21 = vmul.f32 %v2732_v46, %v194_v63  ;;  %v2933_v31 = vsel %vm4735_vm5, 1.0, %v2404_v41  ;;  %v200_v12 = vmul.f32 %v2748_v51, %v193_v17 }
  0xa3   :  { %4736 = vst [vmem:[#allocation29_spill] sm:$0xff] %v2933_v31  ;;  %v2963_v29 = vsel %vm2869_vm4, 1.0, %v2404_v41  ;;  %v2983_v51 = vsel %vm133_vm9, 1.0, %v2404_v41  ;;  %v177_v28 = vmul.f32 %v2459_v9, %v2558_v25  ;;  %v178_v45 = vmul.f32 %v2472_v14, %v2558_v25 }
  0xa4   :  { %v2572_v32 = vpop.permute.xlu1 %263  ;;  %v2574_v33 = vpop.permute.xlu0 %259  ;;  %4743 = vst [vmem:[#allocation33_spill] sm:$0xff] %v2963_v29  ;;  %v212_v63 = vrot.slane %v197_v6, %v2449_v5  ;;  %4747 = vst [vmem:[#allocation36_spill] sm:$0xff] %v2983_v51  ;;  %v220_v46 = vrot.slane %v199_v21, %v2449_v5  ;;  %v226_v51 = vmul.f32 %v216_v8, %v2556_v24 }
  0xa5   :  { %v181_v21 = vmul.f32 %v2459_v9, %v2562_v27 }
  0xa6   :  { %v225_v29 = vmul.f32 %v212_v63, %v2556_v24 }
  0xa8   :  { %v2576_v34 = vpop.permute.xlu1 %241  ;;  %v2578_v35 = vpop.permute.xlu0 %243 }
  0xac   :  { %v2580_v36 = vpop.permute.xlu1 %245  ;;  %v2582_v37 = vpop.permute.xlu0 %247 }
  0xb0   :  { %v2587_v39 = vpop.permute.xlu1 %316  ;;  %v2589_v40 = vpop.permute.xlu0 %320 }
  0xb4   :  { %v2592_v42 = vpop.permute.xlu1 %298  ;;  %v2594_v43 = vpop.permute.xlu0 %302 }
  0xb8   :  { %v2599_v48 = vpop.permute.xlu1 %300  ;;  %v2601_v50 = vpop.permute.xlu0 %373 }
  0xb9   :  { %4657 = vst [vmem:[#allocation9_spill] sm:$0xff] %v2601_v50  ;;  %v2858_v50 = vsel %vm2642_vm8, 1.0, %v2404_v41  ;;  %vm4728_vm8 = vcmp.le.s32.totalorder %v2612_v59, 14  ;;  %v176_v59 = vmul.f32 %v2462_v10, %v2558_v25  ;;  %v309_v9 = vsel %vm306_vm7, %v2592_v42, %v2599_v48 }
  0xba   :  { %vm2899_vm14 = vmand %vm4728_vm8, %vm2694_vm2 }
  0xbb   :  { %vm4733_vm2 = vmmov %vm4712_vm13  ;;  %v2968_v61 = vsel %vm2899_vm14, 1.0, %v2404_v41  ;;  %vm534_vm14 = vcmp.lt.s32.totalorder %v2585_v38, 112 }
  0xbc   :  { %v2608_v56 = vpop.permute.xlu1 %304  ;;  %v2619_v62 = vpop.permute.xlu0 %357  ;;  %vm132_vm0 = vmand %vm4733_vm2, %vm4723_vm11  ;;  %4744 = vst [vmem:[#allocation34_spill] sm:$0xff] %v2968_v61  ;;  %vm420_vm11 = vcmp.lt.s32.totalorder %v2585_v38, 127 }
  0xbd   :  { %vm4737_vm13 = vmmov %vm4733_vm2  ;;  %v2971_v57 = vsel %vm132_vm0, 1.0, %v2404_v41  ;;  %vm591_vm2 = vcmp.lt.s32.totalorder %v2585_v38, 111  ;;  %vm942_vm0 = vcmask 130048  }
  0xbe   :  { %v2938_v11 = vsel %vm4737_vm13, 1.0, %v2404_v41  ;;  %4745 = vst [vmem:[#allocation35_spill] sm:$0xff] %v2971_v57 }
  0xbf   :  { %4738 = vst [vmem:[#allocation30_spill] sm:$0xff] %v2938_v11 }
  0xc0   :  { %v2626_v1 = vpop.permute.xlu1 %377  ;;  %v2684_v18 = vpop.permute.xlu0 %361 }
  0xc1   :  { %4662 = vst [vmem:[#allocation10_spill] sm:$0xff] %v2626_v1 }
  0xc4   :  { %v2670_v15 = vpop.permute.xlu1 %355  ;;  %v2742_v49 = vpop.permute.xlu0 %434 }
  0xc5   :  { %4696 = vst [vmem:[#allocation14_spill] sm:$0xff] %v2742_v49  ;;  %v2810_v49 = vsel %vm2738_vm15, 1.0, %v2404_v41  ;;  %vm2846_vm15 = vmand %vm109_vm6, %vm4715_vm10  ;;  %vm363_vm6 = vcmp.lt.s32.totalorder %v2585_v38, 1 }
  0xc6   :  { %v2928_v30 = vsel %vm2846_vm15, 1.0, %v2404_v41  ;;  %vm4741_vm15 = vmmov %vm4728_vm8  ;;  %vm477_vm8 = vcmp.lt.s32.totalorder %v2585_v38, 113 }
  0xc7   :  { %4734 = vst [vmem:[#allocation28_spill] sm:$0xff] %v2928_v30  ;;  %v2957_v52 = vsel %vm4741_vm15, 1.0, %v2404_v41 }
  0xc8   :  { %v2716_v23 = vpop.permute.xlu1 %359  ;;  %v2873_v44 = vpop.permute.xlu0 %416  ;;  %4742 = vst [vmem:[#allocation32_spill] sm:$0xff] %v2957_v52  ;;  %v229_v52 = vmul.f32 %v212_v63, %v2560_v26  ;;  %v234_v63 = vadd.f32 %v226_v51, %v177_v28 }
  0xc9   :  { %4722 = vst [vmem:[#allocation21_spill] sm:$0xff] %v2873_v44 }
  0xcc   :  { %v2812_v1 = vpop.permute.xlu1 %430  ;;  %v2992_v57 = vpop.permute.xlu0 %487 }
  0xcd   :  { %4710 = vst [vmem:[#allocation19_spill] sm:$0xff] %v2812_v1  ;;  %v2840_v1 = vsel %vm4715_vm10, 1.0, %v2404_v41  ;;  %vm4739_vm10 = vcmp.lt.s32.totalorder %v2585_v38, 16  ;;  %4748 = vst [vmem:[#allocation37_spill] sm:$0xff] %v2992_v57  ;;  %v180_v41 = vmul.f32 %v2462_v10, %v2562_v27  ;;  %v230_v10 = vmul.f32 %v216_v8, %v2560_v26  ;;  %v1812_v38 = vld [vmem:[#allocation2 + $0x70] sm:$0xff] }
  0xce   :  { %v252_v19 = vsel %vm4739_vm10, %v2576_v34, %v2578_v35  ;;  %vm4746_vm12 = vmmov %vm4739_vm10  ;;  %v183_v8 = vmul.f32 %v2470_v13, %v2562_v27 }
  0xcf   :  { %v251_v58 = vsel %vm4746_vm12, %v2578_v35, %v2580_v36  ;;  %v255_v6 = vmul.f32 %v2753_v53, %v252_v19  ;;  %v179_v35 = vmul.f32 %v2470_v13, %v2558_v25  ;;  %vm4749_vm3 = vmmov %vm4739_vm10  ;;  %v224_v19 = vrot.slane %v200_v12, %v2449_v5 }
  0xd0   :  { %v2908_v44 = vpop.permute.xlu1 %412  ;;  %v253_v61 = vsel %vm4749_vm3, %v2582_v37, %v2576_v34  ;;  %v256_v53 = vmul.f32 %v2772_v60, %v251_v58  ;;  %vm4750_vm4 = vmmov %vm4749_vm3  ;;  %v182_v12 = vmul.f32 %v2472_v14, %v2562_v27  ;;  %v227_v58 = vmul.f32 %v220_v46, %v2556_v24 }
  0xd1   :  { %v250_v25 = vsel %vm4750_vm4, %v2580_v36, %v2582_v37  ;;  %v273_v36 = vrot.slane %v255_v6, %v2449_v5  ;;  %v254_v37 = vmul.f32 %v2777_v4, %v253_v61  ;;  %v231_v60 = vmul.f32 %v220_v46, %v2560_v26  ;;  %v3036_v61 = vpop.permute.xlu0 %471  ;;  %vm4772_vm5 = vmmov %vm4749_vm3 }
  0xd2   :  { %v257_v54 = vmul.f32 %v2782_v7, %v250_v25  ;;  %v228_v57 = vmul.f32 %v224_v19, %v2556_v24  ;;  %v277_v11 = vrot.slane %v256_v53, %v2449_v5  ;;  %v312_v14 = vmul.f32 %v2795_v16, %v309_v9  ;;  %vm4773_vm13 = vmmov %vm4749_vm3 }
  0xd3   :  { %v308_v6 = vsel %vm306_vm7, %v2599_v48, %v2594_v43  ;;  %v238_v4 = vadd.f32 %v230_v10, %v181_v21  ;;  %v233_v13 = vadd.f32 %v225_v29, %v176_v59  ;;  %v237_v27 = vadd.f32 %v229_v52, %v180_v41  ;;  %vm4775_vm9 = vmmov %vm4749_vm3 }
  0xd4   :  { %v2980_v17 = vpop.permute.xlu1 %414  ;;  %v232_v46 = vmul.f32 %v224_v19, %v2560_v26  ;;  %v235_v24 = vadd.f32 %v227_v58, %v178_v45  ;;  %v283_v53 = vmul.f32 %v273_v36, %v2574_v33  ;;  %v269_v28 = vrot.slane %v254_v37, %v2449_v5  ;;  %vm4776_vm10 = vmmov %vm4749_vm3 }
  0xd5   :  { %v310_v48 = vsel %vm306_vm7, %v2608_v56, %v2592_v42  ;;  %v287_v21 = vmul.f32 %v273_v36, %v2572_v32  ;;  %v281_v52 = vrot.slane %v257_v54, %v2449_v5  ;;  %v313_v26 = vmul.f32 %v2800_v0, %v308_v6  ;;  %vm4777_vm15 = vmmov %vm4749_vm3 }
  0xd6   :  { %v307_v45 = vsel %vm306_vm7, %v2594_v43, %v2608_v56  ;;  %v236_v29 = vadd.f32 %v228_v57, %v179_v35  ;;  %v239_v59 = vadd.f32 %v231_v60, %v182_v12  ;;  %v284_v41 = vmul.f32 %v277_v11, %v2574_v33  ;;  %v3072_v57 = vpop.permute.xlu0 %475  ;;  %vm4778_vm12 = vmmov %vm4749_vm3 }
  0xd7   :  { %v330_v19 = vrot.slane %v312_v14, %v2449_v5  ;;  %v240_v25 = vadd.f32 %v232_v46, %v183_v8  ;;  %v288_v42 = vmul.f32 %v277_v11, %v2572_v32  ;;  %v311_v10 = vmul.f32 %v2805_v3, %v310_v48  ;;  %vm4780_vm4 = vmmov %vm4749_vm3 }
  0xd8   :  { %v3018_v34 = vpop.permute.xlu1 %418  ;;  %v366_v54 = vsel %vm363_vm6, %v2670_v15, %v2619_v62  ;;  %v282_v43 = vmul.f32 %v269_v28, %v2574_v33  ;;  %v286_v56 = vmul.f32 %v269_v28, %v2572_v32  ;;  %v314_v60 = vmul.f32 %v2810_v49, %v307_v45 }
  0xd9   :  { %v367_v11 = vsel %vm363_vm6, %v2684_v18, %v2670_v15  ;;  %v291_v35 = vadd.f32 %v283_v53, %v234_v63  ;;  %v295_v12 = vadd.f32 %v287_v21, %v238_v4  ;;  %v285_v58 = vmul.f32 %v281_v52, %v2574_v33 }
  0xda   :  { %v334_v36 = vrot.slane %v313_v26, %v2449_v5  ;;  %v292_v37 = vadd.f32 %v284_v41, %v235_v24  ;;  %v289_v8 = vmul.f32 %v281_v52, %v2572_v32  ;;  %v340_v14 = vmul.f32 %v330_v19, %v2587_v39 }
  0xdb   :  { %v369_v6 = vmul.f32 %v2830_v22, %v366_v54  ;;  %v326_v46 = vrot.slane %v311_v10, %v2449_v5  ;;  %v368_v15 = vmul.f32 %v2835_v47, %v367_v11  ;;  %v364_v33 = vsel %vm363_vm6, %v2716_v23, %v2684_v18 }
  0xdc   :  { %v3040_v51 = vpop.permute.xlu1 %491  ;;  %v365_v32 = vsel %vm363_vm6, %v2619_v62, %v2716_v23  ;;  %v296_v63 = vadd.f32 %v288_v42, %v239_v59  ;;  %v290_v24 = vadd.f32 %v282_v43, %v233_v13  ;;  %v294_v53 = vadd.f32 %v286_v56, %v237_v27  ;;  %v3101_v23 = vpop.permute.xlu0 %548  ;;  %v4751_v43 = vld [vmem:[#allocation21_spill] sm:$0xff] }
  0xdd   :  { %v338_v28 = vrot.slane %v314_v60, %v2449_v5  ;;  %v293_v48 = vadd.f32 %v285_v58, %v236_v29  ;;  %v344_v21 = vmul.f32 %v330_v19, %v2589_v40  ;;  %v341_v52 = vmul.f32 %v334_v36, %v2587_v39 }
  0xde   :  { %v345_v26 = vmul.f32 %v334_v36, %v2589_v40  ;;  %v387_v18 = vrot.slane %v369_v6, %v2449_v5  ;;  %v370_v45 = vmul.f32 %v2840_v1, %v365_v32  ;;  %v371_v41 = vmul.f32 %v2858_v50, %v364_v33  ;;  %v4753_v36 = vld [vmem:[#allocation9_spill] sm:$0xff]  ;;  %v4754_v6 = vld [vmem:[#allocation10_spill] sm:$0xff] }
  0xdf   :  { %v423_v62 = vsel %vm420_vm11, %v2908_v44, %v2980_v17  ;;  %v297_v13 = vadd.f32 %v289_v8, %v240_v25  ;;  %v348_v27 = vadd.f32 %v340_v14, %v291_v35  ;;  %v339_v29 = vmul.f32 %v326_v46, %v2587_v39  ;;  %v4752_v35 = vld [vmem:[#allocation20_spill] sm:$0xff] }
  0xe0   :  { %v3063_v9 = vpop.permute.xlu1 %469  ;;  %v383_v59 = vrot.slane %v368_v15, %v2449_v5  ;;  %v342_v42 = vmul.f32 %v338_v28, %v2587_v39  ;;  %v343_v10 = vmul.f32 %v326_v46, %v2589_v40  ;;  %v346_v54 = vmul.f32 %v338_v28, %v2589_v40 }
  0xe1   :  { %v422_v56 = vsel %vm420_vm11, %v2980_v17, %v4751_v43  ;;  %v352_v25 = vadd.f32 %v344_v21, %v295_v12  ;;  %v349_v60 = vadd.f32 %v341_v52, %v292_v37  ;;  %v353_v11 = vadd.f32 %v345_v26, %v296_v63  ;;  %v4755_v12 = vld [vmem:[#allocation22_spill] sm:$0xff]  ;;  %v531_v52 = vpop.permute.xlu0 %530 }
  0xe2   :  { %v425_v58 = vmul.f32 %v4752_v35, %v423_v62  ;;  %v397_v8 = vmul.f32 %v387_v18, %v4753_v36  ;;  %v391_v39 = vrot.slane %v370_v45, %v2449_v5  ;;  %v395_v14 = vrot.slane %v371_v41, %v2449_v5  ;;  %v4756_v45 = vld [vmem:[#allocation23_spill] sm:$0xff] }
  0xe3   :  { %v421_v40 = vsel %vm420_vm11, %v4751_v43, %v3018_v34  ;;  %v401_v17 = vmul.f32 %v387_v18, %v4754_v6  ;;  %v396_v46 = vmul.f32 %v383_v59, %v4753_v36  ;;  %v426_v37 = vmul.f32 %v4755_v12, %v422_v56 }
  0xe4   :  { %v474_v4 = vpop.permute.xlu1 %473  ;;  %v424_v15 = vsel %vm420_vm11, %v3018_v34, %v2908_v44  ;;  %v347_v32 = vadd.f32 %v339_v29, %v290_v24  ;;  %v350_v63 = vadd.f32 %v342_v42, %v293_v48  ;;  %v351_v28 = vadd.f32 %v343_v10, %v294_v53  ;;  %v4757_v53 = vld [vmem:[#allocation24_spill] sm:$0xff] }
  0xe5   :  { %v354_v21 = vadd.f32 %v346_v54, %v297_v13  ;;  %v400_v26 = vmul.f32 %v383_v59, %v4754_v6  ;;  %v440_v18 = vrot.slane %v425_v58, %v2449_v5  ;;  %v427_v41 = vmul.f32 %v4756_v45, %v421_v40 }
  0xe6   :  { %v480_v62 = vsel %vm477_vm8, %v3063_v9, %v3036_v61  ;;  %v398_v44 = vmul.f32 %v391_v39, %v4753_v36  ;;  %v399_v34 = vmul.f32 %v395_v14, %v4753_v36  ;;  %v402_v24 = vmul.f32 %v391_v39, %v4754_v6 }
  0xe7   :  { %v428_v48 = vmul.f32 %v4757_v53, %v424_v15  ;;  %v405_v13 = vadd.f32 %v397_v8, %v348_v27  ;;  %v409_v29 = vadd.f32 %v401_v17, %v352_v25  ;;  %v404_v59 = vadd.f32 %v396_v46, %v347_v32  ;;  %v3155_v25 = vpop.permute.xlu0 %601  ;;  %v4758_v8 = vld [vmem:[#allocation19_spill] sm:$0xff] }
  0xe8   :  { %v3105_v19 = vpop.permute.xlu1 %544  ;;  %v444_v42 = vrot.slane %v426_v37, %v2449_v5  ;;  %v481_v54 = vsel %vm477_vm8, %v3072_v57, %v3063_v9  ;;  %v482_v43 = vmul.f32 %v2893_v2, %v480_v62  ;;  %v478_v56 = vsel %vm477_vm8, %v474_v4, %v3072_v57 }
  0xe9   :  { %v479_v27 = vsel %vm477_vm8, %v3036_v61, %v474_v4  ;;  %v408_v58 = vadd.f32 %v400_v26, %v351_v28  ;;  %v403_v36 = vmul.f32 %v395_v14, %v4754_v6  ;;  %v453_v39 = vmul.f32 %v440_v18, %v4758_v8 }
  0xea   :  { %v448_v40 = vrot.slane %v427_v41, %v2449_v5  ;;  %v406_v9 = vadd.f32 %v398_v44, %v349_v60  ;;  %v407_v17 = vadd.f32 %v399_v34, %v350_v63  ;;  %v410_v46 = vadd.f32 %v402_v24, %v353_v11  ;;  %v4759_v60 = vld [vmem:[#allocation14_spill] sm:$0xff] }
  0xeb   :  { %v452_v37 = vrot.slane %v428_v48, %v2449_v5  ;;  %v485_v57 = vmul.f32 %v2913_v55, %v481_v54  ;;  %v483_v61 = vmul.f32 %v2918_v20, %v479_v27  ;;  %v484_v4 = vmul.f32 %v2928_v30, %v478_v56  ;;  %v586_v48 = vpop.permute.xlu0 %585 }
  0xec   :  { %v3130_v33 = vpop.permute.xlu1 %526  ;;  %v454_v15 = vmul.f32 %v444_v42, %v4758_v8  ;;  %v457_v32 = vmul.f32 %v440_v18, %v4759_v60  ;;  %v497_v11 = vrot.slane %v482_v43, %v2449_v5  ;;  %v3173_v28 = vadd.f32 %v403_v36, %v354_v21  ;;  %v4761_v36 = vld [vmem:[#allocation37_spill] sm:$0xff] }
  0xed   :  { %v458_v26 = vmul.f32 %v444_v42, %v4759_v60  ;;  %v461_v41 = vadd.f32 %v453_v39, %v404_v59  ;;  %v455_v62 = vmul.f32 %v448_v40, %v4758_v8  ;;  %v456_v44 = vmul.f32 %v452_v37, %v4758_v8  ;;  %v4760_v42 = vld [vmem:[#allocation30_spill] sm:$0xff] }
  0xee   :  { %v459_v34 = vmul.f32 %v448_v40, %v4759_v60  ;;  %v509_v54 = vrot.slane %v485_v57, %v2449_v5  ;;  %v501_v21 = vrot.slane %v483_v61, %v2449_v5  ;;  %v462_v56 = vadd.f32 %v454_v15, %v405_v13  ;;  %v4762_v61 = vld [vmem:[#allocation31_spill] sm:$0xff] }
  0xef   :  { %v465_v27 = vadd.f32 %v457_v32, %v408_v58  ;;  %v510_v8 = vmul.f32 %v497_v11, %v4761_v36  ;;  %v514_v39 = vmul.f32 %v497_v11, %v3040_v51  ;;  %v466_v40 = vadd.f32 %v458_v26, %v409_v29 }
  0xf0   :  { %v529_v10 = vpop.permute.xlu1 %528  ;;  %v513_v58 = vmul.f32 %v509_v54, %v4761_v36  ;;  %v511_v15 = vmul.f32 %v501_v21, %v4761_v36  ;;  %v517_v32 = vmul.f32 %v509_v54, %v3040_v51 }
  0xf1   :  { %v537_v14 = vsel %vm534_vm14, %v3130_v33, %v529_v10  ;;  %v536_v63 = vsel %vm534_vm14, %v529_v10, %v531_v52  ;;  %v505_v10 = vrot.slane %v484_v4, %v2449_v5  ;;  %v518_v11 = vadd.f32 %v510_v8, %v461_v41 }
  0xf2   :  { %v539_v24 = vmul.f32 %v2933_v31, %v537_v14  ;;  %v540_v59 = vmul.f32 %v4760_v42, %v536_v63  ;;  %v463_v14 = vadd.f32 %v455_v62, %v406_v9  ;;  %v464_v63 = vadd.f32 %v456_v44, %v407_v17  ;;  %v590_v9 = vpop.permute.xlu0 %589 }
  0xf3   :  { %v467_v42 = vadd.f32 %v459_v34, %v410_v46  ;;  %v512_v29 = vmul.f32 %v505_v10, %v4761_v36  ;;  %v515_v17 = vmul.f32 %v501_v21, %v3040_v51  ;;  %v516_v34 = vmul.f32 %v505_v10, %v3040_v51  ;;  %v4765_v36 = vld [vmem:[#allocation34_spill] sm:$0xff] }
  0xf4   :  { %v533_v6 = vpop.permute.xlu1 %532  ;;  %v554_v13 = vrot.slane %v539_v24, %v2449_v5 }
  0xf5   :  { %v535_v18 = vsel %vm534_vm14, %v531_v52, %v533_v6  ;;  %v3191_v52 = vmul.f32 %v452_v37, %v4759_v60  ;;  %v538_v57 = vsel %vm534_vm14, %v533_v6, %v3130_v33  ;;  %v558_v37 = vrot.slane %v540_v59, %v2449_v5  ;;  %v4763_v6 = vld [vmem:[#allocation32_spill] sm:$0xff] }
  0xf6   :  { %v541_v4 = vmul.f32 %v4762_v61, %v535_v18  ;;  %v522_v33 = vadd.f32 %v514_v39, %v465_v27  ;;  %v542_v26 = vmul.f32 %v4763_v6, %v538_v57  ;;  %v567_v24 = vmul.f32 %v554_v13, %v3105_v19  ;;  %v4764_v18 = vld [vmem:[#allocation33_spill] sm:$0xff] }
  0xf7   :  { %v571_v41 = vmul.f32 %v554_v13, %v3101_v23  ;;  %v519_v59 = vadd.f32 %v511_v15, %v462_v56  ;;  %v520_v27 = vadd.f32 %v512_v29, %v463_v14  ;;  %v568_v21 = vmul.f32 %v558_v37, %v3105_v19  ;;  %v4766_v14 = vld [vmem:[#allocation35_spill] sm:$0xff]  ;;  %v4767_v29 = vld [vmem:[#allocation36_spill] sm:$0xff] }
  0xf8   :  { %v3186_v43 = vpop.permute.xlu1 %605  ;;  %v562_v46 = vrot.slane %v541_v4, %v2449_v5  ;;  %v566_v57 = vrot.slane %v542_v26, %v2449_v5  ;;  %v572_v13 = vmul.f32 %v558_v37, %v3101_v23 }
  0xfa   :  { %v569_v56 = vmul.f32 %v562_v46, %v3105_v19  ;;  %v570_v6 = vmul.f32 %v566_v57, %v3105_v19 }
  0xfc   :  { %v584_v60 = vpop.permute.xlu1 %583 }
  0xfd   :  { %v594_v62 = vsel %vm591_vm2, %v584_v60, %v586_v48  ;;  %v595_v44 = vsel %vm591_vm2, %v590_v9, %v584_v60 }
  0xfe   :  { %v596_v54 = vmul.f32 %v4764_v18, %v594_v62  ;;  %v599_v8 = vmul.f32 %v4765_v36, %v595_v44  ;;  %v575_v62 = vadd.f32 %v567_v24, %v518_v11  ;;  %v579_v44 = vadd.f32 %v571_v41, %v522_v33 }
  0xff   :  { %v523_v36 = vadd.f32 %v515_v17, %v466_v40  ;;  %v650_v40 = vpop.permute.xlu0 %649  ;;  %v521_v17 = vadd.f32 %v513_v58, %v464_v63  ;;  %v574_v58 = vmul.f32 %v566_v57, %v3101_v23 }
 0x100   :  { %v588_v39 = vpop.permute.xlu1 %587  ;;  %v611_v4 = vrot.slane %v596_v54, %v2449_v5 }
 0x101   :  { %v592_v51 = vsel %vm591_vm2, %v588_v39, %v590_v9  ;;  %v593_v10 = vsel %vm591_vm2, %v586_v48, %v588_v39  ;;  %v623_v9 = vrot.slane %v599_v8, %v2449_v5  ;;  %v576_v39 = vadd.f32 %v568_v21, %v519_v59 }
 0x102   :  { %v597_v15 = vmul.f32 %v4766_v14, %v593_v10  ;;  %v598_v60 = vmul.f32 %v4767_v29, %v592_v51  ;;  %v624_v26 = vmul.f32 %v611_v4, %v3155_v25  ;;  %v628_v54 = vmul.f32 %v611_v4, %v3186_v43 }
 0x103   :  { %v577_v51 = vadd.f32 %v569_v56, %v520_v27  ;;  %v580_v41 = vadd.f32 %v572_v13, %v523_v36  ;;  %v573_v8 = vmul.f32 %v562_v46, %v3101_v23  ;;  %v627_v59 = vmul.f32 %v623_v9, %v3155_v25 }
 0x104   :  { %v615_v18 = vrot.slane %v597_v15, %v2449_v5  ;;  %v619_v48 = vrot.slane %v598_v60, %v2449_v5  ;;  %v645_v37 = vpop.permute.xlu1 %644  ;;  %v632_v10 = vadd.f32 %v624_v26, %v575_v62  ;;  %v636_v14 = vadd.f32 %v628_v54, %v579_v44 }
 0x105   :  { %v524_v5 = vadd.f32 %v516_v34, %v467_v42  ;;  %v578_v62 = vadd.f32 %v570_v6, %v521_v17  ;;  %v631_v13 = vmul.f32 %v623_v9, %v3186_v43  ;;  %v2063_v17 = vld [vmem:[%s4556_s2 + $0x10] sm:$0xff] }
 0x106   :  { %v625_v11 = vmul.f32 %v615_v18, %v3155_v25  ;;  %v626_v33 = vmul.f32 %v619_v48, %v3155_v25  ;;  %v629_v24 = vmul.f32 %v615_v18, %v3186_v43  ;;  %v652_v4 = vadd.f32 %v645_v37, %v632_v10  ;;  %v926_v10 = vld [vmem:[#allocation2 + $0x28] sm:$0xff] }
 0x107   :  { %v630_v15 = vmul.f32 %v619_v48, %v3186_v43  ;;  %v656_v60 = vadd.f32 %v650_v40, %v636_v14  ;;  %v468_v18 = vadd.f32 %v3191_v52, %v3173_v28  ;;  %v581_v46 = vadd.f32 %v573_v8, %v524_v5  ;;  %2065 = vmatprep.mubr.msk.f32.mxu0 %vm942_vm0, %v926_v10 }
 0x108   :  { %v633_v21 = vadd.f32 %v625_v11, %v576_v39  ;;  %v634_v19 = vadd.f32 %v626_v33, %v577_v51  ;;  %v3238_v27 = vmax.f32 %v652_v4, 0.0  ;;  %v637_v56 = vadd.f32 %v629_v24, %v580_v41  ;;  %2067 = vmatprep.mubr.msk.f32.mxu1 %vm942_vm0, %v926_v10  ;;  %v4768_v41 = vld [vmem:[#allocation11_spill] sm:$0xff] }
 0x109   :  { %v525_v25 = vadd.f32 %v517_v32, %v468_v18  ;;  %v635_v42 = vadd.f32 %v627_v59, %v578_v62  ;;  %v638_v44 = vadd.f32 %v630_v15, %v581_v46  ;;  %v3248_v26 = vmax.f32 %v656_v60, 0.0  ;;  %v2064_v60 = vld [vmem:[%s4556_s2 + $0x18] sm:$0xff] }
 0x10a   :  { %v653_v63 = vadd.f32 %v645_v37, %v633_v21  ;;  %668 = vrot.lane.b32.xlu1 %v3238_v27, %s2390_s27  ;;  %v654_v34 = vadd.f32 %v645_v37, %v634_v19  ;;  %v657_v14 = vadd.f32 %v650_v40, %v637_v56 }
 0x10b   :  { %v582_v28 = vadd.f32 %v574_v58, %v525_v25  ;;  %v655_v23 = vadd.f32 %v645_v37, %v635_v42  ;;  %v658_v6 = vadd.f32 %v650_v40, %v638_v44  ;;  %v4769_v25 = vld [vmem:[#allocation13_spill] sm:$0xff] }
 0x10c   :  { %v3245_v36 = vmax.f32 %v653_v63, 0.0  ;;  %v3254_v52 = vmax.f32 %v654_v34, 0.0  ;;  %v3256_v57 = vmax.f32 %v657_v14, 0.0  ;;  %v4770_v34 = vld [vmem:[#allocation12_spill] sm:$0xff]  ;;  %v4771_v14 = vld [vmem:[#allocation15_spill] sm:$0xff] }
 0x10d   :  { %v639_v32 = vadd.f32 %v631_v13, %v582_v28  ;;  %v3262_v43 = vmax.f32 %v655_v23, 0.0  ;;  %v3264_v9 = vmax.f32 %v658_v6, 0.0 }
 0x10e   :  { %672 = vrot.lane.b32.xlu0 %v3245_v36, %s2390_s27  ;;  %670 = vrot.lane.b32.xlu1 %v3248_v26, %s2390_s27 }
 0x10f   :  { %v659_v54 = vadd.f32 %v650_v40, %v639_v32 }
 0x111   :  { %v3270_v48 = vmax.f32 %v659_v54, 0.0 }
 0x112   :  { %676 = vrot.lane.b32.xlu0 %v3254_v52, %s2390_s27  ;;  %674 = vrot.lane.b32.xlu1 %v3256_v57, %s2390_s27 }
 0x116   :  { %680 = vrot.lane.b32.xlu0 %v3262_v43, %s2390_s27  ;;  %678 = vrot.lane.b32.xlu1 %v3264_v9, %s2390_s27 }
 0x11a   :  { %700 = vrot.lane.b32.xlu0 %v3238_v27, %s2387_s23  ;;  %682 = vrot.lane.b32.xlu1 %v3270_v48, %s2390_s27 }
 0x11e   :  { %704 = vrot.lane.b32.xlu0 %v3245_v36, %s2387_s23  ;;  %702 = vrot.lane.b32.xlu1 %v3248_v26, %s2387_s23 }
 0x122   :  { %708 = vrot.lane.b32.xlu0 %v3254_v52, %s2387_s23  ;;  %706 = vrot.lane.b32.xlu1 %v3256_v57, %s2387_s23 }
 0x126   :  { %712 = vrot.lane.b32.xlu0 %v3262_v43, %s2387_s23  ;;  %710 = vrot.lane.b32.xlu1 %v3264_v9, %s2387_s23 }
 0x12a   :  { %732 = vrot.lane.b32.xlu0 %v3238_v27, %s2393_s28  ;;  %714 = vrot.lane.b32.xlu1 %v3270_v48, %s2387_s23 }
 0x12e   :  { %736 = vrot.lane.b32.xlu0 %v3245_v36, %s2393_s28  ;;  %734 = vrot.lane.b32.xlu1 %v3248_v26, %s2393_s28 }
 0x132   :  { %740 = vrot.lane.b32.xlu0 %v3254_v52, %s2393_s28  ;;  %738 = vrot.lane.b32.xlu1 %v3256_v57, %s2393_s28 }
 0x136   :  { %744 = vrot.lane.b32.xlu0 %v3262_v43, %s2393_s28  ;;  %742 = vrot.lane.b32.xlu1 %v3264_v9, %s2393_s28 }
 0x13a   :  { %764 = vrot.lane.b32.xlu0 %v3238_v27, %s2395_s29  ;;  %746 = vrot.lane.b32.xlu1 %v3270_v48, %s2393_s28 }
 0x13e   :  { %768 = vrot.lane.b32.xlu0 %v3245_v36, %s2395_s29  ;;  %766 = vrot.lane.b32.xlu1 %v3248_v26, %s2395_s29 }
 0x142   :  { %772 = vrot.lane.b32.xlu0 %v3254_v52, %s2395_s29  ;;  %770 = vrot.lane.b32.xlu1 %v3256_v57, %s2395_s29 }
 0x146   :  { %776 = vrot.lane.b32.xlu0 %v3262_v43, %s2395_s29  ;;  %774 = vrot.lane.b32.xlu1 %v3264_v9, %s2395_s29 }
 0x14a   :  { %796 = vrot.lane.b32.xlu0 %v3238_v27, %s2397_s30  ;;  %778 = vrot.lane.b32.xlu1 %v3270_v48, %s2395_s29 }
 0x14e   :  { %800 = vrot.lane.b32.xlu0 %v3245_v36, %s2397_s30  ;;  %798 = vrot.lane.b32.xlu1 %v3248_v26, %s2397_s30 }
 0x152   :  { %804 = vrot.lane.b32.xlu0 %v3254_v52, %s2397_s30  ;;  %802 = vrot.lane.b32.xlu1 %v3256_v57, %s2397_s30 }
 0x156   :  { %808 = vrot.lane.b32.xlu0 %v3262_v43, %s2397_s30  ;;  %806 = vrot.lane.b32.xlu1 %v3264_v9, %s2397_s30 }
 0x15a   :  { %828 = vrot.lane.b32.xlu0 %v3238_v27, %s2399_s4  ;;  %810 = vrot.lane.b32.xlu1 %v3270_v48, %s2397_s30 }
 0x15e   :  { %832 = vrot.lane.b32.xlu0 %v3245_v36, %s2399_s4  ;;  %830 = vrot.lane.b32.xlu1 %v3248_v26, %s2399_s4 }
 0x162   :  { %836 = vrot.lane.b32.xlu0 %v3254_v52, %s2399_s4  ;;  %834 = vrot.lane.b32.xlu1 %v3256_v57, %s2399_s4 }
 0x166   :  { %840 = vrot.lane.b32.xlu0 %v3262_v43, %s2399_s4  ;;  %838 = vrot.lane.b32.xlu1 %v3264_v9, %s2399_s4 }
 0x16a   :  { %860 = vrot.lane.b32.xlu0 %v3238_v27, %s2401_s5  ;;  %842 = vrot.lane.b32.xlu1 %v3270_v48, %s2399_s4 }
 0x16e   :  { %864 = vrot.lane.b32.xlu0 %v3245_v36, %s2401_s5  ;;  %862 = vrot.lane.b32.xlu1 %v3248_v26, %s2401_s5 }
 0x172   :  { %868 = vrot.lane.b32.xlu0 %v3254_v52, %s2401_s5  ;;  %866 = vrot.lane.b32.xlu1 %v3256_v57, %s2401_s5 }
 0x176   :  { %872 = vrot.lane.b32.xlu0 %v3262_v43, %s2401_s5  ;;  %870 = vrot.lane.b32.xlu1 %v3264_v9, %s2401_s5 }
 0x17a   :  { %892 = vrot.lane.b32.xlu0 %v3238_v27, %s2403_s6  ;;  %874 = vrot.lane.b32.xlu1 %v3270_v48, %s2401_s5 }
 0x17c   :  { %v669_v37 = vpop.permute.xlu1 %668 }
 0x17e   :  { %896 = vrot.lane.b32.xlu0 %v3245_v36, %s2403_s6  ;;  %894 = vrot.lane.b32.xlu1 %v3248_v26, %s2403_s6 }
 0x180   :  { %v673_v39 = vpop.permute.xlu0 %672  ;;  %v671_v51 = vpop.permute.xlu1 %670 }
 0x181   :  { %v688_v33 = vsel %vm192_vm1, %v669_v37, %v673_v39 }
 0x182   :  { %900 = vrot.lane.b32.xlu0 %v3254_v52, %s2403_s6  ;;  %898 = vrot.lane.b32.xlu1 %v3256_v57, %s2403_s6  ;;  %v693_v8 = vmul.f32 %v4768_v41, %v688_v33 }
 0x184   :  { %v677_v11 = vpop.permute.xlu0 %676  ;;  %v675_v24 = vpop.permute.xlu1 %674 }
 0x185   :  { %v689_v40 = vsel %vm192_vm1, %v671_v51, %v675_v24  ;;  %v686_v62 = vsel %vm192_vm1, %v673_v39, %v677_v11 }
 0x186   :  { %904 = vrot.lane.b32.xlu0 %v3262_v43, %s2403_s6  ;;  %902 = vrot.lane.b32.xlu1 %v3264_v9, %s2403_s6  ;;  %v697_v4 = vmul.f32 %v4768_v41, %v689_v40  ;;  %v694_v6 = vmul.f32 %v4769_v25, %v686_v62  ;;  %v4774_v40 = vld [vmem:[#allocation16_spill] sm:$0xff] }
 0x188   :  { %v681_v5 = vpop.permute.xlu0 %680  ;;  %v679_v59 = vpop.permute.xlu1 %678  ;;  %v2080_v21 = vpack.c.bf16 %v697_v4, %v693_v8 }
 0x189   :  { %v687_v19 = vsel %vm192_vm1, %v675_v24, %v679_v59  ;;  %v690_v15 = vsel %vm192_vm1, %v681_v5, %v669_v37  ;;  %v684_v18 = vsel %vm192_vm1, %v677_v11, %v681_v5 }
 0x18a   :  { %934 = vperm.xlu0 %2335, %v2063_v17   ;;  %906 = vrot.lane.b32.xlu1 %v3270_v48, %s2403_s6  ;;  %v698_v42 = vmul.f32 %v4769_v25, %v687_v19  ;;  %v692_v13 = vmul.f32 %v4770_v34, %v690_v15  ;;  %v695_v28 = vmul.f32 %v4771_v14, %v684_v18 }
 0x18b   :  { %2081 = vmatprep.subr.bf16.mxu0 %v2080_v21 }
 0x18c   :  { %v701_v56 = vpop.permute.xlu0 %700  ;;  %v683_v63 = vpop.permute.xlu1 %682  ;;  %v2118_v10 = vpack.c.bf16 %v698_v42, %v694_v6 }
 0x18d   :  { %v691_v58 = vsel %vm192_vm1, %v683_v63, %v671_v51  ;;  %v685_v46 = vsel %vm192_vm1, %v679_v59, %v683_v63  ;;  %v4779_v63 = vld [vmem:[#allocation17_spill] sm:$0xff] }
 0x18e   :  { %939 = vperm.xlu1 %2334, %v2064_v60   ;;  %v696_v44 = vmul.f32 %v4770_v34, %v691_v58  ;;  %v699_v23 = vmul.f32 %v4771_v14, %v685_v46 }
 0x190   :  { %v705_v32 = vpop.permute.xlu0 %704  ;;  %v703_v54 = vpop.permute.xlu1 %702  ;;  %v2082_v37 = vpack.c.bf16 %v696_v44, %v692_v13  ;;  %v2116_v39 = vpack.c.bf16 %v699_v23, %v695_v28  ;;  %v4781_v13 = vld [vmem:[#allocation18_spill] sm:$0xff] }
 0x191   :  { %v720_v51 = vsel %vm4772_vm5, %v701_v56, %v705_v32  ;;  %vm4799_vm5 = vmmov %vm4749_vm3 }
 0x192   :  { %2083 = vmatpush1.bf16.msra.mxu0 %v2082_v37  ;;  %2117 = vmatprep.subr.bf16.mxu1 %v2116_v39  ;;  %v725_v17 = vmul.f32 %v4774_v40, %v720_v51 }
 0x193   :  { %2119 = vmatpush1.bf16.msra.mxu1 %v2118_v10 }
 0x194   :  { %v709_v11 = vpop.permute.xlu0 %708  ;;  %v707_v33 = vpop.permute.xlu1 %706 }
 0x195   :  { %v721_v24 = vsel %vm4773_vm13, %v703_v54, %v707_v33  ;;  %v718_v18 = vsel %vm4778_vm12, %v705_v32, %v709_v11  ;;  %vm4800_vm13 = vmmov %vm4749_vm3 }
 0x196   :  { %v729_v8 = vmul.f32 %v4774_v40, %v721_v24  ;;  %v726_v6 = vmul.f32 %v4779_v63, %v718_v18  ;;  %vm4804_vm12 = vmmov %vm4749_vm3 }
 0x198   :  { %v713_v4 = vpop.permute.xlu0 %712  ;;  %v711_v5 = vpop.permute.xlu1 %710  ;;  %v2084_v59 = vpack.c.bf16 %v729_v8, %v725_v17 }
 0x199   :  { %v719_v21 = vsel %vm4775_vm9, %v707_v33, %v711_v5  ;;  %v716_v19 = vsel %vm4776_vm10, %v709_v11, %v713_v4  ;;  %v722_v15 = vsel %vm4777_vm15, %v713_v4, %v701_v56  ;;  %vm4801_vm9 = vmmov %vm4749_vm3 }
 0x19a   :  { %2085 = vmatprep.subr.bf16.mxu0 %v2084_v59  ;;  %v730_v58 = vmul.f32 %v4779_v63, %v719_v21  ;;  %v724_v44 = vmul.f32 %v4781_v13, %v722_v15  ;;  %v727_v28 = vmul.f32 %v2782_v7, %v716_v19  ;;  %vm4802_vm10 = vmmov %vm4749_vm3 }
 0x19b   :  { %vm4803_vm15 = vmmov %vm4749_vm3 }
 0x19c   :  { %v733_v60 = vpop.permute.xlu0 %732  ;;  %v715_v62 = vpop.permute.xlu1 %714  ;;  %v2122_v51 = vpack.c.bf16 %v730_v58, %v726_v6 }
 0x19d   :  { %v717_v46 = vsel %vm4749_vm3, %v711_v5, %v715_v62  ;;  %v723_v42 = vsel %vm4780_vm4, %v715_v62, %v703_v54  ;;  %vm4805_vm4 = vmmov %vm4749_vm3 }
 0x19e   :  { %v728_v23 = vmul.f32 %v4781_v13, %v723_v42  ;;  %v731_v56 = vmul.f32 %v2782_v7, %v717_v46 }
 0x1a0   :  { %v737_v32 = vpop.permute.xlu0 %736  ;;  %v735_v37 = vpop.permute.xlu1 %734  ;;  %v2086_v39 = vpack.c.bf16 %v728_v23, %v724_v44  ;;  %v2120_v10 = vpack.c.bf16 %v731_v56, %v727_v28 }
 0x1a1   :  { %v752_v54 = vsel %vm306_vm7, %v733_v60, %v737_v32 }
 0x1a2   :  { %2087 = vmatpush1.bf16.msra.mxu0 %v2086_v39  ;;  %2121 = vmatprep.subr.bf16.mxu1 %v2120_v10  ;;  %v757_v17 = vmul.f32 %v2795_v16, %v752_v54 }
 0x1a3   :  { %2123 = vmatpush1.bf16.msra.mxu1 %v2122_v51 }
 0x1a4   :  { %v741_v11 = vpop.permute.xlu0 %740  ;;  %v739_v33 = vpop.permute.xlu1 %738 }
 0x1a5   :  { %v753_v24 = vsel %vm306_vm7, %v735_v37, %v739_v33  ;;  %v750_v62 = vsel %vm306_vm7, %v737_v32, %v741_v11 }
 0x1a6   :  { %v761_v8 = vmul.f32 %v2795_v16, %v753_v24  ;;  %v758_v6 = vmul.f32 %v2800_v0, %v750_v62 }
 0x1a8   :  { %v745_v4 = vpop.permute.xlu0 %744  ;;  %v743_v5 = vpop.permute.xlu1 %742  ;;  %v2088_v59 = vpack.c.bf16 %v761_v8, %v757_v17 }
 0x1a9   :  { %v751_v21 = vsel %vm306_vm7, %v739_v33, %v743_v5  ;;  %v748_v19 = vsel %vm306_vm7, %v741_v11, %v745_v4  ;;  %v754_v15 = vsel %vm306_vm7, %v745_v4, %v733_v60 }
 0x1aa   :  { %2089 = vmatprep.subr.bf16.mxu0 %v2088_v59  ;;  %v762_v46 = vmul.f32 %v2800_v0, %v751_v21  ;;  %v756_v28 = vmul.f32 %v2805_v3, %v754_v15  ;;  %v759_v23 = vmul.f32 %v2810_v49, %v748_v19 }
 0x1ac   :  { %v765_v18 = vpop.permute.xlu0 %764  ;;  %v747_v58 = vpop.permute.xlu1 %746  ;;  %v2126_v54 = vpack.c.bf16 %v762_v46, %v758_v6 }
 0x1ad   :  { %v749_v42 = vsel %vm306_vm7, %v743_v5, %v747_v58  ;;  %v755_v44 = vsel %vm306_vm7, %v747_v58, %v735_v37 }
 0x1ae   :  { %v760_v56 = vmul.f32 %v2805_v3, %v755_v44  ;;  %v763_v60 = vmul.f32 %v2810_v49, %v749_v42 }
 0x1b0   :  { %v769_v32 = vpop.permute.xlu0 %768  ;;  %v767_v39 = vpop.permute.xlu1 %766  ;;  %v2090_v10 = vpack.c.bf16 %v760_v56, %v756_v28  ;;  %v2124_v51 = vpack.c.bf16 %v763_v60, %v759_v23 }
 0x1b1   :  { %v784_v37 = vsel %vm363_vm6, %v765_v18, %v769_v32 }
 0x1b2   :  { %2091 = vmatpush1.bf16.msra.mxu0 %v2090_v10  ;;  %2125 = vmatprep.subr.bf16.mxu1 %v2124_v51  ;;  %v789_v17 = vmul.f32 %v2830_v22, %v784_v37  ;;  %v2096_v37 = vpack.c.bf16 %v3256_v57, %v3245_v36 }
 0x1b3   :  { %2127 = vmatpush1.bf16.msra.mxu1 %v2126_v54 }
 0x1b4   :  { %v773_v11 = vpop.permute.xlu0 %772  ;;  %v771_v33 = vpop.permute.xlu1 %770 }
 0x1b5   :  { %v785_v24 = vsel %vm363_vm6, %v767_v39, %v771_v33  ;;  %v782_v58 = vsel %vm363_vm6, %v769_v32, %v773_v11 }
 0x1b6   :  { %v793_v8 = vmul.f32 %v2830_v22, %v785_v24  ;;  %v790_v6 = vmul.f32 %v2840_v1, %v782_v58 }
 0x1b8   :  { %v777_v4 = vpop.permute.xlu0 %776  ;;  %v775_v5 = vpop.permute.xlu1 %774  ;;  %v2092_v59 = vpack.c.bf16 %v793_v8, %v789_v17  ;;  %v2098_v17 = vpack.c.bf16 %v3248_v26, %v3238_v27  ;;  %v2134_v8 = vpack.c.bf16 %v3264_v9, %v3254_v52 }
 0x1b9   :  { %v783_v21 = vsel %vm363_vm6, %v771_v33, %v775_v5  ;;  %v780_v19 = vsel %vm363_vm6, %v773_v11, %v777_v4  ;;  %v786_v15 = vsel %vm363_vm6, %v777_v4, %v765_v18 }
 0x1ba   :  { %2093 = vmatprep.subr.bf16.mxu0 %v2092_v59  ;;  %v794_v42 = vmul.f32 %v2840_v1, %v783_v21  ;;  %v788_v23 = vmul.f32 %v2835_v47, %v786_v15  ;;  %v791_v56 = vmul.f32 %v2858_v50, %v780_v19 }
 0x1bc   :  { %v797_v62 = vpop.permute.xlu0 %796  ;;  %v779_v46 = vpop.permute.xlu1 %778  ;;  %v2130_v11 = vpack.c.bf16 %v794_v42, %v790_v6 }
 0x1bd   :  { %v781_v44 = vsel %vm363_vm6, %v775_v5, %v779_v46  ;;  %v787_v28 = vsel %vm363_vm6, %v779_v46, %v767_v39  ;;  %v2132_v39 = vpack.c.bf16 %v3270_v48, %v3262_v43 }
 0x1be   :  { %v792_v60 = vmul.f32 %v2835_v47, %v787_v28  ;;  %v795_v18 = vmul.f32 %v2858_v50, %v781_v44 }
 0x1c0   :  { %v801_v32 = vpop.permute.xlu0 %800  ;;  %v799_v10 = vpop.permute.xlu1 %798  ;;  %v2094_v51 = vpack.c.bf16 %v792_v60, %v788_v23  ;;  %v2128_v54 = vpack.c.bf16 %v795_v18, %v791_v56 }
 0x1c1   :  { %v816_v48 = vsel %vm420_vm11, %v797_v62, %v801_v32 }
 0x1c2   :  { %2095 = vmatpush1.bf16.msra.mxu0 %v2094_v51  ;;  %2129 = vmatprep.subr.bf16.mxu1 %v2128_v54  ;;  %v820_v9 = vmul.f32 %v4752_v35, %v816_v48 }
 0x1c3   :  { %2097 = vmatprep.subr.bf16.mxu0 %v2096_v37  ;;  %2131 = vmatpush1.bf16.msra.mxu1 %v2130_v11 }
 0x1c4   :  { %v805_v33 = vpop.permute.xlu0 %804  ;;  %2133 = vmatprep.subr.bf16.mxu1 %v2132_v39  ;;  %v803_v24 = vpop.permute.xlu1 %802 }
 0x1c5   :  { %v817_v36 = vsel %vm420_vm11, %v799_v10, %v803_v24  ;;  %v814_v57 = vsel %vm420_vm11, %v801_v32, %v805_v33 }
 0x1c6   :  { %2099 = vmatpush1.bf16.msra.mxu0 %v2098_v17  ;;  %v824_v5 = vmul.f32 %v4752_v35, %v817_v36  ;;  %v821_v26 = vmul.f32 %v4755_v12, %v814_v57 }
 0x1c7   :  { %2135 = vmatpush1.bf16.msra.mxu1 %v2134_v8 }
 0x1c8   :  { %v809_v43 = vpop.permute.xlu0 %808  ;;  %v807_v4 = vpop.permute.xlu1 %806  ;;  %v2102_v44 = vpack.c.bf16 %v824_v5, %v820_v9 }
 0x1c9   :  { %v815_v27 = vsel %vm420_vm11, %v803_v24, %v807_v4  ;;  %v812_v59 = vsel %vm420_vm11, %v805_v33, %v809_v43  ;;  %v818_v21 = vsel %vm420_vm11, %v809_v43, %v797_v62 }
 0x1ca   :  { %v825_v52 = vmul.f32 %v4755_v12, %v815_v27  ;;  %v822_v28 = vmul.f32 %v4756_v45, %v812_v59  ;;  %v823_v23 = vmul.f32 %v4757_v53, %v818_v21 }
 0x1cc   :  { %v829_v19 = vpop.permute.xlu0 %828  ;;  %v811_v15 = vpop.permute.xlu1 %810  ;;  %v2100_v58 = vpack.c.bf16 %v825_v52, %v821_v26 }
 0x1cd   :  { %v813_v46 = vsel %vm420_vm11, %v807_v4, %v811_v15  ;;  %v819_v42 = vsel %vm420_vm11, %v811_v15, %v799_v10 }
 0x1ce   :  { %v826_v56 = vmul.f32 %v4756_v45, %v813_v46  ;;  %v827_v60 = vmul.f32 %v4757_v53, %v819_v42  ;;  %2101 = vmatprep.subr.bf16.mxu0 %v2100_v58 }
 0x1cf   :  { %2103 = vmatpush1.bf16.msra.mxu0 %v2102_v44 }
 0x1d0   :  { %v833_v62 = vpop.permute.xlu0 %832  ;;  %v831_v18 = vpop.permute.xlu1 %830  ;;  %v2136_v6 = vpack.c.bf16 %v827_v60, %v823_v23  ;;  %v2138_v32 = vpack.c.bf16 %v826_v56, %v822_v28 }
 0x1d1   :  { %v848_v39 = vsel %vm477_vm8, %v829_v19, %v833_v62 }
 0x1d2   :  { %2137 = vmatprep.subr.bf16.mxu1 %v2136_v6  ;;  %v852_v57 = vmul.f32 %v2893_v2, %v848_v39 }
 0x1d3   :  { %2139 = vmatpush1.bf16.msra.mxu1 %v2138_v32 }
 0x1d4   :  { %v837_v51 = vpop.permute.xlu0 %836  ;;  %v835_v54 = vpop.permute.xlu1 %834 }
 0x1d5   :  { %v849_v10 = vsel %vm477_vm8, %v831_v18, %v835_v54  ;;  %v846_v37 = vsel %vm477_vm8, %v833_v62, %v837_v51 }
 0x1d6   :  { %v856_v24 = vmul.f32 %v2893_v2, %v849_v10  ;;  %v853_v8 = vmul.f32 %v2918_v20, %v846_v37 }
 0x1d8   :  { %v841_v11 = vpop.permute.xlu0 %840  ;;  %v839_v33 = vpop.permute.xlu1 %838  ;;  %v2106_v9 = vpack.c.bf16 %v856_v24, %v852_v57 }
 0x1d9   :  { %v847_v17 = vsel %vm477_vm8, %v835_v54, %v839_v33  ;;  %v844_v43 = vsel %vm477_vm8, %v837_v51, %v841_v11  ;;  %v850_v48 = vsel %vm477_vm8, %v841_v11, %v829_v19  ;;  %v4782_v54 = vld [vmem:[#allocation30_spill] sm:$0xff] }
 0x1da   :  { %v857_v36 = vmul.f32 %v2918_v20, %v847_v17  ;;  %v854_v59 = vmul.f32 %v2928_v30, %v844_v43  ;;  %v855_v21 = vmul.f32 %v2913_v55, %v850_v48 }
 0x1dc   :  { %v861_v4 = vpop.permute.xlu0 %860  ;;  %v843_v5 = vpop.permute.xlu1 %842  ;;  %v2104_v27 = vpack.c.bf16 %v857_v36, %v853_v8 }
 0x1dd   :  { %v845_v26 = vsel %vm477_vm8, %v839_v33, %v843_v5  ;;  %v851_v52 = vsel %vm477_vm8, %v843_v5, %v831_v18  ;;  %v4783_v5 = vld [vmem:[#allocation32_spill] sm:$0xff] }
 0x1de   :  { %v858_v15 = vmul.f32 %v2928_v30, %v845_v26  ;;  %v859_v58 = vmul.f32 %v2913_v55, %v851_v52  ;;  %2105 = vmatprep.subr.bf16.mxu0 %v2104_v27 }
 0x1df   :  { %2107 = vmatpush1.bf16.msra.mxu0 %v2106_v9 }
 0x1e0   :  { %v865_v19 = vpop.permute.xlu0 %864  ;;  %v863_v46 = vpop.permute.xlu1 %862  ;;  %v2140_v42 = vpack.c.bf16 %v859_v58, %v855_v21  ;;  %v2142_v44 = vpack.c.bf16 %v858_v15, %v854_v59 }
 0x1e1   :  { %v880_v18 = vsel %vm534_vm14, %v861_v4, %v865_v19 }
 0x1e2   :  { %2141 = vmatprep.subr.bf16.mxu1 %v2140_v42  ;;  %v884_v11 = vmul.f32 %v2933_v31, %v880_v18 }
 0x1e3   :  { %2143 = vmatpush1.bf16.msra.mxu1 %v2142_v44 }
 0x1e4   :  { %v869_v28 = vpop.permute.xlu0 %868  ;;  %v867_v23 = vpop.permute.xlu1 %866 }
 0x1e5   :  { %v881_v56 = vsel %vm534_vm14, %v863_v46, %v867_v23  ;;  %v878_v60 = vsel %vm534_vm14, %v865_v19, %v869_v28 }
 0x1e6   :  { %v888_v32 = vmul.f32 %v2933_v31, %v881_v56  ;;  %v885_v10 = vmul.f32 %v4782_v54, %v878_v60 }
 0x1e8   :  { %v873_v62 = vpop.permute.xlu0 %872  ;;  %v871_v6 = vpop.permute.xlu1 %870  ;;  %v2110_v43 = vpack.c.bf16 %v888_v32, %v884_v11 }
 0x1e9   :  { %v879_v51 = vsel %vm534_vm14, %v867_v23, %v871_v6  ;;  %v876_v39 = vsel %vm534_vm14, %v869_v28, %v873_v62  ;;  %v882_v33 = vsel %vm534_vm14, %v873_v62, %v861_v4  ;;  %v4784_v23 = vld [vmem:[#allocation33_spill] sm:$0xff]  ;;  %v4785_v62 = vld [vmem:[#allocation35_spill] sm:$0xff] }
 0x1ea   :  { %v889_v37 = vmul.f32 %v4782_v54, %v879_v51  ;;  %v886_v48 = vmul.f32 %v4762_v61, %v876_v39  ;;  %v887_v27 = vmul.f32 %v4783_v5, %v882_v33 }
 0x1ec   :  { %v893_v24 = vpop.permute.xlu0 %892  ;;  %v875_v17 = vpop.permute.xlu1 %874  ;;  %v2108_v8 = vpack.c.bf16 %v889_v37, %v885_v10 }
 0x1ed   :  { %v877_v36 = vsel %vm534_vm14, %v871_v6, %v875_v17  ;;  %v883_v57 = vsel %vm534_vm14, %v875_v17, %v863_v46 }
 0x1ee   :  { %v890_v26 = vmul.f32 %v4762_v61, %v877_v36  ;;  %v891_v52 = vmul.f32 %v4783_v5, %v883_v57  ;;  %2109 = vmatprep.subr.bf16.mxu0 %v2108_v8  ;;  %v4786_v36 = vld [vmem:[#allocation34_spill] sm:$0xff] }
 0x1ef   :  { %2111 = vmatpush1.bf16.msra.mxu0 %v2110_v43 }
 0x1f0   :  { %v897_v4 = vpop.permute.xlu0 %896  ;;  %v895_v9 = vpop.permute.xlu1 %894  ;;  %v2144_v59 = vpack.c.bf16 %v891_v52, %v887_v27  ;;  %v2146_v21 = vpack.c.bf16 %v890_v26, %v886_v48  ;;  %v928_v52 = vld [vmem:[#allocation2 + $0x38] sm:$0xff] }
 0x1f1   :  { %v912_v42 = vsel %vm591_vm2, %v893_v24, %v897_v4 }
 0x1f2   :  { %2145 = vmatprep.subr.bf16.mxu1 %v2144_v59  ;;  %v916_v32 = vmul.f32 %v4784_v23, %v912_v42 }
 0x1f3   :  { %2147 = vmatpush1.bf16.msra.mxu1 %v2146_v21 }
 0x1f4   :  { %v901_v15 = vpop.permute.xlu0 %900  ;;  %v899_v58 = vpop.permute.xlu1 %898 }
 0x1f5   :  { %v913_v19 = vsel %vm591_vm2, %v895_v9, %v899_v58  ;;  %v910_v46 = vsel %vm591_vm2, %v897_v4, %v901_v15  ;;  %v927_v4 = vld [vmem:[#allocation2 + $0x30] sm:$0xff] }
 0x1f6   :  { %v920_v56 = vmul.f32 %v4784_v23, %v913_v19  ;;  %v917_v18 = vmul.f32 %v4785_v62, %v910_v46 }
 0x1f8   :  { %v905_v44 = vpop.permute.xlu0 %904  ;;  %v903_v28 = vpop.permute.xlu1 %902  ;;  %v2114_v17 = vpack.c.bf16 %v920_v56, %v916_v32 }
 0x1f9   :  { %v911_v60 = vsel %vm591_vm2, %v899_v58, %v903_v28  ;;  %v908_v51 = vsel %vm591_vm2, %v901_v15, %v905_v44  ;;  %v914_v10 = vsel %vm591_vm2, %v905_v44, %v893_v24  ;;  %v925_v24 = vld [vmem:[#allocation2 + $0x20] sm:$0xff] }
 0x1fa   :  { %v921_v6 = vmul.f32 %v4785_v62, %v911_v60  ;;  %v918_v8 = vmul.f32 %v4767_v29, %v908_v51  ;;  %v919_v57 = vmul.f32 %v4786_v36, %v914_v10 }
 0x1fc   :  { %v907_v37 = vpop.permute.xlu1 %906  ;;  %v2112_v11 = vpack.c.bf16 %v921_v6, %v917_v18 }
 0x1fd   :  { %v909_v39 = vsel %vm591_vm2, %v903_v28, %v907_v37  ;;  %v915_v33 = vsel %vm591_vm2, %v907_v37, %v895_v9 }
 0x1fe   :  { %v922_v43 = vmul.f32 %v4767_v29, %v909_v39  ;;  %v923_v48 = vmul.f32 %v4786_v36, %v915_v33  ;;  %2113 = vmatprep.subr.bf16.mxu0 %v2112_v11 }
 0x1ff   :  { %2115 = vmatpush1.bf16.msra.mxu0 %v2114_v17 }
 0x200   :  { %v2148_v27 = vpack.c.bf16 %v923_v48, %v919_v57  ;;  %v2150_v26 = vpack.c.bf16 %v922_v43, %v918_v8 }
 0x202   :  { %1014 = vmatmul.mubr.f32.vlgmr.msra.gmra.mrb[0].mxu0 %v925_v24  ;;  %2149 = vmatprep.subr.bf16.mxu1 %v2148_v27 }
 0x203   :  { %2151 = vmatpush1.bf16.msra.mxu1 %v2150_v26  ;;  %2066 = vmatprep.mubr.msk.f32.mxu0 %vm942_vm0, %v928_v52 }
 0x206   :  { %1020 = vmatmul.mubr.f32.gmra.mrb[2].mxu0 %v927_v4  ;;  %1091 = vmatmul.mubr.f32.vlgmr.msra.gmra.mrb[0].mxu1 %v925_v24 }
 0x207   :  { %2068 = vmatprep.mubr.msk.f32.mxu1 %vm942_vm0, %v928_v52 }
 0x209   :  { %v935_v9 = vpop.permute.xlu0 %934 }
 0x20a   :  { %1097 = vmatmul.mubr.f32.gmra.mrb[2].mxu1 %v927_v4 }
 0x20d   :  { %v940_v58 = vpop.permute.xlu1 %939 }
 0x2d5   :  { %v1015_v59 = vpop.f32.mrb[0].mxu0 }
 0x2d6   :  { %v1016_v21 = vadd.f32 %v1015_v59, %v935_v9  ;;  %v1017_v15 = vpop.f32.mrb[1].mxu0 }
 0x2d7   :  { %v1018_v33 = vadd.f32 %v1017_v15, %v935_v9  ;;  %v2069_v15 = vld [vmem:[%s4556_s2 + $0x20] sm:$0xff] }
 0x2d8   :  { %v3596_v19 = vmax.f32 %v1016_v21, 0.0 }
 0x2d9   :  { %v1021_v46 = vpop.f32.mrb[2].mxu0  ;;  %v1092_v42 = vpop.f32.mrb[0].mxu1  ;;  %v3670_v17 = vmax.f32 %v1018_v33, 0.0 }
 0x2da   :  { %v1022_v44 = vadd.f32 %v1021_v46, %v940_v58  ;;  %v1093_v28 = vadd.f32 %v1092_v42, %v935_v9  ;;  %v1023_v56 = vpop.f32.mrb[3].mxu0  ;;  %v1094_v60 = vpop.f32.mrb[1].mxu1  ;;  %1111 = vrot.lane.b32.xlu0 %v3596_v19, %s2390_s27  ;;  %v2070_v42 = vld [vmem:[%s4556_s2 + $0x28] sm:$0xff] }
 0x2db   :  { %v1024_v8 = vadd.f32 %v1023_v56, %v940_v58  ;;  %v1095_v57 = vadd.f32 %v1094_v60, %v935_v9  ;;  %v1369_v9 = vld [vmem:[#allocation2 + $0x48] sm:$0xff] }
 0x2dc   :  { %v3600_v18 = vmax.f32 %v1022_v44, 0.0  ;;  %v3602_v6 = vmax.f32 %v1093_v28, 0.0  ;;  %2071 = vmatprep.mubr.msk.f32.mxu0 %vm942_vm0, %v1369_v9  ;;  %2073 = vmatprep.mubr.msk.f32.mxu1 %vm942_vm0, %v1369_v9 }
 0x2dd   :  { %v1098_v32 = vpop.f32.mrb[2].mxu1  ;;  %v3676_v43 = vmax.f32 %v1024_v8, 0.0  ;;  %v3678_v48 = vmax.f32 %v1095_v57, 0.0 }
 0x2de   :  { %4787 = vst [vmem:[#allocation21_spill] sm:$0xff] %v3602_v6  ;;  %v1099_v51 = vadd.f32 %v1098_v32, %v940_v58  ;;  %v1100_v10 = vpop.f32.mrb[3].mxu1  ;;  %1113 = vrot.lane.b32.xlu1 %v3600_v18, %s2390_s27  ;;  %1119 = vrot.lane.b32.xlu0 %v3602_v6, %s2390_s27 }
 0x2df   :  { %v1101_v24 = vadd.f32 %v1100_v10, %v940_v58 }
 0x2e0   :  { %v3610_v11 = vmax.f32 %v1099_v51, 0.0 }
 0x2e1   :  { %v3684_v27 = vmax.f32 %v1101_v24, 0.0 }
 0x2e2   :  { %4788 = vst [vmem:[#allocation20_spill] sm:$0xff] %v3610_v11  ;;  %1121 = vrot.lane.b32.xlu1 %v3610_v11, %s2390_s27  ;;  %1143 = vrot.lane.b32.xlu0 %v3596_v19, %s2387_s23 }
 0x2e6   :  { %1145 = vrot.lane.b32.xlu1 %v3600_v18, %s2387_s23  ;;  %1151 = vrot.lane.b32.xlu0 %v3602_v6, %s2387_s23 }
 0x2ea   :  { %1153 = vrot.lane.b32.xlu1 %v3610_v11, %s2387_s23  ;;  %1175 = vrot.lane.b32.xlu0 %v3596_v19, %s2393_s28 }
 0x2ee   :  { %1177 = vrot.lane.b32.xlu1 %v3600_v18, %s2393_s28  ;;  %1183 = vrot.lane.b32.xlu0 %v3602_v6, %s2393_s28 }
 0x2f2   :  { %1185 = vrot.lane.b32.xlu1 %v3610_v11, %s2393_s28  ;;  %1207 = vrot.lane.b32.xlu0 %v3596_v19, %s2395_s29 }
 0x2f6   :  { %1209 = vrot.lane.b32.xlu1 %v3600_v18, %s2395_s29  ;;  %1215 = vrot.lane.b32.xlu0 %v3602_v6, %s2395_s29 }
 0x2fa   :  { %1217 = vrot.lane.b32.xlu1 %v3610_v11, %s2395_s29  ;;  %1239 = vrot.lane.b32.xlu0 %v3596_v19, %s2397_s30 }
 0x2fe   :  { %1241 = vrot.lane.b32.xlu1 %v3600_v18, %s2397_s30  ;;  %1247 = vrot.lane.b32.xlu0 %v3602_v6, %s2397_s30 }
 0x302   :  { %1249 = vrot.lane.b32.xlu1 %v3610_v11, %s2397_s30  ;;  %1271 = vrot.lane.b32.xlu0 %v3596_v19, %s2399_s4 }
 0x306   :  { %1273 = vrot.lane.b32.xlu1 %v3600_v18, %s2399_s4  ;;  %1279 = vrot.lane.b32.xlu0 %v3602_v6, %s2399_s4 }
 0x30a   :  { %1281 = vrot.lane.b32.xlu1 %v3610_v11, %s2399_s4  ;;  %1303 = vrot.lane.b32.xlu0 %v3596_v19, %s2401_s5 }
 0x30e   :  { %1305 = vrot.lane.b32.xlu1 %v3600_v18, %s2401_s5  ;;  %1311 = vrot.lane.b32.xlu0 %v3602_v6, %s2401_s5 }
 0x312   :  { %1313 = vrot.lane.b32.xlu1 %v3610_v11, %s2401_s5  ;;  %1335 = vrot.lane.b32.xlu0 %v3596_v19, %s2403_s6 }
 0x316   :  { %1337 = vrot.lane.b32.xlu1 %v3600_v18, %s2403_s6  ;;  %1343 = vrot.lane.b32.xlu0 %v3602_v6, %s2403_s6 }
 0x31a   :  { %1345 = vrot.lane.b32.xlu1 %v3610_v11, %s2403_s6  ;;  %1115 = vrot.lane.b32.xlu0 %v3670_v17, %s2390_s27 }
 0x31e   :  { %1117 = vrot.lane.b32.xlu1 %v3676_v43, %s2390_s27  ;;  %1123 = vrot.lane.b32.xlu0 %v3678_v48, %s2390_s27 }
 0x322   :  { %1125 = vrot.lane.b32.xlu1 %v3684_v27, %s2390_s27  ;;  %1147 = vrot.lane.b32.xlu0 %v3670_v17, %s2387_s23 }
 0x326   :  { %1149 = vrot.lane.b32.xlu1 %v3676_v43, %s2387_s23  ;;  %1155 = vrot.lane.b32.xlu0 %v3678_v48, %s2387_s23 }
 0x32a   :  { %1157 = vrot.lane.b32.xlu1 %v3684_v27, %s2387_s23  ;;  %1179 = vrot.lane.b32.xlu0 %v3670_v17, %s2393_s28 }
 0x32e   :  { %1181 = vrot.lane.b32.xlu1 %v3676_v43, %s2393_s28  ;;  %1187 = vrot.lane.b32.xlu0 %v3678_v48, %s2393_s28 }
 0x332   :  { %1189 = vrot.lane.b32.xlu1 %v3684_v27, %s2393_s28  ;;  %1211 = vrot.lane.b32.xlu0 %v3670_v17, %s2395_s29 }
 0x336   :  { %1213 = vrot.lane.b32.xlu1 %v3676_v43, %s2395_s29  ;;  %1219 = vrot.lane.b32.xlu0 %v3678_v48, %s2395_s29 }
 0x33a   :  { %1221 = vrot.lane.b32.xlu1 %v3684_v27, %s2395_s29  ;;  %1243 = vrot.lane.b32.xlu0 %v3670_v17, %s2397_s30 }
 0x33e   :  { %1245 = vrot.lane.b32.xlu1 %v3676_v43, %s2397_s30  ;;  %1251 = vrot.lane.b32.xlu0 %v3678_v48, %s2397_s30 }
 0x342   :  { %1253 = vrot.lane.b32.xlu1 %v3684_v27, %s2397_s30  ;;  %1275 = vrot.lane.b32.xlu0 %v3670_v17, %s2399_s4 }
 0x346   :  { %1277 = vrot.lane.b32.xlu1 %v3676_v43, %s2399_s4  ;;  %1283 = vrot.lane.b32.xlu0 %v3678_v48, %s2399_s4 }
 0x34a   :  { %1285 = vrot.lane.b32.xlu1 %v3684_v27, %s2399_s4  ;;  %1307 = vrot.lane.b32.xlu0 %v3670_v17, %s2401_s5 }
 0x34c   :  { %v1112_v26 = vpop.permute.xlu0 %1111 }
 0x34e   :  { %1309 = vrot.lane.b32.xlu1 %v3676_v43, %s2401_s5  ;;  %1315 = vrot.lane.b32.xlu0 %v3678_v48, %s2401_s5 }
 0x350   :  { %v1114_v52 = vpop.permute.xlu1 %1113  ;;  %v1120_v4 = vpop.permute.xlu0 %1119 }
 0x352   :  { %1317 = vrot.lane.b32.xlu1 %v3684_v27, %s2401_s5  ;;  %1339 = vrot.lane.b32.xlu0 %v3670_v17, %s2403_s6 }
 0x354   :  { %v1122_v59 = vpop.permute.xlu1 %1121  ;;  %v3740_v21 = vpop.permute.xlu0 %1143 }
 0x356   :  { %1341 = vrot.lane.b32.xlu1 %v3676_v43, %s2403_s6  ;;  %1347 = vrot.lane.b32.xlu0 %v3678_v48, %s2403_s6 }
 0x358   :  { %v3749_v58 = vpop.permute.xlu1 %1145  ;;  %v3751_v46 = vpop.permute.xlu0 %1151 }
 0x35a   :  { %1349 = vrot.lane.b32.xlu1 %v3684_v27, %s2403_s6  ;;  %1377 = vperm.xlu0 %2335, %v2069_v15  }
 0x35c   :  { %v3758_v44 = vpop.permute.xlu1 %1153  ;;  %v3760_v28 = vpop.permute.xlu0 %1175 }
 0x35e   :  { %1382 = vperm.xlu1 %2334, %v2070_v42  }
 0x360   :  { %v3762_v56 = vpop.permute.xlu1 %1177  ;;  %v3764_v60 = vpop.permute.xlu0 %1183 }
 0x364   :  { %v3766_v32 = vpop.permute.xlu1 %1185  ;;  %v3768_v51 = vpop.permute.xlu0 %1207 }
 0x368   :  { %v3770_v10 = vpop.permute.xlu1 %1209  ;;  %v3772_v33 = vpop.permute.xlu0 %1215 }
 0x36c   :  { %v3774_v8 = vpop.permute.xlu1 %1217  ;;  %v3776_v57 = vpop.permute.xlu0 %1239 }
 0x370   :  { %v3778_v24 = vpop.permute.xlu1 %1241  ;;  %v3780_v9 = vpop.permute.xlu0 %1247 }
 0x374   :  { %v3782_v15 = vpop.permute.xlu1 %1249  ;;  %v3784_v42 = vpop.permute.xlu0 %1271 }
 0x378   :  { %v3786_v39 = vpop.permute.xlu1 %1273  ;;  %v3788_v37 = vpop.permute.xlu0 %1279 }
 0x379   :  { %4789 = vst [vmem:[#allocation9_spill] sm:$0xff] %v3786_v39 }
 0x37c   :  { %v3790_v36 = vpop.permute.xlu1 %1281  ;;  %v3792_v29 = vpop.permute.xlu0 %1303 }
 0x37d   :  { %4790 = vst [vmem:[#allocation10_spill] sm:$0xff] %v3790_v36  ;;  %4791 = vst [vmem:[#allocation22_spill] sm:$0xff] %v3792_v29 }
 0x380   :  { %v3794_v62 = vpop.permute.xlu1 %1305  ;;  %v3796_v23 = vpop.permute.xlu0 %1311 }
 0x381   :  { %4792 = vst [vmem:[#allocation23_spill] sm:$0xff] %v3794_v62  ;;  %4793 = vst [vmem:[#allocation24_spill] sm:$0xff] %v3796_v23 }
 0x384   :  { %v3798_v5 = vpop.permute.xlu1 %1313  ;;  %v3800_v61 = vpop.permute.xlu0 %1335 }
 0x385   :  { %4794 = vst [vmem:[#allocation19_spill] sm:$0xff] %v3798_v5  ;;  %4795 = vst [vmem:[#allocation14_spill] sm:$0xff] %v3800_v61 }
 0x388   :  { %v3802_v54 = vpop.permute.xlu1 %1337  ;;  %v3804_v31 = vpop.permute.xlu0 %1343 }
 0x389   :  { %4796 = vst [vmem:[#allocation37_spill] sm:$0xff] %v3802_v54  ;;  %4797 = vst [vmem:[#allocation13_spill] sm:$0xff] %v3804_v31 }
 0x38c   :  { %v3806_v55 = vpop.permute.xlu1 %1345  ;;  %v1116_v30 = vpop.permute.xlu0 %1115 }
 0x38d   :  { %4798 = vst [vmem:[#allocation12_spill] sm:$0xff] %v3806_v55  ;;  %v1131_v20 = vsel %vm192_vm1, %v1112_v26, %v1116_v30  ;;  %v1129_v6 = vsel %vm192_vm1, %v1116_v30, %v1120_v4 }
 0x38e   :  { %v1136_v23 = vmul.f32 %v4768_v41, %v1131_v20 }
 0x390   :  { %v1118_v2 = vpop.permute.xlu1 %1117  ;;  %v1124_v29 = vpop.permute.xlu0 %1123 }
 0x391   :  { %v1132_v62 = vsel %vm192_vm1, %v1114_v52, %v1118_v2  ;;  %v1130_v61 = vsel %vm192_vm1, %v1118_v2, %v1122_v59  ;;  %v1127_v31 = vsel %vm192_vm1, %v1120_v4, %v1124_v29  ;;  %v1133_v55 = vsel %vm192_vm1, %v1124_v29, %v1112_v26 }
 0x392   :  { %v1140_v54 = vmul.f32 %v4768_v41, %v1132_v62  ;;  %v1141_v11 = vmul.f32 %v4769_v25, %v1130_v61  ;;  %v1135_v62 = vmul.f32 %v4770_v34, %v1133_v55  ;;  %v1138_v41 = vmul.f32 %v4771_v14, %v1127_v31 }
 0x393   :  { %v1137_v61 = vmul.f32 %v4769_v25, %v1129_v6 }
 0x394   :  { %v1126_v5 = vpop.permute.xlu1 %1125  ;;  %v1148_v39 = vpop.permute.xlu0 %1147  ;;  %v2152_v36 = vpack.c.bf16 %v1140_v54, %v1136_v23 }
 0x395   :  { %v1128_v20 = vsel %vm192_vm1, %v1122_v59, %v1126_v5  ;;  %v1134_v2 = vsel %vm192_vm1, %v1126_v5, %v1114_v52  ;;  %v1163_v30 = vsel %vm4799_vm5, %v3740_v21, %v1148_v39  ;;  %v2190_v31 = vpack.c.bf16 %v1141_v11, %v1137_v61  ;;  %vm4846_vm5 = vmmov %vm4749_vm3 }
 0x396   :  { %v1139_v29 = vmul.f32 %v4770_v34, %v1134_v2  ;;  %v1142_v26 = vmul.f32 %v4771_v14, %v1128_v20  ;;  %2153 = vmatprep.subr.bf16.mxu0 %v2152_v36  ;;  %v1168_v5 = vmul.f32 %v4774_v40, %v1163_v30 }
 0x398   :  { %v2154_v54 = vpack.c.bf16 %v1139_v29, %v1135_v62  ;;  %v1150_v23 = vpop.permute.xlu1 %1149  ;;  %v1156_v4 = vpop.permute.xlu0 %1155  ;;  %v2188_v59 = vpack.c.bf16 %v1142_v26, %v1138_v41  ;;  %v1161_v62 = vsel %vm4804_vm12, %v1148_v39, %v3751_v46 }
 0x399   :  { %v1164_v55 = vsel %vm4800_vm13, %v3749_v58, %v1150_v23  ;;  %v1162_v36 = vsel %vm4801_vm9, %v1150_v23, %v3758_v44  ;;  %v1159_v6 = vsel %vm4802_vm10, %v3751_v46, %v1156_v4  ;;  %v1165_v41 = vsel %vm4803_vm15, %v1156_v4, %v3740_v21  ;;  %vm4847_vm13 = vmmov %vm4749_vm3 }
 0x39a   :  { %v1172_v52 = vmul.f32 %v4774_v40, %v1164_v55  ;;  %2155 = vmatpush1.bf16.msra.mxu0 %v2154_v54  ;;  %2189 = vmatprep.subr.bf16.mxu1 %v2188_v59  ;;  %v1173_v29 = vmul.f32 %v4779_v63, %v1162_v36  ;;  %v1167_v21 = vmul.f32 %v4781_v13, %v1165_v41 }
 0x39b   :  { %2191 = vmatpush1.bf16.msra.mxu1 %v2190_v31  ;;  %v1170_v61 = vmul.f32 %v2782_v7, %v1159_v6  ;;  %v1169_v46 = vmul.f32 %v4779_v63, %v1161_v62 }
 0x39c   :  { %v1158_v11 = vpop.permute.xlu1 %1157  ;;  %v1180_v20 = vpop.permute.xlu0 %1179  ;;  %v2156_v2 = vpack.c.bf16 %v1172_v52, %v1168_v5 }
 0x39d   :  { %v1160_v26 = vsel %vm4749_vm3, %v3758_v44, %v1158_v11  ;;  %v1166_v30 = vsel %vm4805_vm4, %v1158_v11, %v3749_v58  ;;  %v1195_v39 = vsel %vm306_vm7, %v3760_v28, %v1180_v20  ;;  %v2194_v31 = vpack.c.bf16 %v1173_v29, %v1169_v46 }
 0x39e   :  { %v1171_v54 = vmul.f32 %v4781_v13, %v1166_v30  ;;  %v1174_v23 = vmul.f32 %v2782_v7, %v1160_v26  ;;  %2157 = vmatprep.subr.bf16.mxu0 %v2156_v2  ;;  %v1200_v5 = vmul.f32 %v2795_v16, %v1195_v39  ;;  %v1193_v29 = vsel %vm306_vm7, %v1180_v20, %v3764_v60 }
 0x39f   :  { %v1201_v20 = vmul.f32 %v2800_v0, %v1193_v29 }
 0x3a0   :  { %v2158_v44 = vpack.c.bf16 %v1171_v54, %v1167_v21  ;;  %v1182_v4 = vpop.permute.xlu1 %1181  ;;  %v1188_v59 = vpop.permute.xlu0 %1187  ;;  %v2192_v55 = vpack.c.bf16 %v1174_v23, %v1170_v61 }
 0x3a1   :  { %v1196_v58 = vsel %vm306_vm7, %v3762_v56, %v1182_v4  ;;  %v1194_v36 = vsel %vm306_vm7, %v1182_v4, %v3766_v32  ;;  %v1191_v6 = vsel %vm306_vm7, %v3764_v60, %v1188_v59  ;;  %v1197_v41 = vsel %vm306_vm7, %v1188_v59, %v3760_v28 }
 0x3a2   :  { %v1204_v52 = vmul.f32 %v2795_v16, %v1196_v58  ;;  %2159 = vmatpush1.bf16.msra.mxu0 %v2158_v44  ;;  %2193 = vmatprep.subr.bf16.mxu1 %v2192_v55  ;;  %v1205_v26 = vmul.f32 %v2800_v0, %v1194_v36  ;;  %v1199_v28 = vmul.f32 %v2805_v3, %v1197_v41 }
 0x3a3   :  { %2195 = vmatpush1.bf16.msra.mxu1 %v2194_v31  ;;  %v1202_v61 = vmul.f32 %v2810_v49, %v1191_v6 }
 0x3a4   :  { %v1190_v11 = vpop.permute.xlu1 %1189  ;;  %v1212_v2 = vpop.permute.xlu0 %1211  ;;  %v2160_v62 = vpack.c.bf16 %v1204_v52, %v1200_v5  ;;  %v2198_v4 = vpack.c.bf16 %v1205_v26, %v1201_v20 }
 0x3a5   :  { %v1192_v30 = vsel %vm306_vm7, %v3766_v32, %v1190_v11  ;;  %v1198_v21 = vsel %vm306_vm7, %v1190_v11, %v3762_v56  ;;  %v1227_v60 = vsel %vm363_vm6, %v3768_v51, %v1212_v2  ;;  %v1225_v41 = vsel %vm363_vm6, %v1212_v2, %v3772_v33 }
 0x3a6   :  { %v1203_v54 = vmul.f32 %v2805_v3, %v1198_v21  ;;  %v1206_v23 = vmul.f32 %v2810_v49, %v1192_v30  ;;  %2161 = vmatprep.subr.bf16.mxu0 %v2160_v62  ;;  %v1232_v59 = vmul.f32 %v2830_v22, %v1227_v60  ;;  %v1233_v2 = vmul.f32 %v2840_v1, %v1225_v41  ;;  %v4807_v41 = vld [vmem:[#allocation20_spill] sm:$0xff] }
 0x3a7   :  { %v2168_v60 = vpack.c.bf16 %v3676_v43, %v3670_v17  ;;  %v2204_v17 = vpack.c.bf16 %v3684_v27, %v3678_v48 }
 0x3a8   :  { %v2162_v32 = vpack.c.bf16 %v1203_v54, %v1199_v28  ;;  %v1214_v39 = vpop.permute.xlu1 %1213  ;;  %v1220_v46 = vpop.permute.xlu0 %1219  ;;  %v2196_v44 = vpack.c.bf16 %v1206_v23, %v1202_v61 }
 0x3a9   :  { %v1228_v56 = vsel %vm363_vm6, %v3770_v10, %v1214_v39  ;;  %v1226_v55 = vsel %vm363_vm6, %v1214_v39, %v3774_v8  ;;  %v1223_v31 = vsel %vm363_vm6, %v3772_v33, %v1220_v46  ;;  %v1229_v5 = vsel %vm363_vm6, %v1220_v46, %v3768_v51 }
 0x3aa   :  { %v1236_v58 = vmul.f32 %v2830_v22, %v1228_v56  ;;  %2163 = vmatpush1.bf16.msra.mxu0 %v2162_v32  ;;  %2197 = vmatprep.subr.bf16.mxu1 %v2196_v44  ;;  %v1237_v11 = vmul.f32 %v2840_v1, %v1226_v55  ;;  %v1231_v51 = vmul.f32 %v2835_v47, %v1229_v5 }
 0x3ab   :  { %2199 = vmatpush1.bf16.msra.mxu1 %v2198_v4  ;;  %v1234_v26 = vmul.f32 %v2858_v50, %v1223_v31 }
 0x3ac   :  { %v1222_v36 = vpop.permute.xlu1 %1221  ;;  %v1244_v52 = vpop.permute.xlu0 %1243  ;;  %v2164_v6 = vpack.c.bf16 %v1236_v58, %v1232_v59  ;;  %v2202_v20 = vpack.c.bf16 %v1237_v11, %v1233_v2  ;;  %v4808_v11 = vld [vmem:[#allocation21_spill] sm:$0xff] }
 0x3ad   :  { %v1224_v62 = vsel %vm363_vm6, %v3774_v8, %v1222_v36  ;;  %v1230_v29 = vsel %vm363_vm6, %v1222_v36, %v3770_v10  ;;  %v1257_v33 = vsel %vm420_vm11, %v1244_v52, %v3780_v9  ;;  %v1259_v32 = vsel %vm420_vm11, %v3776_v57, %v1244_v52 }
 0x3ae   :  { %v1235_v30 = vmul.f32 %v2835_v47, %v1230_v29  ;;  %v1238_v21 = vmul.f32 %v2858_v50, %v1224_v62  ;;  %2165 = vmatprep.subr.bf16.mxu0 %v2164_v6  ;;  %v1264_v39 = vmul.f32 %v4755_v12, %v1257_v33  ;;  %v1263_v58 = vmul.f32 %v4752_v35, %v1259_v32  ;;  %v4812_v33 = vld [vmem:[#allocation25_spill] sm:$0xff] }
 0x3af   :  { %v4806_v36 = vpack.c.bf16 %v3600_v18, %v3596_v19  ;;  %v4809_v62 = vpack.c.bf16 %v4807_v41, %v4808_v11  ;;  %v4810_v19 = vld [vmem:[#allocation10_spill] sm:$0xff] }
 0x3b0   :  { %v2166_v8 = vpack.c.bf16 %v1235_v30, %v1231_v51  ;;  %v1246_v28 = vpop.permute.xlu1 %1245  ;;  %v1252_v61 = vpop.permute.xlu0 %1251  ;;  %v2200_v54 = vpack.c.bf16 %v1238_v21, %v1234_v26  ;;  %v4811_v30 = vld [vmem:[#allocation9_spill] sm:$0xff]  ;;  %v4821_v41 = vld [vmem:[#allocation30_spill] sm:$0xff] }
 0x3b1   :  { %v1258_v10 = vsel %vm420_vm11, %v1246_v28, %v3782_v15  ;;  %v1260_v23 = vsel %vm420_vm11, %v3778_v24, %v1246_v28  ;;  %v1255_v44 = vsel %vm420_vm11, %v3780_v9, %v1252_v61  ;;  %v1261_v56 = vsel %vm420_vm11, %v1252_v61, %v3776_v57 }
 0x3b2   :  { %v1268_v46 = vmul.f32 %v4755_v12, %v1258_v10  ;;  %2167 = vmatpush1.bf16.msra.mxu0 %v2166_v8  ;;  %2201 = vmatprep.subr.bf16.mxu1 %v2200_v54  ;;  %v1267_v43 = vmul.f32 %v4752_v35, %v1260_v23  ;;  %v1265_v31 = vmul.f32 %v4756_v45, %v1255_v44  ;;  %v4813_v8 = vld [vmem:[#allocation27_spill] sm:$0xff] }
 0x3b3   :  { %2169 = vmatprep.subr.bf16.mxu0 %v2168_v60  ;;  %2203 = vmatpush1.bf16.msra.mxu1 %v2202_v20  ;;  %v1266_v48 = vmul.f32 %v4757_v53, %v1261_v56  ;;  %v4814_v56 = vld [vmem:[#allocation28_spill] sm:$0xff] }
 0x3b4   :  { %v1254_v4 = vpop.permute.xlu1 %1253  ;;  %v1276_v59 = vpop.permute.xlu0 %1275  ;;  %v2172_v55 = vpack.c.bf16 %v1268_v46, %v1264_v39  ;;  %2205 = vmatprep.subr.bf16.mxu1 %v2204_v17  ;;  %v2174_v52 = vpack.c.bf16 %v1267_v43, %v1263_v58  ;;  %v4815_v17 = vld [vmem:[#allocation26_spill] sm:$0xff] }
 0x3b5   :  { %v1256_v9 = vsel %vm420_vm11, %v3782_v15, %v1254_v4  ;;  %v1262_v57 = vsel %vm420_vm11, %v1254_v4, %v3778_v24  ;;  %v1289_v15 = vsel %vm477_vm8, %v1276_v59, %v3788_v37  ;;  %v1291_v24 = vsel %vm477_vm8, %v3784_v42, %v1276_v59  ;;  %v4816_v59 = vld [vmem:[#allocation24_spill] sm:$0xff]  ;;  %v4817_v58 = vld [vmem:[#allocation22_spill] sm:$0xff] }
 0x3b6   :  { %v1269_v27 = vmul.f32 %v4756_v45, %v1256_v9  ;;  %v1270_v5 = vmul.f32 %v4757_v53, %v1262_v57  ;;  %2171 = vmatpush1.bf16.msra.mxu0 %v4806_v36  ;;  %v1295_v2 = vmul.f32 %v4812_v33, %v1291_v24  ;;  %v1296_v28 = vmul.f32 %v4813_v8, %v1289_v15  ;;  %v4819_v15 = vld [vmem:[#allocation23_spill] sm:$0xff] }
 0x3b7   :  { %2173 = vmatprep.subr.bf16.mxu0 %v2172_v55  ;;  %2207 = vmatpush1.bf16.msra.mxu1 %v4809_v62 }
 0x3b8   :  { %v2210_v6 = vpack.c.bf16 %v1269_v27, %v1265_v31  ;;  %v1278_v29 = vpop.permute.xlu1 %1277  ;;  %v1284_v51 = vpop.permute.xlu0 %1283  ;;  %v2208_v26 = vpack.c.bf16 %v1270_v5, %v1266_v48  ;;  %v4818_v5 = vld [vmem:[#allocation19_spill] sm:$0xff] }
 0x3b9   :  { %v1290_v18 = vsel %vm477_vm8, %v1278_v29, %v4810_v19  ;;  %v1292_v21 = vsel %vm477_vm8, %v4811_v30, %v1278_v29  ;;  %v1287_v10 = vsel %vm477_vm8, %v3788_v37, %v1284_v51  ;;  %v1293_v23 = vsel %vm477_vm8, %v1284_v51, %v3784_v42 }
 0x3ba   :  { %v1299_v61 = vmul.f32 %v4812_v33, %v1292_v21  ;;  %v1300_v54 = vmul.f32 %v4813_v8, %v1290_v18  ;;  %2175 = vmatpush1.bf16.msra.mxu0 %v2174_v52  ;;  %2209 = vmatprep.subr.bf16.mxu1 %v2208_v26  ;;  %v1297_v37 = vmul.f32 %v4814_v56, %v1287_v10  ;;  %v4820_v52 = vld [vmem:[#allocation29_spill] sm:$0xff]  ;;  %v4823_v10 = vld [vmem:[#allocation32_spill] sm:$0xff] }
 0x3bb   :  { %2211 = vmatpush1.bf16.msra.mxu1 %v2210_v6  ;;  %v1298_v43 = vmul.f32 %v4815_v17, %v1293_v23 }
 0x3bc   :  { %v2178_v60 = vpack.c.bf16 %v1299_v61, %v1295_v2  ;;  %v1286_v20 = vpop.permute.xlu1 %1285  ;;  %v1308_v32 = vpop.permute.xlu0 %1307  ;;  %v2176_v39 = vpack.c.bf16 %v1300_v54, %v1296_v28  ;;  %v4822_v61 = vld [vmem:[#allocation31_spill] sm:$0xff] }
 0x3bd   :  { %v1288_v46 = vsel %vm477_vm8, %v4810_v19, %v1286_v20  ;;  %v1294_v44 = vsel %vm477_vm8, %v1286_v20, %v4811_v30  ;;  %v1321_v55 = vsel %vm534_vm14, %v1308_v32, %v4816_v59  ;;  %v1323_v9 = vsel %vm534_vm14, %v4817_v58, %v1308_v32  ;;  %v4824_v32 = vld [vmem:[#allocation13_spill] sm:$0xff] }
 0x3be   :  { %v1301_v42 = vmul.f32 %v4814_v56, %v1288_v46  ;;  %v1302_v4 = vmul.f32 %v4815_v17, %v1294_v44  ;;  %2177 = vmatprep.subr.bf16.mxu0 %v2176_v39  ;;  %v1327_v6 = vmul.f32 %v4820_v52, %v1323_v9  ;;  %v1328_v11 = vmul.f32 %v4821_v41, %v1321_v55  ;;  %v4825_v46 = vld [vmem:[#allocation14_spill] sm:$0xff] }
 0x3bf   :  { %2179 = vmatpush1.bf16.msra.mxu0 %v2178_v60 }
 0x3c0   :  { %v2214_v57 = vpack.c.bf16 %v1301_v42, %v1297_v37  ;;  %v1310_v31 = vpop.permute.xlu1 %1309  ;;  %v1316_v48 = vpop.permute.xlu0 %1315  ;;  %v2212_v27 = vpack.c.bf16 %v1302_v4, %v1298_v43 }
 0x3c1   :  { %v1322_v36 = vsel %vm534_vm14, %v1310_v31, %v4818_v5  ;;  %v1324_v24 = vsel %vm534_vm14, %v4819_v15, %v1310_v31  ;;  %v1319_v51 = vsel %vm534_vm14, %v4816_v59, %v1316_v48  ;;  %v1325_v26 = vsel %vm534_vm14, %v1316_v48, %v4817_v58  ;;  %v4826_v59 = vld [vmem:[#allocation12_spill] sm:$0xff]  ;;  %v4827_v58 = vld [vmem:[#allocation37_spill] sm:$0xff]  ;;  %v4829_v48 = vld [vmem:[#allocation35_spill] sm:$0xff] }
 0x3c2   :  { %v1331_v62 = vmul.f32 %v4820_v52, %v1324_v24  ;;  %v1332_v29 = vmul.f32 %v4821_v41, %v1322_v36  ;;  %2213 = vmatprep.subr.bf16.mxu1 %v2212_v27  ;;  %v1329_v54 = vmul.f32 %v4822_v61, %v1319_v51  ;;  %v1330_v23 = vmul.f32 %v4823_v10, %v1325_v26  ;;  %v4830_v26 = vld [vmem:[#allocation36_spill] sm:$0xff] }
 0x3c3   :  { %2215 = vmatpush1.bf16.msra.mxu1 %v2214_v57  ;;  %v4828_v57 = vld [vmem:[#allocation33_spill] sm:$0xff] }
 0x3c4   :  { %v2182_v19 = vpack.c.bf16 %v1331_v62, %v1327_v6  ;;  %v1318_v18 = vpop.permute.xlu1 %1317  ;;  %v1340_v30 = vpop.permute.xlu0 %1339  ;;  %v2180_v21 = vpack.c.bf16 %v1332_v29, %v1328_v11 }
 0x3c5   :  { %v1320_v2 = vsel %vm534_vm14, %v4818_v5, %v1318_v18  ;;  %v1326_v28 = vsel %vm534_vm14, %v1318_v18, %v4819_v15  ;;  %v1353_v39 = vsel %vm591_vm2, %v1340_v30, %v4824_v32  ;;  %v1355_v44 = vsel %vm591_vm2, %v4825_v46, %v1340_v30  ;;  %v4831_v18 = vld [vmem:[#allocation34_spill] sm:$0xff] }
 0x3c6   :  { %v1333_v60 = vmul.f32 %v4822_v61, %v1320_v2  ;;  %v1334_v20 = vmul.f32 %v4823_v10, %v1326_v28  ;;  %2181 = vmatprep.subr.bf16.mxu0 %v2180_v21  ;;  %v1359_v31 = vmul.f32 %v4828_v57, %v1355_v44  ;;  %v1360_v27 = vmul.f32 %v4829_v48, %v1353_v39  ;;  %v1368_v28 = vld [vmem:[#allocation2 + $0x40] sm:$0xff] }
 0x3c7   :  { %2183 = vmatpush1.bf16.msra.mxu0 %v2182_v19 }
 0x3c8   :  { %v2218_v37 = vpack.c.bf16 %v1333_v60, %v1329_v54  ;;  %v1342_v43 = vpop.permute.xlu1 %1341  ;;  %v1348_v42 = vpop.permute.xlu0 %1347  ;;  %v2216_v4 = vpack.c.bf16 %v1334_v20, %v1330_v23  ;;  %v1371_v60 = vld [vmem:[#allocation2 + $0x58] sm:$0xff]  ;;  %v1370_v20 = vld [vmem:[#allocation2 + $0x50] sm:$0xff] }
 0x3c9   :  { %v1354_v55 = vsel %vm591_vm2, %v1342_v43, %v4826_v59  ;;  %v1356_v9 = vsel %vm591_vm2, %v4827_v58, %v1342_v43  ;;  %v1351_v15 = vsel %vm591_vm2, %v4824_v32, %v1348_v42  ;;  %v1357_v24 = vsel %vm591_vm2, %v1348_v42, %v4825_v46 }
 0x3ca   :  { %v1363_v5 = vmul.f32 %v4828_v57, %v1356_v9  ;;  %v1364_v36 = vmul.f32 %v4829_v48, %v1354_v55  ;;  %2217 = vmatprep.subr.bf16.mxu1 %v2216_v4  ;;  %v1361_v19 = vmul.f32 %v4830_v26, %v1351_v15  ;;  %v1362_v30 = vmul.f32 %v4831_v18, %v1357_v24 }
 0x3cb   :  { %2219 = vmatpush1.bf16.msra.mxu1 %v2218_v37 }
 0x3cc   :  { %v2186_v6 = vpack.c.bf16 %v1363_v5, %v1359_v31  ;;  %v1350_v11 = vpop.permute.xlu1 %1349  ;;  %v2184_v62 = vpack.c.bf16 %v1364_v36, %v1360_v27 }
 0x3cd   :  { %v1352_v29 = vsel %vm591_vm2, %v4826_v59, %v1350_v11  ;;  %v1358_v51 = vsel %vm591_vm2, %v1350_v11, %v4827_v58 }
 0x3ce   :  { %v1365_v21 = vmul.f32 %v4830_v26, %v1352_v29  ;;  %v1366_v2 = vmul.f32 %v4831_v18, %v1358_v51  ;;  %2185 = vmatprep.subr.bf16.mxu0 %v2184_v62 }
 0x3cf   :  { %2187 = vmatpush1.bf16.msra.mxu0 %v2186_v6 }
 0x3d0   :  { %v2222_v54 = vpack.c.bf16 %v1365_v21, %v1361_v19  ;;  %v2220_v23 = vpack.c.bf16 %v1366_v2, %v1362_v30 }
 0x3d2   :  { %1456 = vmatmul.mubr.f32.vlgmr.msra.gmra.mrb[4].mxu0 %v1368_v28  ;;  %2221 = vmatprep.subr.bf16.mxu1 %v2220_v23 }
 0x3d3   :  { %2223 = vmatpush1.bf16.msra.mxu1 %v2222_v54  ;;  %2072 = vmatprep.mubr.msk.f32.mxu0 %vm942_vm0, %v1371_v60 }
 0x3d6   :  { %1462 = vmatmul.mubr.f32.gmra.mrb[6].mxu0 %v1370_v20  ;;  %1533 = vmatmul.mubr.f32.vlgmr.msra.gmra.mrb[4].mxu1 %v1368_v28 }
 0x3d7   :  { %2074 = vmatprep.mubr.msk.f32.mxu1 %vm942_vm0, %v1371_v60 }
 0x3d9   :  { %v1378_v32 = vpop.permute.xlu0 %1377 }
 0x3da   :  { %1539 = vmatmul.mubr.f32.gmra.mrb[6].mxu1 %v1370_v20  ;;  %v1811_v20 = vld [vmem:[#allocation2 + $0x68] sm:$0xff] }
 0x3db   :  { %2075 = vmatprep.mubr.msk.f32.mxu0 %vm942_vm0, %v1811_v20  ;;  %2077 = vmatprep.mubr.msk.f32.mxu1 %vm942_vm0, %v1811_v20 }
 0x3dd   :  { %v1383_v37 = vpop.permute.xlu1 %1382 }
 0x4a5   :  { %v1457_v39 = vpop.f32.mrb[4].mxu0 }
 0x4a6   :  { %v1458_v46 = vadd.f32 %v1457_v39, %v1378_v32  ;;  %v1459_v44 = vpop.f32.mrb[5].mxu0 }
 0x4a7   :  { %v1460_v62 = vadd.f32 %v1459_v44, %v1378_v32 }
 0x4a8   :  { %v4068_v43 = vmax.f32 %v1458_v46, 0.0  ;;  %v2079_v46 = vld [vmem:[%s4556_s2 + $0x30] sm:$0x1]  ;;  %s2406_s2 = smov [#allocation5]  }
 0x4a9   :  { %v1463_v42 = vpop.f32.mrb[6].mxu0  ;;  %v1534_v4 = vpop.f32.mrb[4].mxu1  ;;  %v4142_v29 = vmax.f32 %v1460_v62, 0.0  ;;  %s2022_s21 = sshll.u32 %s2406_s2, 4  ;;  %s2023_s21 = int_to_ptr.vmem [resolvable:$true] %s2022_s21 }
 0x4aa   :  { %v1464_v59 = vadd.f32 %v1463_v42, %v1383_v37  ;;  %v1535_v55 = vadd.f32 %v1534_v4, %v1378_v32  ;;  %v1465_v58 = vpop.f32.mrb[7].mxu0  ;;  %v1536_v9 = vpop.f32.mrb[5].mxu1  ;;  %1553 = vrot.lane.b32.xlu0 %v4068_v43, %s2390_s27  ;;  %s2359_s24 = scalar_lea.vmem %s2023_s21, 64  ;;  %p2364_p9 = scmp.lt.s32.totalorder %s2023_s21, %s2023_s21 }
 0x4ab   :  { %v1466_v51 = vadd.f32 %v1465_v58, %v1383_v37  ;;  %v1537_v19 = vadd.f32 %v1536_v9, %v1378_v32  ;;  %p2360_p8 = scmp.ne.s32.totalorder %s2023_s21, %s2359_s24  ;;  %p2365_p10 = scmp.lt.s32.totalorder %s2359_s24, %s2359_s24 }
 0x4ac   :  { %v4072_v31 = vmax.f32 %v1464_v59, 0.0  ;;  %v4074_v27 = vmax.f32 %v1535_v55, 0.0 }
 0x4ad   :  { %v1540_v5 = vpop.f32.mrb[6].mxu1  ;;  %v4148_v30 = vmax.f32 %v1466_v51, 0.0  ;;  %v4150_v21 = vmax.f32 %v1537_v19, 0.0  ;;  %p2366_p11 = por %p2365_p10, %p2364_p9 }
 0x4ae   :  { %4832 = vst [vmem:[#allocation15_spill] sm:$0xff] %v4074_v27  ;;  %v1541_v36 = vadd.f32 %v1540_v5, %v1383_v37  ;;  %v1542_v15 = vpop.f32.mrb[7].mxu1  ;;  %1555 = vrot.lane.b32.xlu1 %v4072_v31, %s2390_s27  ;;  %1561 = vrot.lane.b32.xlu0 %v4074_v27, %s2390_s27 }
 0x4af   :  { %v1543_v2 = vadd.f32 %v1542_v15, %v1383_v37  ;;  %p2367_p12 = pnand %p2366_p11, %p2360_p8 }
 0x4b0   :  { %v4082_v6 = vmax.f32 %v1541_v36, 0.0 }
 0x4b1   :  { %v4156_v28 = vmax.f32 %v1543_v2, 0.0 }
 0x4b2   :  { %4833 = vst [vmem:[#allocation16_spill] sm:$0xff] %v4082_v6  ;;  %1563 = vrot.lane.b32.xlu1 %v4082_v6, %s2390_s27  ;;  %1585 = vrot.lane.b32.xlu0 %v4068_v43, %s2387_s23 }
 0x4b6   :  { %1587 = vrot.lane.b32.xlu1 %v4072_v31, %s2387_s23  ;;  %1593 = vrot.lane.b32.xlu0 %v4074_v27, %s2387_s23 }
 0x4ba   :  { %1595 = vrot.lane.b32.xlu1 %v4082_v6, %s2387_s23  ;;  %1617 = vrot.lane.b32.xlu0 %v4068_v43, %s2393_s28 }
 0x4be   :  { %1619 = vrot.lane.b32.xlu1 %v4072_v31, %s2393_s28  ;;  %1625 = vrot.lane.b32.xlu0 %v4074_v27, %s2393_s28 }
 0x4c2   :  { %1627 = vrot.lane.b32.xlu1 %v4082_v6, %s2393_s28  ;;  %1649 = vrot.lane.b32.xlu0 %v4068_v43, %s2395_s29 }
 0x4c6   :  { %1651 = vrot.lane.b32.xlu1 %v4072_v31, %s2395_s29  ;;  %1657 = vrot.lane.b32.xlu0 %v4074_v27, %s2395_s29 }
 0x4ca   :  { %1659 = vrot.lane.b32.xlu1 %v4082_v6, %s2395_s29  ;;  %1681 = vrot.lane.b32.xlu0 %v4068_v43, %s2397_s30 }
 0x4ce   :  { %1683 = vrot.lane.b32.xlu1 %v4072_v31, %s2397_s30  ;;  %1689 = vrot.lane.b32.xlu0 %v4074_v27, %s2397_s30 }
 0x4d2   :  { %1691 = vrot.lane.b32.xlu1 %v4082_v6, %s2397_s30  ;;  %1713 = vrot.lane.b32.xlu0 %v4068_v43, %s2399_s4 }
 0x4d6   :  { %1715 = vrot.lane.b32.xlu1 %v4072_v31, %s2399_s4  ;;  %1721 = vrot.lane.b32.xlu0 %v4074_v27, %s2399_s4 }
 0x4da   :  { %1723 = vrot.lane.b32.xlu1 %v4082_v6, %s2399_s4  ;;  %1745 = vrot.lane.b32.xlu0 %v4068_v43, %s2401_s5 }
 0x4de   :  { %1747 = vrot.lane.b32.xlu1 %v4072_v31, %s2401_s5  ;;  %1753 = vrot.lane.b32.xlu0 %v4074_v27, %s2401_s5 }
 0x4e2   :  { %1755 = vrot.lane.b32.xlu1 %v4082_v6, %s2401_s5  ;;  %1777 = vrot.lane.b32.xlu0 %v4068_v43, %s2403_s6 }
 0x4e6   :  { %1779 = vrot.lane.b32.xlu1 %v4072_v31, %s2403_s6  ;;  %1785 = vrot.lane.b32.xlu0 %v4074_v27, %s2403_s6 }
 0x4ea   :  { %1787 = vrot.lane.b32.xlu1 %v4082_v6, %s2403_s6  ;;  %1557 = vrot.lane.b32.xlu0 %v4142_v29, %s2390_s27 }
 0x4ee   :  { %1559 = vrot.lane.b32.xlu1 %v4148_v30, %s2390_s27  ;;  %1565 = vrot.lane.b32.xlu0 %v4150_v21, %s2390_s27 }
 0x4f2   :  { %1567 = vrot.lane.b32.xlu1 %v4156_v28, %s2390_s27  ;;  %1589 = vrot.lane.b32.xlu0 %v4142_v29, %s2387_s23 }
 0x4f6   :  { %1591 = vrot.lane.b32.xlu1 %v4148_v30, %s2387_s23  ;;  %1597 = vrot.lane.b32.xlu0 %v4150_v21, %s2387_s23 }
 0x4fa   :  { %1599 = vrot.lane.b32.xlu1 %v4156_v28, %s2387_s23  ;;  %1621 = vrot.lane.b32.xlu0 %v4142_v29, %s2393_s28 }
 0x4fe   :  { %1623 = vrot.lane.b32.xlu1 %v4148_v30, %s2393_s28  ;;  %1629 = vrot.lane.b32.xlu0 %v4150_v21, %s2393_s28 }
 0x502   :  { %1631 = vrot.lane.b32.xlu1 %v4156_v28, %s2393_s28  ;;  %1653 = vrot.lane.b32.xlu0 %v4142_v29, %s2395_s29 }
 0x506   :  { %1655 = vrot.lane.b32.xlu1 %v4148_v30, %s2395_s29  ;;  %1661 = vrot.lane.b32.xlu0 %v4150_v21, %s2395_s29 }
 0x50a   :  { %1663 = vrot.lane.b32.xlu1 %v4156_v28, %s2395_s29  ;;  %1685 = vrot.lane.b32.xlu0 %v4142_v29, %s2397_s30 }
 0x50e   :  { %1687 = vrot.lane.b32.xlu1 %v4148_v30, %s2397_s30  ;;  %1693 = vrot.lane.b32.xlu0 %v4150_v21, %s2397_s30 }
 0x512   :  { %1695 = vrot.lane.b32.xlu1 %v4156_v28, %s2397_s30  ;;  %1717 = vrot.lane.b32.xlu0 %v4142_v29, %s2399_s4 }
 0x516   :  { %1719 = vrot.lane.b32.xlu1 %v4148_v30, %s2399_s4  ;;  %1725 = vrot.lane.b32.xlu0 %v4150_v21, %s2399_s4 }
 0x51a   :  { %1727 = vrot.lane.b32.xlu1 %v4156_v28, %s2399_s4  ;;  %1749 = vrot.lane.b32.xlu0 %v4142_v29, %s2401_s5 }
 0x51c   :  { %v1554_v54 = vpop.permute.xlu0 %1553 }
 0x51e   :  { %1751 = vrot.lane.b32.xlu1 %v4148_v30, %s2401_s5  ;;  %1757 = vrot.lane.b32.xlu0 %v4150_v21, %s2401_s5 }
 0x520   :  { %v1556_v23 = vpop.permute.xlu1 %1555  ;;  %v1562_v60 = vpop.permute.xlu0 %1561 }
 0x522   :  { %1759 = vrot.lane.b32.xlu1 %v4156_v28, %s2401_s5  ;;  %1781 = vrot.lane.b32.xlu0 %v4142_v29, %s2403_s6 }
 0x524   :  { %v1564_v32 = vpop.permute.xlu1 %1563  ;;  %v4212_v39 = vpop.permute.xlu0 %1585 }
 0x526   :  { %1783 = vrot.lane.b32.xlu1 %v4148_v30, %s2403_s6  ;;  %1789 = vrot.lane.b32.xlu0 %v4150_v21, %s2403_s6 }
 0x528   :  { %v4221_v44 = vpop.permute.xlu1 %1587  ;;  %v4223_v37 = vpop.permute.xlu0 %1593 }
 0x52a   :  { %1791 = vrot.lane.b32.xlu1 %v4156_v28, %s2403_s6  ;;  %1974 = vperm.xlu0 %2335, %v2079_v46  }
 0x52c   :  { %v4227_v42 = vpop.permute.xlu1 %1595  ;;  %v4229_v4 = vpop.permute.xlu0 %1617 }
 0x530   :  { %v4231_v59 = vpop.permute.xlu1 %1619  ;;  %v4233_v55 = vpop.permute.xlu0 %1625 }
 0x534   :  { %v4235_v58 = vpop.permute.xlu1 %1627  ;;  %v4237_v9 = vpop.permute.xlu0 %1649 }
 0x538   :  { %v4239_v5 = vpop.permute.xlu1 %1651  ;;  %v4241_v36 = vpop.permute.xlu0 %1657 }
 0x53c   :  { %v4243_v15 = vpop.permute.xlu1 %1659  ;;  %v4245_v62 = vpop.permute.xlu0 %1681 }
 0x540   :  { %v4247_v51 = vpop.permute.xlu1 %1683  ;;  %v4249_v19 = vpop.permute.xlu0 %1689 }
 0x544   :  { %v4251_v2 = vpop.permute.xlu1 %1691  ;;  %v4253_v20 = vpop.permute.xlu0 %1713 }
 0x545   :  { %4834 = vst [vmem:[#allocation17_spill] sm:$0xff] %v4253_v20 }
 0x548   :  { %v4255_v46 = vpop.permute.xlu1 %1715  ;;  %v4257_v11 = vpop.permute.xlu0 %1721 }
 0x549   :  { %4835 = vst [vmem:[#allocation18_spill] sm:$0xff] %v4255_v46 }
 0x54c   :  { %v4259_v24 = vpop.permute.xlu1 %1723  ;;  %v4261_v18 = vpop.permute.xlu0 %1745 }
 0x54d   :  { %4836 = vst [vmem:[#allocation20_spill] sm:$0xff] %v4259_v24  ;;  %4837 = vst [vmem:[#allocation21_spill] sm:$0xff] %v4261_v18 }
 0x550   :  { %v4263_v26 = vpop.permute.xlu1 %1747  ;;  %v4265_v48 = vpop.permute.xlu0 %1753 }
 0x551   :  { %4838 = vst [vmem:[#allocation10_spill] sm:$0xff] %v4263_v26  ;;  %4839 = vst [vmem:[#allocation9_spill] sm:$0xff] %v4265_v48 }
 0x554   :  { %v4267_v57 = vpop.permute.xlu1 %1755  ;;  %v4269_v10 = vpop.permute.xlu0 %1777 }
 0x555   :  { %4840 = vst [vmem:[#allocation24_spill] sm:$0xff] %v4267_v57  ;;  %4841 = vst [vmem:[#allocation22_spill] sm:$0xff] %v4269_v10 }
 0x558   :  { %v4271_v61 = vpop.permute.xlu1 %1779  ;;  %v4273_v41 = vpop.permute.xlu0 %1785 }
 0x559   :  { %4842 = vst [vmem:[#allocation19_spill] sm:$0xff] %v4271_v61  ;;  %4843 = vst [vmem:[#allocation23_spill] sm:$0xff] %v4273_v41  ;;  %v4845_v61 = vld [vmem:[#allocation11_spill] sm:$0xff] }
 0x55c   :  { %v4275_v52 = vpop.permute.xlu1 %1787  ;;  %v1558_v17 = vpop.permute.xlu0 %1557 }
 0x55d   :  { %4844 = vst [vmem:[#allocation13_spill] sm:$0xff] %v4275_v52  ;;  %v1571_v56 = vsel %vm192_vm1, %v1558_v17, %v1562_v60  ;;  %v1573_v18 = vsel %vm192_vm1, %v1554_v54, %v1558_v17 }
 0x55e   :  { %v1578_v48 = vmul.f32 %v4845_v61, %v1573_v18  ;;  %v1579_v41 = vmul.f32 %v4769_v25, %v1571_v56 }
 0x560   :  { %v1560_v26 = vpop.permute.xlu1 %1559  ;;  %v1566_v8 = vpop.permute.xlu0 %1565 }
 0x561   :  { %v1572_v57 = vsel %vm192_vm1, %v1560_v26, %v1564_v32  ;;  %v1574_v10 = vsel %vm192_vm1, %v1556_v23, %v1560_v26  ;;  %v1569_v46 = vsel %vm192_vm1, %v1562_v60, %v1566_v8  ;;  %v1575_v17 = vsel %vm192_vm1, %v1566_v8, %v1554_v54 }
 0x562   :  { %v1582_v52 = vmul.f32 %v4845_v61, %v1574_v10  ;;  %v1583_v33 = vmul.f32 %v4769_v25, %v1572_v57  ;;  %v1577_v61 = vmul.f32 %v4770_v34, %v1575_v17  ;;  %v1580_v25 = vmul.f32 %v4771_v14, %v1569_v46 }
 0x564   :  { %v2262_v24 = vpack.c.bf16 %v1583_v33, %v1579_v41  ;;  %v1568_v27 = vpop.permute.xlu1 %1567  ;;  %v1590_v6 = vpop.permute.xlu0 %1589  ;;  %v2224_v20 = vpack.c.bf16 %v1582_v52, %v1578_v48 }
 0x565   :  { %v1570_v26 = vsel %vm192_vm1, %v1564_v32, %v1568_v27  ;;  %v1576_v56 = vsel %vm192_vm1, %v1568_v27, %v1556_v23  ;;  %v1603_v33 = vsel %vm4846_vm5, %v1590_v6, %v4223_v37  ;;  %v1605_v8 = vsel %vm4847_vm13, %v4212_v39, %v1590_v6  ;;  %vm4848_vm1 = vmmov %vm4749_vm3 }
 0x566   :  { %v1581_v10 = vmul.f32 %v4770_v34, %v1576_v56  ;;  %v1584_v57 = vmul.f32 %v4771_v14, %v1570_v26  ;;  %2225 = vmatprep.subr.bf16.mxu0 %v2224_v20  ;;  %vm4849_vm9 = vmmov %vm4848_vm1  ;;  %v1610_v14 = vmul.f32 %v4774_v40, %v1605_v8  ;;  %v1611_v54 = vmul.f32 %v4779_v63, %v1603_v33 }
 0x567   :  { %vm4850_vm10 = vmmov %vm4848_vm1 }
 0x568   :  { %v2226_v52 = vpack.c.bf16 %v1581_v10, %v1577_v61  ;;  %v1592_v41 = vpop.permute.xlu1 %1591  ;;  %v1598_v48 = vpop.permute.xlu0 %1597  ;;  %v2260_v18 = vpack.c.bf16 %v1584_v57, %v1580_v25  ;;  %vm4851_vm15 = vmmov %vm4848_vm1 }
 0x569   :  { %v1604_v27 = vsel %vm4848_vm1, %v1592_v41, %v4227_v42  ;;  %v1606_v34 = vsel %vm4849_vm9, %v4221_v44, %v1592_v41  ;;  %v1601_v60 = vsel %vm4850_vm10, %v4223_v37, %v1598_v48  ;;  %v1607_v32 = vsel %vm4851_vm15, %v1598_v48, %v4212_v39  ;;  %vm4852_vm12 = vmmov %vm4848_vm1 }
 0x56a   :  { %v1614_v23 = vmul.f32 %v4774_v40, %v1606_v34  ;;  %v1615_v6 = vmul.f32 %v4779_v63, %v1604_v27  ;;  %2227 = vmatpush1.bf16.msra.mxu0 %v2226_v52  ;;  %2261 = vmatprep.subr.bf16.mxu1 %v2260_v18  ;;  %vm4853_vm3 = vmmov %vm4848_vm1  ;;  %v1609_v37 = vmul.f32 %v4781_v13, %v1607_v32 }
 0x56b   :  { %2263 = vmatpush1.bf16.msra.mxu1 %v2262_v24  ;;  %v1612_v56 = vmul.f32 %v2782_v7, %v1601_v60 }
 0x56c   :  { %v2266_v20 = vpack.c.bf16 %v1615_v6, %v1611_v54  ;;  %v1600_v46 = vpop.permute.xlu1 %1599  ;;  %v1622_v17 = vpop.permute.xlu0 %1621  ;;  %v2228_v26 = vpack.c.bf16 %v1614_v23, %v1610_v14 }
 0x56d   :  { %v1602_v40 = vsel %vm4852_vm12, %v4227_v42, %v1600_v46  ;;  %v1608_v63 = vsel %vm4853_vm3, %v1600_v46, %v4221_v44  ;;  %v1635_v24 = vsel %vm306_vm7, %v1622_v17, %v4233_v55  ;;  %v1637_v42 = vsel %vm306_vm7, %v4229_v4, %v1622_v17 }
 0x56e   :  { %v1613_v39 = vmul.f32 %v4781_v13, %v1608_v63  ;;  %v1616_v61 = vmul.f32 %v2782_v7, %v1602_v40  ;;  %2229 = vmatprep.subr.bf16.mxu0 %v2228_v26  ;;  %v1642_v13 = vmul.f32 %v2795_v16, %v1637_v42  ;;  %v1643_v8 = vmul.f32 %v2800_v0, %v1635_v24 }
 0x570   :  { %v2230_v25 = vpack.c.bf16 %v1613_v39, %v1609_v37  ;;  %v1624_v10 = vpop.permute.xlu1 %1623  ;;  %v1630_v44 = vpop.permute.xlu0 %1629  ;;  %v2264_v57 = vpack.c.bf16 %v1616_v61, %v1612_v56 }
 0x571   :  { %v1636_v33 = vsel %vm306_vm7, %v1624_v10, %v4235_v58  ;;  %v1638_v7 = vsel %vm306_vm7, %v4231_v59, %v1624_v10  ;;  %v1633_v48 = vsel %vm306_vm7, %v4233_v55, %v1630_v44  ;;  %v1639_v18 = vsel %vm306_vm7, %v1630_v44, %v4229_v4 }
 0x572   :  { %v1646_v52 = vmul.f32 %v2795_v16, %v1638_v7  ;;  %v1647_v41 = vmul.f32 %v2800_v0, %v1636_v33  ;;  %2231 = vmatpush1.bf16.msra.mxu0 %v2230_v25  ;;  %2265 = vmatprep.subr.bf16.mxu1 %v2264_v57  ;;  %v1641_v55 = vmul.f32 %v2805_v3, %v1639_v18 }
 0x573   :  { %2267 = vmatpush1.bf16.msra.mxu1 %v2266_v20  ;;  %v1644_v23 = vmul.f32 %v2810_v49, %v1633_v48 }
 0x574   :  { %v2270_v27 = vpack.c.bf16 %v1647_v41, %v1643_v8  ;;  %v1632_v34 = vpop.permute.xlu1 %1631  ;;  %v1654_v14 = vpop.permute.xlu0 %1653  ;;  %v2232_v54 = vpack.c.bf16 %v1646_v52, %v1642_v13 }
 0x575   :  { %v1634_v16 = vsel %vm306_vm7, %v4235_v58, %v1632_v34  ;;  %v1640_v0 = vsel %vm306_vm7, %v1632_v34, %v4231_v59  ;;  %v1667_v60 = vsel %vm363_vm6, %v1654_v14, %v4241_v36  ;;  %v1669_v58 = vsel %vm363_vm6, %v4237_v9, %v1654_v14 }
 0x576   :  { %v1645_v4 = vmul.f32 %v2805_v3, %v1640_v0  ;;  %v1648_v6 = vmul.f32 %v2810_v49, %v1634_v16  ;;  %2233 = vmatprep.subr.bf16.mxu0 %v2232_v54  ;;  %v1674_v49 = vmul.f32 %v2830_v22, %v1669_v58  ;;  %v1675_v26 = vmul.f32 %v2840_v1, %v1667_v60  ;;  %v4855_v16 = vld [vmem:[#allocation17_spill] sm:$0xff]  ;;  %v4860_v58 = vld [vmem:[#allocation18_spill] sm:$0xff] }
 0x578   :  { %v2234_v32 = vpack.c.bf16 %v1645_v4, %v1641_v55  ;;  %v1656_v20 = vpop.permute.xlu1 %1655  ;;  %v1662_v59 = vpop.permute.xlu0 %1661  ;;  %v2268_v46 = vpack.c.bf16 %v1648_v6, %v1644_v23  ;;  %v4856_v23 = vld [vmem:[#allocation16_spill] sm:$0xff]  ;;  %v4857_v4 = vld [vmem:[#allocation15_spill] sm:$0xff] }
 0x579   :  { %v1668_v17 = vsel %vm363_vm6, %v1656_v20, %v4243_v15  ;;  %v1670_v3 = vsel %vm363_vm6, %v4239_v5, %v1656_v20  ;;  %v1665_v37 = vsel %vm363_vm6, %v4241_v36, %v1662_v59  ;;  %v1671_v56 = vsel %vm363_vm6, %v1662_v59, %v4237_v9  ;;  %v4861_v20 = vld [vmem:[#allocation25_spill] sm:$0xff] }
 0x57a   :  { %v1678_v40 = vmul.f32 %v2830_v22, %v1670_v3  ;;  %v1679_v63 = vmul.f32 %v2840_v1, %v1668_v17  ;;  %2235 = vmatpush1.bf16.msra.mxu0 %v2234_v32  ;;  %2269 = vmatprep.subr.bf16.mxu1 %v2268_v46  ;;  %v1673_v36 = vmul.f32 %v2835_v47, %v1671_v56  ;;  %v4862_v46 = vld [vmem:[#allocation27_spill] sm:$0xff] }
 0x57b   :  { %2271 = vmatpush1.bf16.msra.mxu1 %v2270_v27  ;;  %v1676_v25 = vmul.f32 %v2858_v50, %v1665_v37 }
 0x57c   :  { %v2274_v39 = vpack.c.bf16 %v1679_v63, %v1675_v26  ;;  %v1664_v61 = vpop.permute.xlu1 %1663  ;;  %v1686_v24 = vpop.permute.xlu0 %1685  ;;  %v2236_v42 = vpack.c.bf16 %v1678_v40, %v1674_v49 }
 0x57d   :  { %v1666_v22 = vsel %vm363_vm6, %v4243_v15, %v1664_v61  ;;  %v1672_v1 = vsel %vm363_vm6, %v1664_v61, %v4239_v5  ;;  %v1699_v44 = vsel %vm420_vm11, %v1686_v24, %v4249_v19 }
 0x57e   :  { %v1677_v9 = vmul.f32 %v2835_v47, %v1672_v1  ;;  %v1680_v10 = vmul.f32 %v2858_v50, %v1666_v22  ;;  %2237 = vmatprep.subr.bf16.mxu0 %v2236_v42  ;;  %v2240_v50 = vpack.c.bf16 %v4148_v30, %v4142_v29  ;;  %v1701_v47 = vsel %vm420_vm11, %v4245_v62, %v1686_v24  ;;  %v4863_v42 = vld [vmem:[#allocation28_spill] sm:$0xff]  ;;  %v4864_v22 = vld [vmem:[#allocation26_spill] sm:$0xff] }
 0x57f   :  { %v1706_v8 = vmul.f32 %v4755_v12, %v1699_v44  ;;  %v2276_v29 = vpack.c.bf16 %v4156_v28, %v4150_v21  ;;  %v1705_v34 = vmul.f32 %v4752_v35, %v1701_v47  ;;  %v4866_v44 = vld [vmem:[#allocation21_spill] sm:$0xff]  ;;  %v4868_v47 = vld [vmem:[#allocation10_spill] sm:$0xff] }
 0x580   :  { %v2238_v57 = vpack.c.bf16 %v1677_v9, %v1673_v36  ;;  %v1688_v33 = vpop.permute.xlu1 %1687  ;;  %v1694_v15 = vpop.permute.xlu0 %1693  ;;  %v2272_v7 = vpack.c.bf16 %v1680_v10, %v1676_v25  ;;  %v4865_v9 = vld [vmem:[#allocation9_spill] sm:$0xff] }
 0x581   :  { %v1700_v5 = vsel %vm420_vm11, %v1688_v33, %v4251_v2  ;;  %v1702_v13 = vsel %vm420_vm11, %v4247_v51, %v1688_v33  ;;  %v1697_v41 = vsel %vm420_vm11, %v4249_v19, %v1694_v15  ;;  %v1703_v48 = vsel %vm420_vm11, %v1694_v15, %v4245_v62 }
 0x582   :  { %v1710_v52 = vmul.f32 %v4755_v12, %v1700_v5  ;;  %2239 = vmatpush1.bf16.msra.mxu0 %v2238_v57  ;;  %2273 = vmatprep.subr.bf16.mxu1 %v2272_v7  ;;  %v1709_v30 = vmul.f32 %v4752_v35, %v1702_v13  ;;  %v1707_v14 = vmul.f32 %v4756_v45, %v1697_v41  ;;  %v4867_v13 = vld [vmem:[#allocation24_spill] sm:$0xff] }
 0x583   :  { %2241 = vmatprep.subr.bf16.mxu0 %v2240_v50  ;;  %2275 = vmatpush1.bf16.msra.mxu1 %v2274_v39  ;;  %v1708_v21 = vmul.f32 %v4757_v53, %v1703_v48  ;;  %v4854_v35 = vpack.c.bf16 %v4072_v31, %v4068_v43  ;;  %v4859_v43 = vld [vmem:[#allocation20_spill] sm:$0xff]  ;;  %v4870_v48 = vld [vmem:[#allocation30_spill] sm:$0xff] }
 0x584   :  { %v1696_v18 = vpop.permute.xlu1 %1695  ;;  %v1718_v27 = vpop.permute.xlu0 %1717  ;;  %v2244_v12 = vpack.c.bf16 %v1710_v52, %v1706_v8  ;;  %2277 = vmatprep.subr.bf16.mxu1 %v2276_v29  ;;  %v2246_v0 = vpack.c.bf16 %v1709_v30, %v1705_v34  ;;  %v4869_v52 = vld [vmem:[#allocation29_spill] sm:$0xff] }
 0x585   :  { %v1698_v19 = vsel %vm420_vm11, %v4251_v2, %v1696_v18  ;;  %v1704_v62 = vsel %vm420_vm11, %v1696_v18, %v4247_v51  ;;  %v1731_v2 = vsel %vm477_vm8, %v1718_v27, %v4257_v11  ;;  %v1733_v51 = vsel %vm477_vm8, %v4855_v16, %v1718_v27 }
 0x586   :  { %v1711_v28 = vmul.f32 %v4756_v45, %v1698_v19  ;;  %v1712_v54 = vmul.f32 %v4757_v53, %v1704_v62  ;;  %2243 = vmatpush1.bf16.msra.mxu0 %v4854_v35  ;;  %v4858_v45 = vpack.c.bf16 %v4856_v23, %v4857_v4  ;;  %v1737_v59 = vmul.f32 %v4861_v20, %v1733_v51  ;;  %v4874_v4 = vld [vmem:[#allocation22_spill] sm:$0xff] }
 0x587   :  { %2245 = vmatprep.subr.bf16.mxu0 %v2244_v12  ;;  %v1738_v17 = vmul.f32 %v4862_v46, %v1731_v2  ;;  %v4872_v2 = vld [vmem:[#allocation32_spill] sm:$0xff] }
 0x588   :  { %v2282_v55 = vpack.c.bf16 %v1711_v28, %v1707_v14  ;;  %2279 = vmatpush1.bf16.msra.mxu1 %v4858_v45  ;;  %v1720_v53 = vpop.permute.xlu1 %1719  ;;  %v1726_v6 = vpop.permute.xlu0 %1725  ;;  %v2280_v60 = vpack.c.bf16 %v1712_v54, %v1708_v21  ;;  %v4871_v54 = vld [vmem:[#allocation31_spill] sm:$0xff] }
 0x589   :  { %v1732_v31 = vsel %vm477_vm8, %v1720_v53, %v4859_v43  ;;  %v1734_v32 = vsel %vm477_vm8, %v4860_v58, %v1720_v53  ;;  %v1729_v26 = vsel %vm477_vm8, %v4257_v11, %v1726_v6  ;;  %v1735_v40 = vsel %vm477_vm8, %v1726_v6, %v4855_v16 }
 0x58a   :  { %v1741_v3 = vmul.f32 %v4861_v20, %v1734_v32  ;;  %v1742_v49 = vmul.f32 %v4862_v46, %v1732_v31  ;;  %2247 = vmatpush1.bf16.msra.mxu0 %v2246_v0  ;;  %2281 = vmatprep.subr.bf16.mxu1 %v2280_v60  ;;  %v1739_v11 = vmul.f32 %v4863_v42, %v1729_v26  ;;  %v4875_v31 = vld [vmem:[#allocation13_spill] sm:$0xff]  ;;  %v4876_v32 = vld [vmem:[#allocation19_spill] sm:$0xff] }
 0x58b   :  { %v1740_v1 = vmul.f32 %v4864_v22, %v1735_v40 }
 0x58c   :  { %v2250_v63 = vpack.c.bf16 %v1741_v3, %v1737_v59  ;;  %2283 = vmatpush1.bf16.msra.mxu1 %v2282_v55  ;;  %v1728_v37 = vpop.permute.xlu1 %1727  ;;  %v1750_v56 = vpop.permute.xlu0 %1749  ;;  %v2248_v39 = vpack.c.bf16 %v1742_v49, %v1738_v17  ;;  %v4873_v55 = vld [vmem:[#allocation23_spill] sm:$0xff]  ;;  %v4877_v59 = vld [vmem:[#allocation33_spill] sm:$0xff] }
 0x58d   :  { %v1730_v61 = vsel %vm477_vm8, %v4859_v43, %v1728_v37  ;;  %v1736_v24 = vsel %vm477_vm8, %v1728_v37, %v4860_v58  ;;  %v1763_v10 = vsel %vm534_vm14, %v1750_v56, %v4865_v9  ;;  %v1765_v57 = vsel %vm534_vm14, %v4866_v44, %v1750_v56  ;;  %v4878_v17 = vld [vmem:[#allocation35_spill] sm:$0xff] }
 0x58e   :  { %v1743_v36 = vmul.f32 %v4863_v42, %v1730_v61  ;;  %v1744_v25 = vmul.f32 %v4864_v22, %v1736_v24  ;;  %2249 = vmatprep.subr.bf16.mxu0 %v2248_v39  ;;  %v1769_v41 = vmul.f32 %v4869_v52, %v1765_v57  ;;  %v1770_v29 = vmul.f32 %v4870_v48, %v1763_v10  ;;  %v4879_v42 = vld [vmem:[#allocation36_spill] sm:$0xff]  ;;  %v4880_v22 = vld [vmem:[#allocation34_spill] sm:$0xff] }
 0x58f   :  { %2251 = vmatpush1.bf16.msra.mxu0 %v2250_v63  ;;  %v1813_v57 = vld [vmem:[#allocation2 + $0x78] sm:$0xff] }
 0x590   :  { %v2286_v33 = vpack.c.bf16 %v1743_v36, %v1739_v11  ;;  %v1752_v15 = vpop.permute.xlu1 %1751  ;;  %v1758_v7 = vpop.permute.xlu0 %1757  ;;  %v2284_v5 = vpack.c.bf16 %v1744_v25, %v1740_v1 }
 0x591   :  { %v1764_v50 = vsel %vm534_vm14, %v1752_v15, %v4867_v13  ;;  %v1766_v8 = vsel %vm534_vm14, %v4868_v47, %v1752_v15  ;;  %v1761_v27 = vsel %vm534_vm14, %v4865_v9, %v1758_v7  ;;  %v1767_v12 = vsel %vm534_vm14, %v1758_v7, %v4866_v44  ;;  %v1810_v9 = vld [vmem:[#allocation2 + $0x60] sm:$0xff] }
 0x592   :  { %v1773_v30 = vmul.f32 %v4869_v52, %v1766_v8  ;;  %v1774_v18 = vmul.f32 %v4870_v48, %v1764_v50  ;;  %2285 = vmatprep.subr.bf16.mxu1 %v2284_v5  ;;  %v1771_v35 = vmul.f32 %v4871_v54, %v1761_v27  ;;  %v1772_v16 = vmul.f32 %v4872_v2, %v1767_v12  ;;  %v4881_v27 = vld [vmem:[#allocation8_spill] sm:$0xff] }
 0x593   :  { %2287 = vmatpush1.bf16.msra.mxu1 %v2286_v33  ;;  %v2405_v33 = vmov 1966171168  }
 0x594   :  { %v2254_v34 = vpack.c.bf16 %v1773_v30, %v1769_v41  ;;  %v1760_v19 = vpop.permute.xlu1 %1759  ;;  %v1782_v62 = vpop.permute.xlu0 %1781  ;;  %v2252_v14 = vpack.c.bf16 %v1774_v18, %v1770_v29  ;;  %v1988_v15 = vunpack.c.l.s4 %v2405_v33 }
 0x595   :  { %v1762_v21 = vsel %vm534_vm14, %v4867_v13, %v1760_v19  ;;  %v1768_v28 = vsel %vm534_vm14, %v1760_v19, %v4868_v47  ;;  %v1795_v23 = vsel %vm591_vm2, %v1782_v62, %v4873_v55  ;;  %v1797_v45 = vsel %vm591_vm2, %v4874_v4, %v1782_v62 }
 0x596   :  { %v1775_v51 = vmul.f32 %v4871_v54, %v1762_v21  ;;  %v1776_v0 = vmul.f32 %v4872_v2, %v1768_v28  ;;  %2253 = vmatprep.subr.bf16.mxu0 %v2252_v14  ;;  %v1801_v46 = vmul.f32 %v4877_v59, %v1797_v45  ;;  %v1802_v3 = vmul.f32 %v4878_v17, %v1795_v23 }
 0x597   :  { %2255 = vmatpush1.bf16.msra.mxu0 %v2254_v34  ;;  %v1989_v8 = vunpack.c.0.s8 %v1988_v15  ;;  %v4882_v2 = vlaneseq }
 0x598   :  { %v2290_v53 = vpack.c.bf16 %v1775_v51, %v1771_v35  ;;  %v1784_v6 = vpop.permute.xlu1 %1783  ;;  %v1790_v60 = vpop.permute.xlu0 %1789  ;;  %v2288_v43 = vpack.c.bf16 %v1776_v0, %v1772_v16  ;;  %v2336_v16 = vld [vmem:[%s4554_s0] sm:$0xf] }
 0x599   :  { %v1796_v58 = vsel %vm591_vm2, %v1784_v6, %v4875_v31  ;;  %v1798_v20 = vsel %vm591_vm2, %v4876_v32, %v1784_v6  ;;  %v1793_v40 = vsel %vm591_vm2, %v4873_v55, %v1790_v60  ;;  %v1799_v63 = vsel %vm591_vm2, %v1790_v60, %v4874_v4 }
 0x59a   :  { %v1805_v49 = vmul.f32 %v4877_v59, %v1798_v20  ;;  %v1806_v26 = vmul.f32 %v4878_v17, %v1796_v58  ;;  %2289 = vmatprep.subr.bf16.mxu1 %v2288_v43  ;;  %v1803_v11 = vmul.f32 %v4879_v42, %v1793_v40  ;;  %v1804_v1 = vmul.f32 %v4880_v22, %v1799_v63 }
 0x59b   :  { %2291 = vmatpush1.bf16.msra.mxu1 %v2290_v53  ;;  %v1992_v12 = vsub.s32 %v1989_v8, %v4881_v27  ;;  %vm2013_vm7 = vcmp.lt.s32.totalorder %v4882_v2, 512 }
 0x59c   :  { %v2258_v37 = vpack.c.bf16 %v1805_v49, %v1801_v46  ;;  %v1792_v56 = vpop.permute.xlu1 %1791  ;;  %v2256_v39 = vpack.c.bf16 %v1806_v26, %v1802_v3 }
 0x59d   :  { %v1794_v61 = vsel %vm591_vm2, %v4875_v31, %v1792_v56  ;;  %v1800_v24 = vsel %vm591_vm2, %v1792_v56, %v4876_v32 }
 0x59e   :  { %v1807_v36 = vmul.f32 %v4879_v42, %v1794_v61  ;;  %v1808_v25 = vmul.f32 %v4880_v22, %v1800_v24  ;;  %2257 = vmatprep.subr.bf16.mxu0 %v2256_v39 }
 0x59f   :  { %2259 = vmatpush1.bf16.msra.mxu0 %v2258_v37 }
 0x5a0   :  { %v2294_v10 = vpack.c.bf16 %v1807_v36, %v1803_v11  ;;  %v2292_v44 = vpack.c.bf16 %v1808_v25, %v1804_v1 }
 0x5a2   :  { %1885 = vmatmul.mubr.f32.vlgmr.msra.gmra.mrb[8].mxu0 %v1810_v9  ;;  %2293 = vmatprep.subr.bf16.mxu1 %v2292_v44 }
 0x5a3   :  { %2295 = vmatpush1.bf16.msra.mxu1 %v2294_v10  ;;  %2076 = vmatprep.mubr.msk.f32.mxu0 %vm942_vm0, %v1813_v57 }
 0x5a6   :  { %1960 = vmatmul.mubr.f32.vlgmr.msra.gmra.mrb[8].mxu1 %v1810_v9  ;;  %1891 = vmatmul.mubr.f32.gmra.mrb[10].mxu0 %v1812_v38 }
 0x5a7   :  { %2078 = vmatprep.mubr.msk.f32.mxu1 %vm942_vm0, %v1813_v57 }
 0x5a9   :  { %v1975_v7 = vpop.permute.xlu0 %1974 }
 0x5aa   :  { %1966 = vmatmul.mubr.f32.gmra.mrb[10].mxu1 %v1812_v38 }
 0x675   :  { %v1886_v5 = vpop.f32.mrb[8].mxu0 }
 0x676   :  { %v1977_v13 = vadd.f32 %v1975_v7, %v1886_v5  ;;  %v1888_v50 = vpop.f32.mrb[9].mxu0 }
 0x677   :  { %v1978_v47 = vadd.f32 %v1975_v7, %v1888_v50 }
 0x679   :  { %v1985_v52 = vcombine.low %v1977_v13, %v1978_v47  ;;  %v1961_v41 = vpop.f32.mrb[8].mxu1  ;;  %v1892_v48 = vpop.f32.mrb[10].mxu0 }
 0x67a   :  { %v1979_v29 = vadd.f32 %v1975_v7, %v1961_v41  ;;  %v1963_v30 = vpop.f32.mrb[9].mxu1  ;;  %v1893_v18 = vpop.f32.mrb[11].mxu0 }
 0x67b   :  { %v1980_v34 = vadd.f32 %v1975_v7, %v1963_v30  ;;  %v1993_v21 = vrot.slane %v1985_v52, %v1992_v12 }
 0x67d   :  { %v1986_v19 = vcombine.low %v1979_v29, %v1980_v34  ;;  %v1967_v62 = vpop.f32.mrb[10].mxu1 }
 0x67e   :  { %v1968_v14 = vpop.f32.mrb[11].mxu1 }
 0x67f   :  { %v2000_v28 = vrot.slane %v1986_v19, %v1992_v12 }
 0x681   :  { %v2001_v54 = vcombine.low %v1993_v21, %v2000_v28 }
 0x683   :  { %v2008_v35 = vrot.slane %v2001_v54, %v1992_v12 }
 0x685   :  { %v2010_v51 = vsub.f32 %v2336_v16, %v2008_v35 }
 0x687   :  { %2015 = vst.msk [vmem:[#allocation5] sm:$0xf] %vm2013_vm7, %v2010_v51 }
 0x688   :  { %2370 = shalt.err (!%p2367_p12)
}
 0x689   :  { %s2371_s26 = scalar_lea.hbm %s4557_s3, 64 }
 0x68a   :  { %p2372_p13 = scmp.ne.s32.totalorder %s4557_s3, %s2371_s26  ;;  %p2375_p0 = scmp.lt.u32.totalorder %s2371_s26, %s4557_s3 }
 0x68c   :  { %p2377_p1 = pnand %p2375_p0, %p2372_p13 }
 0x68e   :  { %2380 = shalt.err (!%p2377_p1)
}
 0x68f   :  { %2025 = dma.vmem_to_hbm [thread:$0]  %s2023_s21, 64, %s4557_s3, [#allocation4]  }
 0x690   :  { %2383 = dma.done.wait [#allocation4], 64  }
 0x691   :  { %2384 = vsyncadd [#allocation4], 4294967232 }
 0x692   :  { %2029 = vsyncpa [#allocation3], 1 }
 0x693   :  { %2030 = vsyncpa [#allocation4], 1 }

</bundles_post_ra>
